<compile_context>
chip_gen: v5e
topology: v5e:2x2
jax: 0.10.0
libtpu: 0.0.40
codegen_flags: <defaults>
</compile_context>

<pallas_src>
import math

import numpy as np
import jax
import jax.numpy as jnp
from jax import lax
from jax.experimental import pallas as pl
from jax.experimental.pallas import tpu as pltpu

NUM_CLASSES = 10          # len(CIFAR10 classes)
OUT_LANES = 128           # classes padded to a full vreg width for lane-dense stores

# ---- static geometry (LeNet on 32x32x3) ------------------------------------
KS = 5
CIN, C1, C2 = 3, 6, 16
H0, W0 = 32, 32
OH1, OW1 = 28, 28          # conv1 valid output
PH1, PW1 = 14, 14          # pool1 output
OH2, OW2 = 10, 10          # conv2 valid output
PH2, PW2 = 5, 5            # pool2 output
FEAT = C2 * PH2 * PW2      # 400 (torch flatten order: c, h, w)

K1 = CIN * W0              # 96   conv1 contraction lanes: cin*32 + w_in
N1 = 2 * 128               # 256  conv1 out lanes: parity*128 + c1*16 + pooled_w
K2 = 128                   #      conv2 contraction lanes: c1*16 + pooled1_w
N2 = 2 * 128               # 256  conv2 out lanes: parity*128 + c2*8 + pooled_w
KF = 128                   #      fc1 contraction lanes per pooled row: c2*8 + pooled_w

TB_MAX = 32                # batch tile (>=32 per perf review; adaptive for tiny demos)

# Scrap-lane safety invariants (review correctness note): every garbage lane produced
# by the padded packings is provably killed by a zero row in the next banded weight.
assert (OW1 - 1) + (KS - 1) < W0          # conv1 taps stay inside each cin 32-lane strip
assert (OW2 - 1) + (KS - 1) < 16          # conv2 taps stay inside each c1 16-lane strip
assert C1 * 16 <= 128 and C2 * 8 <= 128   # packed channel strips fit one vreg
assert OW1 == 2 * PW1 and OW2 == 2 * PW2 and OH1 == 2 * PH1 and OH2 == 2 * PH2


# ---------------------------------------------------------------------------
# Fused Pallas kernel: whole forward pass for one batch tile
# ---------------------------------------------------------------------------
def _lenet_kernel(x_ref, wb1_ref, b1_ref, wb2_ref, b2_ref,
                  wf1_ref, bf1_ref, wf2_ref, bf2_ref, wf3_ref, bf3_ref, out_ref):
    f32 = jnp.float32
    tb = x_ref.shape[1]                                       # static batch tile
    xs = x_ref[...]                                           # (H0, tb, K1)

    # ---- conv1 + bias + ReLU: 5 banded matmuls (kw folded into the weights) ----
    y1 = jnp.dot(xs[0:OH1].reshape(OH1 * tb, K1), wb1_ref[0],
                 preferred_element_type=f32)
    for kh in range(1, KS):
        y1 = y1 + jnp.dot(xs[kh:kh + OH1].reshape(OH1 * tb, K1), wb1_ref[kh],
                          preferred_element_type=f32)
    y1 = jnp.maximum(y1 + b1_ref[...], 0.0)                   # (OH1*tb, 256)

    # ---- 2x2 max-pool: H via leading-dim reshape, W via aligned 128-lane halves ----
    y1 = y1.reshape(PH1, 2, tb, N1)
    y1 = jnp.maximum(y1[:, 0], y1[:, 1])                      # (PH1, tb, 256)
    z1 = jnp.maximum(y1[:, :, 0:128], y1[:, :, 128:256])      # (PH1, tb, 128)

    # ---- conv2 + bias + ReLU ----
    y2 = jnp.dot(z1[0:OH2].reshape(OH2 * tb, K2), wb2_ref[0],
                 preferred_element_type=f32)
    for kh in range(1, KS):
        y2 = y2 + jnp.dot(z1[kh:kh + OH2].reshape(OH2 * tb, K2), wb2_ref[kh],
                          preferred_element_type=f32)
    y2 = jnp.maximum(y2 + b2_ref[...], 0.0)                   # (OH2*tb, 256)

    y2 = y2.reshape(PH2, 2, tb, N2)
    y2 = jnp.maximum(y2[:, 0], y2[:, 1])                      # (PH2, tb, 256)
    p2 = jnp.maximum(y2[:, :, 0:128], y2[:, :, 128:256])      # (PH2, tb, 128)

    # ---- fc1: flatten replaced by 5 accumulated dots vs row-permuted weight slabs ----
    h1 = jnp.dot(p2[0], wf1_ref[0], preferred_element_type=f32)
    for h in range(1, PH2):
        h1 = h1 + jnp.dot(p2[h], wf1_ref[h], preferred_element_type=f32)
    h1 = jnp.maximum(h1 + bf1_ref[...], 0.0)                  # (tb, 120)

    # ---- fc2 (+ReLU), fc3 (classes padded to 128 lanes), log-softmax ----
    h2 = jnp.maximum(jnp.dot(h1, wf2_ref[...], preferred_element_type=f32)
                     + bf2_ref[...], 0.0)                     # (tb, 84)
    logits = (jnp.dot(h2, wf3_ref[...], preferred_element_type=f32)
              + bf3_ref[...])                                 # (tb, 128); pad cols = -1e9

    shifted = logits - jnp.max(logits, axis=-1, keepdims=True)
    lse = jnp.log(jnp.sum(jnp.exp(shifted), axis=-1, keepdims=True))
    out_ref[...] = shifted - lse                              # lane-dense (tb, 128) store


def _const_spec(shape):
    # full-array block, same block every grid step -> stays resident in VMEM
    rank = len(shape)
    return pl.BlockSpec(shape, lambda i, _r=rank: (0,) * _r)


@jax.jit
def cnn_forward(x_nchw, packed):
    B = x_nchw.shape[0]
    tb = min(TB_MAX, 8 * (-(-B // 8)))        # multiple of 8, capped at 32
    nb = -(-B // tb)
    Bp = nb * tb

    # (B, C, H, W) -> (H, Bp, C*W): W & channels on the lane axis, batch on sublanes.
    x = jnp.transpose(x_nchw.astype(jnp.float32), (2, 0, 1, 3))   # (H0, B, CIN, W0)
    x = jnp.pad(x, ((0, 0), (0, Bp - B), (0, 0), (0, 0)))
    x = x.reshape(H0, Bp, CIN * W0)

    ops = (packed["wb1"], packed["b1b"], packed["wb2"], packed["b2b"],
           packed["wf1"], packed["bf1"], packed["wf2"], packed["bf2"],
           packed["wf3"], packed["bf3"])

    grid_spec = pltpu.PrefetchScalarGridSpec(
        num_scalar_prefetch=0,
        grid=(nb,),
        in_specs=[pl.BlockSpec((H0, tb, CIN * W0), lambda i: (0, i, 0))]
                 + [_const_spec(o.shape) for o in ops],
        out_specs=pl.BlockSpec((tb, OUT_LANES), lambda i: (i, 0)),
    )
    out = pl.pallas_call(
        _lenet_kernel,
        out_shape=jax.ShapeDtypeStruct((Bp, OUT_LANES), jnp.float32),
        grid_spec=grid_spec,
        compiler_params=pltpu.CompilerParams(
            dimension_semantics=("parallel",),     # batch tiles shard across TCs (v7x)
            vmem_limit_bytes=32 * 1024 * 1024,     # well under v7x's 64 MiB VMEM
        ),
    )(x, *ops)
    return out[:B, :NUM_CLASSES]


# ---------------------------------------------------------------------------
# Host-side packing: banded conv weights, permuted fc1, padded fc3 (built once)
# ---------------------------------------------------------------------------
def pack_params(params):
    w1 = np.asarray(params["conv1"][0], np.float32)   # (C1, CIN, KS, KS)
    b1 = np.asarray(params["conv1"][1], np.float32)
    w2 = np.asarray(params["conv2"][0], np.float32)   # (C2, C1, KS, KS)
    b2 = np.asarray(params["conv2"][1], np.float32)
    wf1 = np.asarray(params["fc1"][0], np.float32)    # (120, FEAT), torch (c,h,w) order
    bf1 = np.asarray(params["fc1"][1], np.float32)
    wf2 = np.asarray(params["fc2"][0], np.float32)    # (84, 120)
    bf2 = np.asarray(params["fc2"][1], np.float32)
    wf3 = np.asarray(params["fc3"][0], np.float32)    # (10, 84)
    bf3 = np.asarray(params["fc3"][1], np.float32)

    # conv1 band: row = cin*W0 + w_in, col = parity*128 + c1*16 + pooled_w, where the
    # conv output column is ow = 2*pooled_w + parity (pool decimation pre-folded).
    wb1 = np.zeros((KS, K1, N1), np.float32)
    b1b = np.zeros((1, N1), np.float32)
    for kh in range(KS):
        for cin in range(CIN):
            for c in range(C1):
                for j in range(PW1):
                    for par in range(2):
                        ow = 2 * j + par
                        col = par * 128 + c * 16 + j
                        for kw in range(KS):
                            wb1[kh, cin * W0 + ow + kw, col] = w1[c, cin, kh, kw]
    for c in range(C1):
        for j in range(PW1):
            for par in range(2):
                b1b[0, par * 128 + c * 16 + j] = b1[c]

    # conv2 band: row = c1*16 + pooled1_w, col = parity*128 + c2*8 + pooled2_w.
    wb2 = np.zeros((KS, K2, N2), np.float32)
    b2b = np.zeros((1, N2), np.float32)
    for kh in range(KS):
        for c1 in range(C1):
            for c2 in range(C2):
                for t in range(PW2):
                    for par in range(2):
                        ow = 2 * t + par
                        col = par * 128 + c2 * 8 + t
                        for kw in range(KS):
                            wb2[kh, c1 * 16 + ow + kw, col] = w2[c2, c1, kh, kw]
    for c2 in range(C2):
        for t in range(PW2):
            for par in range(2):
                b2b[0, par * 128 + c2 * 8 + t] = b2[c2]

    # fc1: per pooled-row-h slab, row = c2*8 + pooled_w, permuted from torch's
    # (C, H, W) flatten order; unused rows stay zero so scrap lanes never leak.
    wf1p = np.zeros((PH2, KF, 120), np.float32)
    for h in range(PH2):
        for c2 in range(C2):
            for t in range(PW2):
                wf1p[h, c2 * 8 + t, :] = wf1[:, c2 * (PH2 * PW2) + h * PW2 + t]

    # fc3: classes padded 10 -> 128; pad logits forced to -1e9 via the bias.
    wf3p = np.zeros((84, OUT_LANES), np.float32)
    wf3p[:, :NUM_CLASSES] = wf3.T
    bf3p = np.full((1, OUT_LANES), -1e9, np.float32)
    bf3p[0, :NUM_CLASSES] = bf3

    return dict(
        wb1=jnp.asarray(wb1), b1b=jnp.asarray(b1b),
        wb2=jnp.asarray(wb2), b2b=jnp.asarray(b2b),
        wf1=jnp.asarray(wf1p), bf1=jnp.asarray(bf1[None, :]),
        wf2=jnp.asarray(wf2.T), bf2=jnp.asarray(bf2[None, :]),
        wf3=jnp.asarray(wf3p), bf3=jnp.asarray(bf3p),
    )


# ---------------------------------------------------------------------------
# Parameters (deterministic synthetic init, PyTorch-default-style uniform)
# ---------------------------------------------------------------------------
def init_params(key):
    ks = jax.random.split(key, 10)

    def u(k, shape, fan_in):
        bound = 1.0 / math.sqrt(fan_in)
        return jax.random.uniform(k, shape, jnp.float32, -bound, bound)

    return dict(
        conv1=(u(ks[0], (C1, CIN, KS, KS), CIN * KS * KS),
               u(ks[1], (C1,), CIN * KS * KS)),
        conv2=(u(ks[2], (C2, C1, KS, KS), C1 * KS * KS),
               u(ks[3], (C2,), C1 * KS * KS)),
        fc1=(u(ks[4], (120, FEAT), FEAT), u(ks[5], (120,), FEAT)),
        fc2=(u(ks[6], (84, 120), 120), u(ks[7], (84,), 120)),
        fc3=(u(ks[8], (NUM_CLASSES, 84), 84), u(ks[9], (NUM_CLASSES,), 84)),
    )


# ---------------------------------------------------------------------------
# Pure-JAX reference (PyTorch semantics / flatten order) for a correctness check
# ---------------------------------------------------------------------------
def reference_forward(x_nchw, params):
    hp = lax.Precision.HIGHEST
    w1, b1 = params["conv1"]
    w2, b2 = params["conv2"]
    wf1, bf1 = params["fc1"]
    wf2, bf2 = params["fc2"]
    wf3, bf3 = params["fc3"]
    B = x_nchw.shape[0]
    x = x_nchw.astype(jnp.float32)
    y = lax.conv_general_dilated(x, w1, (1, 1), "VALID",
                                 dimension_numbers=("NCHW", "OIHW", "NCHW"),
                                 precision=hp)
    y = jnp.maximum(y + b1[None, :, None, None], 0.0)
    y = y.reshape(B, C1, PH1, 2, PW1, 2).max(axis=(3, 5))
    y = lax.conv_general_dilated(y, w2, (1, 1), "VALID",
                                 dimension_numbers=("NCHW", "OIHW", "NCHW"),
                                 precision=hp)
    y = jnp.maximum(y + b2[None, :, None, None], 0.0)
    y = y.reshape(B, C2, PH2, 2, PW2, 2).max(axis=(3, 5))
    z = y.reshape(B, FEAT)                                    # torch (C, H, W) flatten
    h = jnp.maximum(jnp.dot(z, wf1.T, precision=hp) + bf1, 0.0)
    h = jnp.maximum(jnp.dot(h, wf2.T, precision=hp) + bf2, 0.0)
    logits = jnp.dot(h, wf3.T, precision=hp) + bf3
    return jax.nn.log_softmax(logits, axis=-1)


if __name__ == "__main__":
    key = jax.random.PRNGKey(0)
    k_param, k_x = jax.random.split(key)
    params = init_params(k_param)
    packed = pack_params(params)

    # CIFAR-10-like input, NCHW as PyTorch would provide: batch=2, 3x32x32
    x = jax.random.normal(k_x, (2, CIN, H0, W0), dtype=jnp.float32)

    out = jax.block_until_ready(cnn_forward(x, packed))
    assert out.shape == (2, NUM_CLASSES), out.shape

    ref = jax.block_until_ready(reference_forward(x, params))
    # tolerance covers a reduced-precision MXU path for the f32 matmuls
    assert bool(jnp.allclose(out, ref, atol=5e-2, rtol=5e-2)), (out, ref)

    row_sums = jnp.exp(out).sum(axis=1)          # log-softmax rows must sum to ~1
    assert bool(jnp.all(jnp.abs(row_sums - 1.0) < 1e-3)), row_sums
    print("KERNEL_OK")
</pallas_src>

<mosaic_0001>
module attributes {stable_mosaic.version = 11 : i64} {
  func.func @_lenet_kernel(%arg0: i32, %arg1: memref<32x8x96xf32, #tpu.memory_space<vmem>>, %arg2: memref<5x96x256xf32, #tpu.memory_space<vmem>>, %arg3: memref<1x256xf32, #tpu.memory_space<vmem>>, %arg4: memref<5x128x256xf32, #tpu.memory_space<vmem>>, %arg5: memref<1x256xf32, #tpu.memory_space<vmem>>, %arg6: memref<5x128x120xf32, #tpu.memory_space<vmem>>, %arg7: memref<1x120xf32, #tpu.memory_space<vmem>>, %arg8: memref<120x84xf32, #tpu.memory_space<vmem>>, %arg9: memref<1x84xf32, #tpu.memory_space<vmem>>, %arg10: memref<84x128xf32, #tpu.memory_space<vmem>>, %arg11: memref<1x128xf32, #tpu.memory_space<vmem>>, %arg12: memref<8x128xf32, #tpu.memory_space<vmem>>) attributes {dimension_semantics = [#tpu.dimension_semantics<parallel>], iteration_bounds = array<i64: 1>, scalar_prefetch = 0 : i64, scratch_operands = 0 : i64, tpu.core_type = #tpu.core_type<tc>, window_params = [{transform_indices = @transform_0, window_bounds = array<i64: 32, 8, 96>}, {pipeline_mode = #tpu.pipeline_mode<synchronous>, transform_indices = @transform_1, window_bounds = array<i64: 5, 96, 256>}, {pipeline_mode = #tpu.pipeline_mode<synchronous>, transform_indices = @transform_2, window_bounds = array<i64: 1, 256>}, {pipeline_mode = #tpu.pipeline_mode<synchronous>, transform_indices = @transform_3, window_bounds = array<i64: 5, 128, 256>}, {pipeline_mode = #tpu.pipeline_mode<synchronous>, transform_indices = @transform_4, window_bounds = array<i64: 1, 256>}, {pipeline_mode = #tpu.pipeline_mode<synchronous>, transform_indices = @transform_5, window_bounds = array<i64: 5, 128, 120>}, {pipeline_mode = #tpu.pipeline_mode<synchronous>, transform_indices = @transform_6, window_bounds = array<i64: 1, 120>}, {pipeline_mode = #tpu.pipeline_mode<synchronous>, transform_indices = @transform_7, window_bounds = array<i64: 120, 84>}, {pipeline_mode = #tpu.pipeline_mode<synchronous>, transform_indices = @transform_8, window_bounds = array<i64: 1, 84>}, {pipeline_mode = #tpu.pipeline_mode<synchronous>, transform_indices = @transform_9, window_bounds = array<i64: 84, 128>}, {pipeline_mode = #tpu.pipeline_mode<synchronous>, transform_indices = @transform_10, window_bounds = array<i64: 1, 128>}, {transform_indices = @transform_11, window_bounds = array<i64: 8, 128>}]} {
    %c0 = arith.constant 0 : index
    %c0_0 = arith.constant 0 : index
    %c0_1 = arith.constant 0 : index
    %0 = vector.load %arg1[%c0, %c0_0, %c0_1] : memref<32x8x96xf32, #tpu.memory_space<vmem>>, vector<32x8x96xf32>
    %1 = vector.extract_strided_slice %0 {offsets = [0, 0, 0], sizes = [28, 8, 96], strides = [1, 1, 1]} : vector<32x8x96xf32> to vector<28x8x96xf32>
    %2 = vector.shape_cast %1 : vector<28x8x96xf32> to vector<224x96xf32>
    %c0_2 = arith.constant 0 : index
    %c0_3 = arith.constant 0 : index
    %c0_4 = arith.constant 0 : index
    %3 = vector.load %arg2[%c0_2, %c0_3, %c0_4] : memref<5x96x256xf32, #tpu.memory_space<vmem>>, vector<1x96x256xf32>
    %4 = vector.shape_cast %3 : vector<1x96x256xf32> to vector<96x256xf32>
    %cst = arith.constant dense<0.000000e+00> : vector<224x256xf32>
    %5 = tpu.matmul %2, %4, %cst {dimension_numbers = #tpu.dot_dimension_numbers<[1], [0], [0], [1], [0, 0, 1, 1], [], []>} : vector<224x96xf32>, vector<96x256xf32>, vector<224x256xf32> -> vector<224x256xf32>
    %6 = vector.extract_strided_slice %0 {offsets = [1, 0, 0], sizes = [28, 8, 96], strides = [1, 1, 1]} : vector<32x8x96xf32> to vector<28x8x96xf32>
    %7 = vector.shape_cast %6 : vector<28x8x96xf32> to vector<224x96xf32>
    %c1 = arith.constant 1 : index
    %c0_5 = arith.constant 0 : index
    %c0_6 = arith.constant 0 : index
    %8 = vector.load %arg2[%c1, %c0_5, %c0_6] : memref<5x96x256xf32, #tpu.memory_space<vmem>>, vector<1x96x256xf32>
    %9 = vector.shape_cast %8 : vector<1x96x256xf32> to vector<96x256xf32>
    %cst_7 = arith.constant dense<0.000000e+00> : vector<224x256xf32>
    %10 = tpu.matmul %7, %9, %cst_7 {dimension_numbers = #tpu.dot_dimension_numbers<[1], [0], [0], [1], [0, 0, 1, 1], [], []>} : vector<224x96xf32>, vector<96x256xf32>, vector<224x256xf32> -> vector<224x256xf32>
    %11 = arith.addf %5, %10 : vector<224x256xf32>
    %12 = vector.extract_strided_slice %0 {offsets = [2, 0, 0], sizes = [28, 8, 96], strides = [1, 1, 1]} : vector<32x8x96xf32> to vector<28x8x96xf32>
    %13 = vector.shape_cast %12 : vector<28x8x96xf32> to vector<224x96xf32>
    %c2 = arith.constant 2 : index
    %c0_8 = arith.constant 0 : index
    %c0_9 = arith.constant 0 : index
    %14 = vector.load %arg2[%c2, %c0_8, %c0_9] : memref<5x96x256xf32, #tpu.memory_space<vmem>>, vector<1x96x256xf32>
    %15 = vector.shape_cast %14 : vector<1x96x256xf32> to vector<96x256xf32>
    %cst_10 = arith.constant dense<0.000000e+00> : vector<224x256xf32>
    %16 = tpu.matmul %13, %15, %cst_10 {dimension_numbers = #tpu.dot_dimension_numbers<[1], [0], [0], [1], [0, 0, 1, 1], [], []>} : vector<224x96xf32>, vector<96x256xf32>, vector<224x256xf32> -> vector<224x256xf32>
    %17 = arith.addf %11, %16 : vector<224x256xf32>
    %18 = vector.extract_strided_slice %0 {offsets = [3, 0, 0], sizes = [28, 8, 96], strides = [1, 1, 1]} : vector<32x8x96xf32> to vector<28x8x96xf32>
    %19 = vector.shape_cast %18 : vector<28x8x96xf32> to vector<224x96xf32>
    %c3 = arith.constant 3 : index
    %c0_11 = arith.constant 0 : index
    %c0_12 = arith.constant 0 : index
    %20 = vector.load %arg2[%c3, %c0_11, %c0_12] : memref<5x96x256xf32, #tpu.memory_space<vmem>>, vector<1x96x256xf32>
    %21 = vector.shape_cast %20 : vector<1x96x256xf32> to vector<96x256xf32>
    %cst_13 = arith.constant dense<0.000000e+00> : vector<224x256xf32>
    %22 = tpu.matmul %19, %21, %cst_13 {dimension_numbers = #tpu.dot_dimension_numbers<[1], [0], [0], [1], [0, 0, 1, 1], [], []>} : vector<224x96xf32>, vector<96x256xf32>, vector<224x256xf32> -> vector<224x256xf32>
    %23 = arith.addf %17, %22 : vector<224x256xf32>
    %24 = vector.extract_strided_slice %0 {offsets = [4, 0, 0], sizes = [28, 8, 96], strides = [1, 1, 1]} : vector<32x8x96xf32> to vector<28x8x96xf32>
    %25 = vector.shape_cast %24 : vector<28x8x96xf32> to vector<224x96xf32>
    %c4 = arith.constant 4 : index
    %c0_14 = arith.constant 0 : index
    %c0_15 = arith.constant 0 : index
    %26 = vector.load %arg2[%c4, %c0_14, %c0_15] : memref<5x96x256xf32, #tpu.memory_space<vmem>>, vector<1x96x256xf32>
    %27 = vector.shape_cast %26 : vector<1x96x256xf32> to vector<96x256xf32>
    %cst_16 = arith.constant dense<0.000000e+00> : vector<224x256xf32>
    %28 = tpu.matmul %25, %27, %cst_16 {dimension_numbers = #tpu.dot_dimension_numbers<[1], [0], [0], [1], [0, 0, 1, 1], [], []>} : vector<224x96xf32>, vector<96x256xf32>, vector<224x256xf32> -> vector<224x256xf32>
    %29 = arith.addf %23, %28 : vector<224x256xf32>
    %c0_17 = arith.constant 0 : index
    %c0_18 = arith.constant 0 : index
    %30 = vector.load %arg3[%c0_17, %c0_18] : memref<1x256xf32, #tpu.memory_space<vmem>>, vector<1x256xf32>
    %31 = vector.broadcast %30 : vector<1x256xf32> to vector<224x256xf32>
    %32 = arith.addf %29, %31 : vector<224x256xf32>
    %cst_19 = arith.constant 0.000000e+00 : f32
    %33 = vector.broadcast %cst_19 : f32 to vector<224x256xf32>
    %34 = arith.maximumf %32, %33 : vector<224x256xf32>
    %35 = vector.shape_cast %34 : vector<224x256xf32> to vector<14x2x8x256xf32>
    %36 = vector.extract_strided_slice %35 {offsets = [0, 0, 0, 0], sizes = [14, 1, 8, 256], strides = [1, 1, 1, 1]} : vector<14x2x8x256xf32> to vector<14x1x8x256xf32>
    %37 = vector.shape_cast %36 : vector<14x1x8x256xf32> to vector<14x8x256xf32>
    %38 = vector.extract_strided_slice %35 {offsets = [0, 1, 0, 0], sizes = [14, 1, 8, 256], strides = [1, 1, 1, 1]} : vector<14x2x8x256xf32> to vector<14x1x8x256xf32>
    %39 = vector.shape_cast %38 : vector<14x1x8x256xf32> to vector<14x8x256xf32>
    %40 = arith.maximumf %37, %39 : vector<14x8x256xf32>
    %41 = vector.extract_strided_slice %40 {offsets = [0, 0, 0], sizes = [14, 8, 128], strides = [1, 1, 1]} : vector<14x8x256xf32> to vector<14x8x128xf32>
    %42 = vector.extract_strided_slice %40 {offsets = [0, 0, 128], sizes = [14, 8, 128], strides = [1, 1, 1]} : vector<14x8x256xf32> to vector<14x8x128xf32>
    %43 = arith.maximumf %41, %42 : vector<14x8x128xf32>
    %44 = vector.extract_strided_slice %43 {offsets = [0, 0, 0], sizes = [10, 8, 128], strides = [1, 1, 1]} : vector<14x8x128xf32> to vector<10x8x128xf32>
    %45 = vector.shape_cast %44 : vector<10x8x128xf32> to vector<80x128xf32>
    %c0_20 = arith.constant 0 : index
    %c0_21 = arith.constant 0 : index
    %c0_22 = arith.constant 0 : index
    %46 = vector.load %arg4[%c0_20, %c0_21, %c0_22] : memref<5x128x256xf32, #tpu.memory_space<vmem>>, vector<1x128x256xf32>
    %47 = vector.shape_cast %46 : vector<1x128x256xf32> to vector<128x256xf32>
    %cst_23 = arith.constant dense<0.000000e+00> : vector<80x256xf32>
    %48 = tpu.matmul %45, %47, %cst_23 {dimension_numbers = #tpu.dot_dimension_numbers<[1], [0], [0], [1], [0, 0, 1, 1], [], []>} : vector<80x128xf32>, vector<128x256xf32>, vector<80x256xf32> -> vector<80x256xf32>
    %49 = vector.extract_strided_slice %43 {offsets = [1, 0, 0], sizes = [10, 8, 128], strides = [1, 1, 1]} : vector<14x8x128xf32> to vector<10x8x128xf32>
    %50 = vector.shape_cast %49 : vector<10x8x128xf32> to vector<80x128xf32>
    %c1_24 = arith.constant 1 : index
    %c0_25 = arith.constant 0 : index
    %c0_26 = arith.constant 0 : index
    %51 = vector.load %arg4[%c1_24, %c0_25, %c0_26] : memref<5x128x256xf32, #tpu.memory_space<vmem>>, vector<1x128x256xf32>
    %52 = vector.shape_cast %51 : vector<1x128x256xf32> to vector<128x256xf32>
    %cst_27 = arith.constant dense<0.000000e+00> : vector<80x256xf32>
    %53 = tpu.matmul %50, %52, %cst_27 {dimension_numbers = #tpu.dot_dimension_numbers<[1], [0], [0], [1], [0, 0, 1, 1], [], []>} : vector<80x128xf32>, vector<128x256xf32>, vector<80x256xf32> -> vector<80x256xf32>
    %54 = arith.addf %48, %53 : vector<80x256xf32>
    %55 = vector.extract_strided_slice %43 {offsets = [2, 0, 0], sizes = [10, 8, 128], strides = [1, 1, 1]} : vector<14x8x128xf32> to vector<10x8x128xf32>
    %56 = vector.shape_cast %55 : vector<10x8x128xf32> to vector<80x128xf32>
    %c2_28 = arith.constant 2 : index
    %c0_29 = arith.constant 0 : index
    %c0_30 = arith.constant 0 : index
    %57 = vector.load %arg4[%c2_28, %c0_29, %c0_30] : memref<5x128x256xf32, #tpu.memory_space<vmem>>, vector<1x128x256xf32>
    %58 = vector.shape_cast %57 : vector<1x128x256xf32> to vector<128x256xf32>
    %cst_31 = arith.constant dense<0.000000e+00> : vector<80x256xf32>
    %59 = tpu.matmul %56, %58, %cst_31 {dimension_numbers = #tpu.dot_dimension_numbers<[1], [0], [0], [1], [0, 0, 1, 1], [], []>} : vector<80x128xf32>, vector<128x256xf32>, vector<80x256xf32> -> vector<80x256xf32>
    %60 = arith.addf %54, %59 : vector<80x256xf32>
    %61 = vector.extract_strided_slice %43 {offsets = [3, 0, 0], sizes = [10, 8, 128], strides = [1, 1, 1]} : vector<14x8x128xf32> to vector<10x8x128xf32>
    %62 = vector.shape_cast %61 : vector<10x8x128xf32> to vector<80x128xf32>
    %c3_32 = arith.constant 3 : index
    %c0_33 = arith.constant 0 : index
    %c0_34 = arith.constant 0 : index
    %63 = vector.load %arg4[%c3_32, %c0_33, %c0_34] : memref<5x128x256xf32, #tpu.memory_space<vmem>>, vector<1x128x256xf32>
    %64 = vector.shape_cast %63 : vector<1x128x256xf32> to vector<128x256xf32>
    %cst_35 = arith.constant dense<0.000000e+00> : vector<80x256xf32>
    %65 = tpu.matmul %62, %64, %cst_35 {dimension_numbers = #tpu.dot_dimension_numbers<[1], [0], [0], [1], [0, 0, 1, 1], [], []>} : vector<80x128xf32>, vector<128x256xf32>, vector<80x256xf32> -> vector<80x256xf32>
    %66 = arith.addf %60, %65 : vector<80x256xf32>
    %67 = vector.extract_strided_slice %43 {offsets = [4, 0, 0], sizes = [10, 8, 128], strides = [1, 1, 1]} : vector<14x8x128xf32> to vector<10x8x128xf32>
    %68 = vector.shape_cast %67 : vector<10x8x128xf32> to vector<80x128xf32>
    %c4_36 = arith.constant 4 : index
    %c0_37 = arith.constant 0 : index
    %c0_38 = arith.constant 0 : index
    %69 = vector.load %arg4[%c4_36, %c0_37, %c0_38] : memref<5x128x256xf32, #tpu.memory_space<vmem>>, vector<1x128x256xf32>
    %70 = vector.shape_cast %69 : vector<1x128x256xf32> to vector<128x256xf32>
    %cst_39 = arith.constant dense<0.000000e+00> : vector<80x256xf32>
    %71 = tpu.matmul %68, %70, %cst_39 {dimension_numbers = #tpu.dot_dimension_numbers<[1], [0], [0], [1], [0, 0, 1, 1], [], []>} : vector<80x128xf32>, vector<128x256xf32>, vector<80x256xf32> -> vector<80x256xf32>
    %72 = arith.addf %66, %71 : vector<80x256xf32>
    %c0_40 = arith.constant 0 : index
    %c0_41 = arith.constant 0 : index
    %73 = vector.load %arg5[%c0_40, %c0_41] : memref<1x256xf32, #tpu.memory_space<vmem>>, vector<1x256xf32>
    %74 = vector.broadcast %73 : vector<1x256xf32> to vector<80x256xf32>
    %75 = arith.addf %72, %74 : vector<80x256xf32>
    %cst_42 = arith.constant 0.000000e+00 : f32
    %76 = vector.broadcast %cst_42 : f32 to vector<80x256xf32>
    %77 = arith.maximumf %75, %76 : vector<80x256xf32>
    %78 = vector.shape_cast %77 : vector<80x256xf32> to vector<5x2x8x256xf32>
    %79 = vector.extract_strided_slice %78 {offsets = [0, 0, 0, 0], sizes = [5, 1, 8, 256], strides = [1, 1, 1, 1]} : vector<5x2x8x256xf32> to vector<5x1x8x256xf32>
    %80 = vector.shape_cast %79 : vector<5x1x8x256xf32> to vector<5x8x256xf32>
    %81 = vector.extract_strided_slice %78 {offsets = [0, 1, 0, 0], sizes = [5, 1, 8, 256], strides = [1, 1, 1, 1]} : vector<5x2x8x256xf32> to vector<5x1x8x256xf32>
    %82 = vector.shape_cast %81 : vector<5x1x8x256xf32> to vector<5x8x256xf32>
    %83 = arith.maximumf %80, %82 : vector<5x8x256xf32>
    %84 = vector.extract_strided_slice %83 {offsets = [0, 0, 0], sizes = [5, 8, 128], strides = [1, 1, 1]} : vector<5x8x256xf32> to vector<5x8x128xf32>
    %85 = vector.extract_strided_slice %83 {offsets = [0, 0, 128], sizes = [5, 8, 128], strides = [1, 1, 1]} : vector<5x8x256xf32> to vector<5x8x128xf32>
    %86 = arith.maximumf %84, %85 : vector<5x8x128xf32>
    %87 = vector.extract_strided_slice %86 {offsets = [0, 0, 0], sizes = [1, 8, 128], strides = [1, 1, 1]} : vector<5x8x128xf32> to vector<1x8x128xf32>
    %88 = vector.shape_cast %87 : vector<1x8x128xf32> to vector<8x128xf32>
    %c0_43 = arith.constant 0 : index
    %c0_44 = arith.constant 0 : index
    %c0_45 = arith.constant 0 : index
    %89 = vector.load %arg6[%c0_43, %c0_44, %c0_45] : memref<5x128x120xf32, #tpu.memory_space<vmem>>, vector<1x128x120xf32>
    %90 = vector.shape_cast %89 : vector<1x128x120xf32> to vector<128x120xf32>
    %cst_46 = arith.constant dense<0.000000e+00> : vector<8x120xf32>
    %91 = tpu.matmul %88, %90, %cst_46 {dimension_numbers = #tpu.dot_dimension_numbers<[1], [0], [0], [1], [0, 0, 1, 1], [], []>} : vector<8x128xf32>, vector<128x120xf32>, vector<8x120xf32> -> vector<8x120xf32>
    %92 = vector.extract_strided_slice %86 {offsets = [1, 0, 0], sizes = [1, 8, 128], strides = [1, 1, 1]} : vector<5x8x128xf32> to vector<1x8x128xf32>
    %93 = vector.shape_cast %92 : vector<1x8x128xf32> to vector<8x128xf32>
    %c1_47 = arith.constant 1 : index
    %c0_48 = arith.constant 0 : index
    %c0_49 = arith.constant 0 : index
    %94 = vector.load %arg6[%c1_47, %c0_48, %c0_49] : memref<5x128x120xf32, #tpu.memory_space<vmem>>, vector<1x128x120xf32>
    %95 = vector.shape_cast %94 : vector<1x128x120xf32> to vector<128x120xf32>
    %cst_50 = arith.constant dense<0.000000e+00> : vector<8x120xf32>
    %96 = tpu.matmul %93, %95, %cst_50 {dimension_numbers = #tpu.dot_dimension_numbers<[1], [0], [0], [1], [0, 0, 1, 1], [], []>} : vector<8x128xf32>, vector<128x120xf32>, vector<8x120xf32> -> vector<8x120xf32>
    %97 = arith.addf %91, %96 : vector<8x120xf32>
    %98 = vector.extract_strided_slice %86 {offsets = [2, 0, 0], sizes = [1, 8, 128], strides = [1, 1, 1]} : vector<5x8x128xf32> to vector<1x8x128xf32>
    %99 = vector.shape_cast %98 : vector<1x8x128xf32> to vector<8x128xf32>
    %c2_51 = arith.constant 2 : index
    %c0_52 = arith.constant 0 : index
    %c0_53 = arith.constant 0 : index
    %100 = vector.load %arg6[%c2_51, %c0_52, %c0_53] : memref<5x128x120xf32, #tpu.memory_space<vmem>>, vector<1x128x120xf32>
    %101 = vector.shape_cast %100 : vector<1x128x120xf32> to vector<128x120xf32>
    %cst_54 = arith.constant dense<0.000000e+00> : vector<8x120xf32>
    %102 = tpu.matmul %99, %101, %cst_54 {dimension_numbers = #tpu.dot_dimension_numbers<[1], [0], [0], [1], [0, 0, 1, 1], [], []>} : vector<8x128xf32>, vector<128x120xf32>, vector<8x120xf32> -> vector<8x120xf32>
    %103 = arith.addf %97, %102 : vector<8x120xf32>
    %104 = vector.extract_strided_slice %86 {offsets = [3, 0, 0], sizes = [1, 8, 128], strides = [1, 1, 1]} : vector<5x8x128xf32> to vector<1x8x128xf32>
    %105 = vector.shape_cast %104 : vector<1x8x128xf32> to vector<8x128xf32>
    %c3_55 = arith.constant 3 : index
    %c0_56 = arith.constant 0 : index
    %c0_57 = arith.constant 0 : index
    %106 = vector.load %arg6[%c3_55, %c0_56, %c0_57] : memref<5x128x120xf32, #tpu.memory_space<vmem>>, vector<1x128x120xf32>
    %107 = vector.shape_cast %106 : vector<1x128x120xf32> to vector<128x120xf32>
    %cst_58 = arith.constant dense<0.000000e+00> : vector<8x120xf32>
    %108 = tpu.matmul %105, %107, %cst_58 {dimension_numbers = #tpu.dot_dimension_numbers<[1], [0], [0], [1], [0, 0, 1, 1], [], []>} : vector<8x128xf32>, vector<128x120xf32>, vector<8x120xf32> -> vector<8x120xf32>
    %109 = arith.addf %103, %108 : vector<8x120xf32>
    %110 = vector.extract_strided_slice %86 {offsets = [4, 0, 0], sizes = [1, 8, 128], strides = [1, 1, 1]} : vector<5x8x128xf32> to vector<1x8x128xf32>
    %111 = vector.shape_cast %110 : vector<1x8x128xf32> to vector<8x128xf32>
    %c4_59 = arith.constant 4 : index
    %c0_60 = arith.constant 0 : index
    %c0_61 = arith.constant 0 : index
    %112 = vector.load %arg6[%c4_59, %c0_60, %c0_61] : memref<5x128x120xf32, #tpu.memory_space<vmem>>, vector<1x128x120xf32>
    %113 = vector.shape_cast %112 : vector<1x128x120xf32> to vector<128x120xf32>
    %cst_62 = arith.constant dense<0.000000e+00> : vector<8x120xf32>
    %114 = tpu.matmul %111, %113, %cst_62 {dimension_numbers = #tpu.dot_dimension_numbers<[1], [0], [0], [1], [0, 0, 1, 1], [], []>} : vector<8x128xf32>, vector<128x120xf32>, vector<8x120xf32> -> vector<8x120xf32>
    %115 = arith.addf %109, %114 : vector<8x120xf32>
    %c0_63 = arith.constant 0 : index
    %c0_64 = arith.constant 0 : index
    %116 = vector.load %arg7[%c0_63, %c0_64] : memref<1x120xf32, #tpu.memory_space<vmem>>, vector<1x120xf32>
    %117 = vector.broadcast %116 : vector<1x120xf32> to vector<8x120xf32>
    %118 = arith.addf %115, %117 : vector<8x120xf32>
    %cst_65 = arith.constant 0.000000e+00 : f32
    %119 = vector.broadcast %cst_65 : f32 to vector<8x120xf32>
    %120 = arith.maximumf %118, %119 : vector<8x120xf32>
    %c0_66 = arith.constant 0 : index
    %c0_67 = arith.constant 0 : index
    %121 = vector.load %arg8[%c0_66, %c0_67] : memref<120x84xf32, #tpu.memory_space<vmem>>, vector<120x84xf32>
    %cst_68 = arith.constant dense<0.000000e+00> : vector<8x84xf32>
    %122 = tpu.matmul %120, %121, %cst_68 {dimension_numbers = #tpu.dot_dimension_numbers<[1], [0], [0], [1], [0, 0, 1, 1], [], []>} : vector<8x120xf32>, vector<120x84xf32>, vector<8x84xf32> -> vector<8x84xf32>
    %c0_69 = arith.constant 0 : index
    %c0_70 = arith.constant 0 : index
    %123 = vector.load %arg9[%c0_69, %c0_70] : memref<1x84xf32, #tpu.memory_space<vmem>>, vector<1x84xf32>
    %124 = vector.broadcast %123 : vector<1x84xf32> to vector<8x84xf32>
    %125 = arith.addf %122, %124 : vector<8x84xf32>
    %cst_71 = arith.constant 0.000000e+00 : f32
    %126 = vector.broadcast %cst_71 : f32 to vector<8x84xf32>
    %127 = arith.maximumf %125, %126 : vector<8x84xf32>
    %c0_72 = arith.constant 0 : index
    %c0_73 = arith.constant 0 : index
    %128 = vector.load %arg10[%c0_72, %c0_73] : memref<84x128xf32, #tpu.memory_space<vmem>>, vector<84x128xf32>
    %cst_74 = arith.constant dense<0.000000e+00> : vector<8x128xf32>
    %129 = tpu.matmul %127, %128, %cst_74 {dimension_numbers = #tpu.dot_dimension_numbers<[1], [0], [0], [1], [0, 0, 1, 1], [], []>} : vector<8x84xf32>, vector<84x128xf32>, vector<8x128xf32> -> vector<8x128xf32>
    %c0_75 = arith.constant 0 : index
    %c0_76 = arith.constant 0 : index
    %130 = vector.load %arg11[%c0_75, %c0_76] : memref<1x128xf32, #tpu.memory_space<vmem>>, vector<1x128xf32>
    %131 = vector.broadcast %130 : vector<1x128xf32> to vector<8x128xf32>
    %132 = arith.addf %129, %131 : vector<8x128xf32>
    %cst_77 = arith.constant dense<0xFF800000> : vector<8xf32>
    %133 = vector.multi_reduction <maximumf>, %132, %cst_77 [1] : vector<8x128xf32> to vector<8xf32>
    %134 = vector.shape_cast %133 : vector<8xf32> to vector<8x1xf32>
    %135 = vector.broadcast %134 : vector<8x1xf32> to vector<8x128xf32>
    %136 = arith.subf %132, %135 : vector<8x128xf32>
    %137 = math.exp %136 : vector<8x128xf32>
    %cst_78 = arith.constant dense<0.000000e+00> : vector<8xf32>
    %138 = vector.multi_reduction <add>, %137, %cst_78 [1] : vector<8x128xf32> to vector<8xf32>
    %139 = vector.shape_cast %138 : vector<8xf32> to vector<8x1xf32>
    %140 = math.log %139 : vector<8x1xf32>
    %141 = vector.broadcast %140 : vector<8x1xf32> to vector<8x128xf32>
    %142 = arith.subf %136, %141 : vector<8x128xf32>
    %c0_79 = arith.constant 0 : index
    %c0_80 = arith.constant 0 : index
    %143 = vector.load %arg12[%c0_79, %c0_80] : memref<8x128xf32, #tpu.memory_space<vmem>>, vector<8x128xf32>
    tpu.vector_store %arg12[%c0_79, %c0_80], %142 {strides = array<i32>} : memref<8x128xf32, #tpu.memory_space<vmem>>, vector<8x128xf32>,
    return
  }
  func.func @transform_0(%arg0: i32) -> (i32, i32, i32) {
    %c0_i32 = arith.constant 0 : i32
    %c0_i32_0 = arith.constant 0 : i32
    %c0_i32_1 = arith.constant 0 : i32
    return %c0_i32, %arg0, %c0_i32_0 : i32, i32, i32
  }
  func.func @transform_1(%arg0: i32) -> (i32, i32, i32) {
    %c0_i32 = arith.constant 0 : i32
    %c0_i32_0 = arith.constant 0 : i32
    %c0_i32_1 = arith.constant 0 : i32
    %c0_i32_2 = arith.constant 0 : i32
    return %c0_i32, %c0_i32_0, %c0_i32_1 : i32, i32, i32
  }
  func.func @transform_2(%arg0: i32) -> (i32, i32) {
    %c0_i32 = arith.constant 0 : i32
    %c0_i32_0 = arith.constant 0 : i32
    %c0_i32_1 = arith.constant 0 : i32
    return %c0_i32, %c0_i32_0 : i32, i32
  }
  func.func @transform_3(%arg0: i32) -> (i32, i32, i32) {
    %c0_i32 = arith.constant 0 : i32
    %c0_i32_0 = arith.constant 0 : i32
    %c0_i32_1 = arith.constant 0 : i32
    %c0_i32_2 = arith.constant 0 : i32
    return %c0_i32, %c0_i32_0, %c0_i32_1 : i32, i32, i32
  }
  func.func @transform_4(%arg0: i32) -> (i32, i32) {
    %c0_i32 = arith.constant 0 : i32
    %c0_i32_0 = arith.constant 0 : i32
    %c0_i32_1 = arith.constant 0 : i32
    return %c0_i32, %c0_i32_0 : i32, i32
  }
  func.func @transform_5(%arg0: i32) -> (i32, i32, i32) {
    %c0_i32 = arith.constant 0 : i32
    %c0_i32_0 = arith.constant 0 : i32
    %c0_i32_1 = arith.constant 0 : i32
    %c0_i32_2 = arith.constant 0 : i32
    return %c0_i32, %c0_i32_0, %c0_i32_1 : i32, i32, i32
  }
  func.func @transform_6(%arg0: i32) -> (i32, i32) {
    %c0_i32 = arith.constant 0 : i32
    %c0_i32_0 = arith.constant 0 : i32
    %c0_i32_1 = arith.constant 0 : i32
    return %c0_i32, %c0_i32_0 : i32, i32
  }
  func.func @transform_7(%arg0: i32) -> (i32, i32) {
    %c0_i32 = arith.constant 0 : i32
    %c0_i32_0 = arith.constant 0 : i32
    %c0_i32_1 = arith.constant 0 : i32
    return %c0_i32, %c0_i32_0 : i32, i32
  }
  func.func @transform_8(%arg0: i32) -> (i32, i32) {
    %c0_i32 = arith.constant 0 : i32
    %c0_i32_0 = arith.constant 0 : i32
    %c0_i32_1 = arith.constant 0 : i32
    return %c0_i32, %c0_i32_0 : i32, i32
  }
  func.func @transform_9(%arg0: i32) -> (i32, i32) {
    %c0_i32 = arith.constant 0 : i32
    %c0_i32_0 = arith.constant 0 : i32
    %c0_i32_1 = arith.constant 0 : i32
    return %c0_i32, %c0_i32_0 : i32, i32
  }
  func.func @transform_10(%arg0: i32) -> (i32, i32) {
    %c0_i32 = arith.constant 0 : i32
    %c0_i32_0 = arith.constant 0 : i32
    %c0_i32_1 = arith.constant 0 : i32
    return %c0_i32, %c0_i32_0 : i32, i32
  }
  func.func @transform_11(%arg0: i32) -> (i32, i32) {
    %c0_i32 = arith.constant 0 : i32
    %c0_i32_0 = arith.constant 0 : i32
    return %arg0, %c0_i32 : i32, i32
  }
}

</mosaic_0001>

<bundles_post_ra>
// kernel: cnn_forward.1
= control target key start
LH: loop header
LB: loop body
LE: loop exit
PB: predicated region body
PF: predicated region fallthrough
CT: control target
= control target key end

     0   :  { %vm119_vm0 = vcmask 785408   ;;  %vm2640_vm1 = vcmask 1043456   ;;  %vm2596_vm2 = vcmask 982016   ;;  %vm2636_vm3 = vcmask 687104   ;;  %s6037_s1 = inlined_call_operand.vmem [shape: f32[5,96,256], index: 1, kind: input, shape index: {}]   ;;  %s6038_s0 = inlined_call_operand.vmem [shape: f32[32,8,96], index: 0, kind: input, shape index: {}]   ;;  %s6039_s3 = inlined_call_operand.vmem [shape: f32[5,128,256], index: 3, kind: input, shape index: {}]   ;;  %s6040_s2 = inlined_call_operand.vmem [shape: f32[1,256], index: 2, kind: input, shape index: {}]   ;;  %s6041_s5 = inlined_call_operand.vmem [shape: f32[5,128,120], index: 5, kind: input, shape index: {}]   ;;  %s6042_s4 = inlined_call_operand.vmem [shape: f32[1,256], index: 4, kind: input, shape index: {}]   ;;  %s6043_s6 = inlined_call_operand.vmem [shape: f32[1,120], index: 6, kind: input, shape index: {}]   ;;  %s6044_s8 = inlined_call_operand.vmem [shape: f32[1,84], index: 8, kind: input, shape index: {}]   ;;  %s6045_s7 = inlined_call_operand.vmem [shape: f32[120,84], index: 7, kind: input, shape index: {}]   ;;  %s6046_s9 = inlined_call_operand.vmem [shape: f32[84,128], index: 9, kind: input, shape index: {}]   ;;  %s6047_s10 = inlined_call_operand.vmem [shape: f32[1,128], index: 10, kind: input, shape index: {}]   ;;  %s6048_s11 = inlined_call_operand.vmem [shape: f32[8,128], index: 11, kind: output, shape index: {}]  }
   0x1   :  { %v2701_v0 = vld [vmem:[%s6037_s1 + $0x170] sm:$0xff]  ;;  %v2702_v1 = vld [vmem:[%s6037_s1 + $0x178] sm:$0xff]  ;;  %v2699_v4 = vld [vmem:[%s6037_s1 + $0x160] sm:$0xff] }
   0x2   :  { %v92_v2 = vld [vmem:[%s6037_s1 + $0xb0] sm:$0xff]  ;;  %208 = vmatpush.msra.mxu0 %v2701_v0  ;;  %309 = vmatpush.msra.mxu1 %v2702_v1  ;;  %v93_v3 = vld [vmem:[%s6037_s1 + $0xb8] sm:$0xff]  ;;  %v2700_v5 = vld [vmem:[%s6037_s1 + $0x168] sm:$0xff] }
   0x3   :  { %413 = vmatpush.msra.mxu2 %v92_v2  ;;  %514 = vmatpush.msra.mxu3 %v93_v3  ;;  %v90_v6 = vld [vmem:[%s6037_s1 + $0xa0] sm:$0xff]  ;;  %v91_v7 = vld [vmem:[%s6037_s1 + $0xa8] sm:$0xff]  ;;  %v2697_v8 = vld [vmem:[%s6037_s1 + $0x150] sm:$0xff] }
   0x4   :  { %209 = vmatpush.msra.mxu0 %v2699_v4  ;;  %310 = vmatpush.msra.mxu1 %v2700_v5  ;;  %v2698_v9 = vld [vmem:[%s6037_s1 + $0x158] sm:$0xff]  ;;  %v88_v10 = vld [vmem:[%s6037_s1 + $0x90] sm:$0xff]  ;;  %v2695_v12 = vld [vmem:[%s6037_s1 + $0x140] sm:$0xff] }
   0x5   :  { %v89_v11 = vld [vmem:[%s6037_s1 + $0x98] sm:$0xff]  ;;  %414 = vmatpush.msra.mxu2 %v90_v6  ;;  %515 = vmatpush.msra.mxu3 %v91_v7  ;;  %v2696_v13 = vld [vmem:[%s6037_s1 + $0x148] sm:$0xff]  ;;  %v86_v14 = vld [vmem:[%s6037_s1 + $0x80] sm:$0xff] }
   0x6   :  { %210 = vmatpush.msra.mxu0 %v2697_v8  ;;  %311 = vmatpush.msra.mxu1 %v2698_v9  ;;  %v87_v15 = vld [vmem:[%s6037_s1 + $0x88] sm:$0xff]  ;;  %v2693_v16 = vld [vmem:[%s6037_s1 + $0x130] sm:$0xff]  ;;  %v2694_v17 = vld [vmem:[%s6037_s1 + $0x138] sm:$0xff] }
   0x7   :  { %415 = vmatpush.msra.mxu2 %v88_v10  ;;  %516 = vmatpush.msra.mxu3 %v89_v11  ;;  %v84_v18 = vld [vmem:[%s6037_s1 + $0x70] sm:$0xff]  ;;  %v85_v19 = vld [vmem:[%s6037_s1 + $0x78] sm:$0xff]  ;;  %v2691_v20 = vld [vmem:[%s6037_s1 + $0x120] sm:$0xff] }
   0x8   :  { %211 = vmatpush.msra.mxu0 %v2695_v12  ;;  %312 = vmatpush.msra.mxu1 %v2696_v13  ;;  %v2692_v21 = vld [vmem:[%s6037_s1 + $0x128] sm:$0xff]  ;;  %v82_v22 = vld [vmem:[%s6037_s1 + $0x60] sm:$0xff]  ;;  %v2689_v24 = vld [vmem:[%s6037_s1 + $0x110] sm:$0xff] }
   0x9   :  { %416 = vmatpush.msra.mxu2 %v86_v14  ;;  %517 = vmatpush.msra.mxu3 %v87_v15  ;;  %v83_v23 = vld [vmem:[%s6037_s1 + $0x68] sm:$0xff]  ;;  %v2690_v25 = vld [vmem:[%s6037_s1 + $0x118] sm:$0xff]  ;;  %v80_v26 = vld [vmem:[%s6037_s1 + $0x50] sm:$0xff] }
   0xa   :  { %212 = vmatpush.msra.mxu0 %v2693_v16  ;;  %313 = vmatpush.msra.mxu1 %v2694_v17  ;;  %v81_v27 = vld [vmem:[%s6037_s1 + $0x58] sm:$0xff]  ;;  %v2687_v28 = vld [vmem:[%s6037_s1 + $0x100] sm:$0xff]  ;;  %v2688_v29 = vld [vmem:[%s6037_s1 + $0x108] sm:$0xff] }
   0xb   :  { %417 = vmatpush.msra.mxu2 %v84_v18  ;;  %518 = vmatpush.msra.mxu3 %v85_v19  ;;  %v78_v30 = vld [vmem:[%s6037_s1 + $0x40] sm:$0xff]  ;;  %v79_v31 = vld [vmem:[%s6037_s1 + $0x48] sm:$0xff]  ;;  %v2685_v32 = vld [vmem:[%s6037_s1 + $0xf0] sm:$0xff] }
   0xc   :  { %213 = vmatpush.msra.mxu0 %v2691_v20  ;;  %314 = vmatpush.msra.mxu1 %v2692_v21  ;;  %v2686_v33 = vld [vmem:[%s6037_s1 + $0xf8] sm:$0xff]  ;;  %v76_v34 = vld [vmem:[%s6037_s1 + $0x30] sm:$0xff]  ;;  %v2683_v36 = vld [vmem:[%s6037_s1 + $0xe0] sm:$0xff] }
   0xd   :  { %418 = vmatpush.msra.mxu2 %v82_v22  ;;  %519 = vmatpush.msra.mxu3 %v83_v23  ;;  %v77_v35 = vld [vmem:[%s6037_s1 + $0x38] sm:$0xff]  ;;  %v2684_v37 = vld [vmem:[%s6037_s1 + $0xe8] sm:$0xff]  ;;  %v74_v38 = vld [vmem:[%s6037_s1 + $0x20] sm:$0xff] }
   0xe   :  { %214 = vmatpush.msra.mxu0 %v2689_v24  ;;  %315 = vmatpush.msra.mxu1 %v2690_v25  ;;  %v75_v39 = vld [vmem:[%s6037_s1 + $0x28] sm:$0xff]  ;;  %v2681_v40 = vld [vmem:[%s6037_s1 + $0xd0] sm:$0xff]  ;;  %v2682_v41 = vld [vmem:[%s6037_s1 + $0xd8] sm:$0xff] }
   0xf   :  { %419 = vmatpush.msra.mxu2 %v80_v26  ;;  %520 = vmatpush.msra.mxu3 %v81_v27  ;;  %v72_v42 = vld [vmem:[%s6037_s1 + $0x10] sm:$0xff]  ;;  %v73_v43 = vld [vmem:[%s6037_s1 + $0x18] sm:$0xff]  ;;  %v2679_v44 = vld [vmem:[%s6037_s1 + $0xc0] sm:$0xff] }
  0x10   :  { %215 = vmatpush.msra.mxu0 %v2687_v28  ;;  %316 = vmatpush.msra.mxu1 %v2688_v29  ;;  %v2680_v45 = vld [vmem:[%s6037_s1 + $0xc8] sm:$0xff]  ;;  %v70_v46 = vld [vmem:[%s6037_s1] sm:$0xff]  ;;  %v2837_v50 = vld [vmem:[%s6037_s1 + $0x230] sm:$0xff] }
  0x11   :  { %420 = vmatpush.msra.mxu2 %v78_v30  ;;  %521 = vmatpush.msra.mxu3 %v79_v31  ;;  %v71_v47 = vld [vmem:[%s6037_s1 + $0x8] sm:$0xff]  ;;  %v38_v49 = vld [vmem:[%s6038_s0] sm:$0xff]  ;;  %v2838_v51 = vld [vmem:[%s6037_s1 + $0x238] sm:$0xff] }
  0x12   :  { %216 = vmatpush.msra.mxu0 %v2685_v32  ;;  %317 = vmatpush.msra.mxu1 %v2686_v33  ;;  %v39_v48 = vld [vmem:[%s6038_s0 + $0x8] sm:$0xff]  ;;  %v2835_v52 = vld [vmem:[%s6037_s1 + $0x220] sm:$0xff]  ;;  %v2833_v54 = vld [vmem:[%s6037_s1 + $0x210] sm:$0xff] }
  0x13   :  { %421 = vmatpush.msra.mxu2 %v76_v34  ;;  %522 = vmatpush.msra.mxu3 %v77_v35  ;;  %v2836_v53 = vld [vmem:[%s6037_s1 + $0x228] sm:$0xff]  ;;  %v2834_v55 = vld [vmem:[%s6037_s1 + $0x218] sm:$0xff]  ;;  %v3517_v56 = vld [vmem:[%s6038_s0 + $0x10] sm:$0xff] }
  0x14   :  { %217 = vmatpush.msra.mxu0 %v2683_v36  ;;  %318 = vmatpush.msra.mxu1 %v2684_v37  ;;  %v3528_v57 = vld [vmem:[%s6038_s0 + $0x18] sm:$0xff]  ;;  %v3541_v58 = vld [vmem:[%s6038_s0 + $0x20] sm:$0xff]  ;;  %v2832_v60 = vld [vmem:[%s6037_s1 + $0x208] sm:$0xff] }
  0x15   :  { %422 = vmatpush.msra.mxu2 %v74_v38  ;;  %523 = vmatpush.msra.mxu3 %v75_v39  ;;  %v2831_v59 = vld [vmem:[%s6037_s1 + $0x200] sm:$0xff]  ;;  %v3560_v61 = vld [vmem:[%s6038_s0 + $0x28] sm:$0xff]  ;;  %v3573_v62 = vld [vmem:[%s6038_s0 + $0x30] sm:$0xff] }
  0x16   :  { %218 = vmatpush.msra.mxu0 %v2681_v40  ;;  %319 = vmatpush.msra.mxu1 %v2682_v41  ;;  %v2829_v63 = vld [vmem:[%s6037_s1 + $0x1f0] sm:$0xff]  ;;  %v2830_v0 = vld [vmem:[%s6037_s1 + $0x1f8] sm:$0xff]  ;;  %v3605_v2 = vld [vmem:[%s6038_s0 + $0x40] sm:$0xff] }
  0x17   :  { %423 = vmatpush.msra.mxu2 %v72_v42  ;;  %524 = vmatpush.msra.mxu3 %v73_v43  ;;  %v3592_v1 = vld [vmem:[%s6038_s0 + $0x38] sm:$0xff]  ;;  %v2827_v3 = vld [vmem:[%s6037_s1 + $0x1e0] sm:$0xff]  ;;  %v2828_v4 = vld [vmem:[%s6037_s1 + $0x1e8] sm:$0xff] }
  0x18   :  { %219 = vmatpush.msra.mxu0 %v2679_v44  ;;  %320 = vmatpush.msra.mxu1 %v2680_v45  ;;  %v3624_v5 = vld [vmem:[%s6038_s0 + $0x48] sm:$0xff]  ;;  %v3637_v6 = vld [vmem:[%s6038_s0 + $0x50] sm:$0xff]  ;;  %v3650_v7 = vld [vmem:[%s6038_s0 + $0x58] sm:$0xff] }
  0x19   :  { %424 = vmatpush.msra.mxu2 %v70_v46  ;;  %525 = vmatpush.msra.mxu3 %v71_v47  ;;  %v2825_v8 = vld [vmem:[%s6037_s1 + $0x1d0] sm:$0xff]  ;;  %v2826_v9 = vld [vmem:[%s6037_s1 + $0x1d8] sm:$0xff]  ;;  %v3669_v10 = vld [vmem:[%s6038_s0 + $0x60] sm:$0xff] }
  0x1a   :  { %2703 = vmatmul.msk.f32.vlgmr.msra.gmra.mxu0 %vm119_vm0, %v39_v48  ;;  %2731 = vmatmul.msk.f32.vlgmr.msra.gmra.mxu1 %vm119_vm0, %v39_v48  ;;  %v3682_v11 = vld [vmem:[%s6038_s0 + $0x68] sm:$0xff]  ;;  %v3695_v12 = vld [vmem:[%s6038_s0 + $0x70] sm:$0xff]  ;;  %v2823_v13 = vld [vmem:[%s6037_s1 + $0x1c0] sm:$0xff] }
  0x1b   :  { %2759 = vmatmul.msk.f32.vlgmr.msra.gmra.mxu2 %vm119_vm0, %v38_v49  ;;  %2787 = vmatmul.msk.f32.vlgmr.msra.gmra.mxu3 %vm119_vm0, %v38_v49  ;;  %v2824_v14 = vld [vmem:[%s6037_s1 + $0x1c8] sm:$0xff]  ;;  %v3714_v15 = vld [vmem:[%s6038_s0 + $0x78] sm:$0xff]  ;;  %v3727_v16 = vld [vmem:[%s6038_s0 + $0x80] sm:$0xff] }
  0x1c   :  { %643 = vmatpush.msrb.mxu0 %v2837_v50  ;;  %744 = vmatpush.msrb.mxu1 %v2838_v51  ;;  %v2821_v17 = vld [vmem:[%s6037_s1 + $0x1b0] sm:$0xff]  ;;  %v2822_v18 = vld [vmem:[%s6037_s1 + $0x1b8] sm:$0xff]  ;;  %v3746_v21 = vld [vmem:[%s6038_s0 + $0x88] sm:$0xff] }
  0x1d   :  { %v3763_v28 = vld [vmem:[%s6038_s0 + $0x90] sm:$0xff]  ;;  %v2819_v29 = vld [vmem:[%s6037_s1 + $0x1a0] sm:$0xff]  ;;  %v2820_v30 = vld [vmem:[%s6037_s1 + $0x1a8] sm:$0xff] }
  0x1e   :  { %644 = vmatpush.msrb.mxu0 %v2835_v52  ;;  %745 = vmatpush.msrb.mxu1 %v2836_v53  ;;  %v3786_v37 = vld [vmem:[%s6038_s0 + $0x98] sm:$0xff]  ;;  %v3803_v44 = vld [vmem:[%s6038_s0 + $0xa0] sm:$0xff]  ;;  %v3820_v51 = vld [vmem:[%s6038_s0 + $0xa8] sm:$0xff] }
  0x1f   :  { %v2817_v52 = vld [vmem:[%s6037_s1 + $0x190] sm:$0xff]  ;;  %v2818_v53 = vld [vmem:[%s6037_s1 + $0x198] sm:$0xff] }
  0x20   :  { %645 = vmatpush.msrb.mxu0 %v2833_v54  ;;  %746 = vmatpush.msrb.mxu1 %v2834_v55 }
  0x22   :  { %2704 = vmatmul.msk.f32.gmra.mxu0 %vm119_vm0, %v3517_v56  ;;  %2732 = vmatmul.msk.f32.gmra.mxu1 %vm119_vm0, %v3517_v56 }
  0x23   :  { %2760 = vmatmul.msk.f32.gmra.mxu2 %vm119_vm0, %v39_v48  ;;  %2788 = vmatmul.msk.f32.gmra.mxu3 %vm119_vm0, %v39_v48 }
  0x24   :  { %646 = vmatpush.msrb.mxu0 %v2831_v59  ;;  %747 = vmatpush.msrb.mxu1 %v2832_v60 }
  0x26   :  { %647 = vmatpush.msrb.mxu0 %v2829_v63  ;;  %748 = vmatpush.msrb.mxu1 %v2830_v0 }
  0x28   :  { %648 = vmatpush.msrb.mxu0 %v2827_v3  ;;  %749 = vmatpush.msrb.mxu1 %v2828_v4  ;;  %v3843_v3 = vld [vmem:[%s6038_s0 + $0xb0] sm:$0xff] }
  0x29   :  { %v2917_v4 = vld [vmem:[%s6037_s1 + $0x2f0] sm:$0xff] }
  0x2a   :  { %2705 = vmatmul.msk.f32.gmra.mxu0 %vm119_vm0, %v3528_v57  ;;  %2733 = vmatmul.msk.f32.gmra.mxu1 %vm119_vm0, %v3528_v57 }
  0x2b   :  { %2761 = vmatmul.msk.f32.gmra.mxu2 %vm119_vm0, %v3517_v56  ;;  %2789 = vmatmul.msk.f32.gmra.mxu3 %vm119_vm0, %v3517_v56 }
  0x2c   :  { %649 = vmatpush.msrb.mxu0 %v2825_v8  ;;  %750 = vmatpush.msrb.mxu1 %v2826_v9  ;;  %v2918_v8 = vld [vmem:[%s6037_s1 + $0x2f8] sm:$0xff]  ;;  %v2915_v9 = vld [vmem:[%s6037_s1 + $0x2e0] sm:$0xff] }
  0x2d   :  { %929 = vmatpush.msrb.mxu2 %v2917_v4  ;;  %1030 = vmatpush.msrb.mxu3 %v2918_v8  ;;  %v2902_v4 = vld [vmem:[%s6037_s1 + $0x278] sm:$0xff] }
  0x2e   :  { %650 = vmatpush.msrb.mxu0 %v2823_v13  ;;  %751 = vmatpush.msrb.mxu1 %v2824_v14  ;;  %v2916_v13 = vld [vmem:[%s6037_s1 + $0x2e8] sm:$0xff] }
  0x2f   :  { %930 = vmatpush.msrb.mxu2 %v2915_v9  ;;  %1031 = vmatpush.msrb.mxu3 %v2916_v13 }
  0x30   :  { %651 = vmatpush.msrb.mxu0 %v2821_v17  ;;  %752 = vmatpush.msrb.mxu1 %v2822_v18  ;;  %v3868_v18 = vld [vmem:[%s6038_s0 + $0xb8] sm:$0xff] }
  0x32   :  { %2706 = vmatmul.msk.f32.gmra.mxu0 %vm119_vm0, %v3541_v58  ;;  %2734 = vmatmul.msk.f32.gmra.mxu1 %vm119_vm0, %v3541_v58 }
  0x33   :  { %2762 = vmatmul.msk.f32.gmra.mxu2 %vm119_vm0, %v3528_v57  ;;  %2790 = vmatmul.msk.f32.gmra.mxu3 %vm119_vm0, %v3528_v57 }
  0x34   :  { %652 = vmatpush.msrb.mxu0 %v2819_v29  ;;  %753 = vmatpush.msrb.mxu1 %v2820_v30  ;;  %v2815_v29 = vld [vmem:[%s6037_s1 + $0x180] sm:$0xff]  ;;  %v2816_v30 = vld [vmem:[%s6037_s1 + $0x188] sm:$0xff] }
  0x36   :  { %653 = vmatpush.msrb.mxu0 %v2817_v52  ;;  %754 = vmatpush.msrb.mxu1 %v2818_v53  ;;  %v3919_v52 = vld [vmem:[%s6038_s0 + $0xc0] sm:$0xff]  ;;  %v2905_v53 = vld [vmem:[%s6037_s1 + $0x290] sm:$0xff] }
  0x38   :  { %654 = vmatpush.msrb.mxu0 %v2815_v29  ;;  %755 = vmatpush.msrb.mxu1 %v2816_v30  ;;  %v2897_v29 = vld [vmem:[%s6037_s1 + $0x250] sm:$0xff]  ;;  %v2898_v30 = vld [vmem:[%s6037_s1 + $0x258] sm:$0xff] }
  0x3a   :  { %2707 = vmatmul.msk.f32.gmra.mxu0 %vm119_vm0, %v3560_v61  ;;  %2735 = vmatmul.msk.f32.gmra.mxu1 %vm119_vm0, %v3560_v61 }
  0x3b   :  { %2763 = vmatmul.msk.f32.gmra.mxu2 %vm119_vm0, %v3541_v58  ;;  %2791 = vmatmul.msk.f32.gmra.mxu3 %vm119_vm0, %v3541_v58 }
  0x42   :  { %2708 = vmatmul.msk.f32.gmra.mxu0 %vm119_vm0, %v3573_v62  ;;  %2736 = vmatmul.msk.f32.gmra.mxu1 %vm119_vm0, %v3573_v62 }
  0x43   :  { %2764 = vmatmul.msk.f32.gmra.mxu2 %vm119_vm0, %v3560_v61  ;;  %2792 = vmatmul.msk.f32.gmra.mxu3 %vm119_vm0, %v3560_v61 }
  0x4a   :  { %2709 = vmatmul.msk.f32.gmra.mxu0 %vm119_vm0, %v3592_v1  ;;  %2737 = vmatmul.msk.f32.gmra.mxu1 %vm119_vm0, %v3592_v1 }
  0x4b   :  { %2765 = vmatmul.msk.f32.gmra.mxu2 %vm119_vm0, %v3573_v62  ;;  %2793 = vmatmul.msk.f32.gmra.mxu3 %vm119_vm0, %v3573_v62 }
  0x52   :  { %2710 = vmatmul.msk.f32.gmra.mxu0 %vm119_vm0, %v3605_v2  ;;  %2738 = vmatmul.msk.f32.gmra.mxu1 %vm119_vm0, %v3605_v2 }
  0x53   :  { %2766 = vmatmul.msk.f32.gmra.mxu2 %vm119_vm0, %v3592_v1  ;;  %2794 = vmatmul.msk.f32.gmra.mxu3 %vm119_vm0, %v3592_v1 }
  0x5a   :  { %2711 = vmatmul.msk.f32.gmra.mxu0 %vm119_vm0, %v3624_v5  ;;  %2739 = vmatmul.msk.f32.gmra.mxu1 %vm119_vm0, %v3624_v5 }
  0x5b   :  { %2767 = vmatmul.msk.f32.gmra.mxu2 %vm119_vm0, %v3605_v2  ;;  %2795 = vmatmul.msk.f32.gmra.mxu3 %vm119_vm0, %v3605_v2 }
  0x62   :  { %2712 = vmatmul.msk.f32.gmra.mxu0 %vm119_vm0, %v3637_v6  ;;  %2740 = vmatmul.msk.f32.gmra.mxu1 %vm119_vm0, %v3637_v6 }
  0x63   :  { %2768 = vmatmul.msk.f32.gmra.mxu2 %vm119_vm0, %v3624_v5  ;;  %2796 = vmatmul.msk.f32.gmra.mxu3 %vm119_vm0, %v3624_v5 }
  0x6a   :  { %2713 = vmatmul.msk.f32.gmra.mxu0 %vm119_vm0, %v3650_v7  ;;  %2741 = vmatmul.msk.f32.gmra.mxu1 %vm119_vm0, %v3650_v7 }
  0x6b   :  { %2769 = vmatmul.msk.f32.gmra.mxu2 %vm119_vm0, %v3637_v6  ;;  %2797 = vmatmul.msk.f32.gmra.mxu3 %vm119_vm0, %v3637_v6 }
  0x72   :  { %2714 = vmatmul.msk.f32.gmra.mxu0 %vm119_vm0, %v3669_v10  ;;  %2742 = vmatmul.msk.f32.gmra.mxu1 %vm119_vm0, %v3669_v10 }
  0x73   :  { %2770 = vmatmul.msk.f32.gmra.mxu2 %vm119_vm0, %v3650_v7  ;;  %2798 = vmatmul.msk.f32.gmra.mxu3 %vm119_vm0, %v3650_v7 }
  0x7a   :  { %2715 = vmatmul.msk.f32.gmra.mxu0 %vm119_vm0, %v3682_v11  ;;  %2743 = vmatmul.msk.f32.gmra.mxu1 %vm119_vm0, %v3682_v11 }
  0x7b   :  { %2771 = vmatmul.msk.f32.gmra.mxu2 %vm119_vm0, %v3669_v10  ;;  %2799 = vmatmul.msk.f32.gmra.mxu3 %vm119_vm0, %v3669_v10 }
  0x82   :  { %2716 = vmatmul.msk.f32.gmra.mxu0 %vm119_vm0, %v3695_v12  ;;  %2744 = vmatmul.msk.f32.gmra.mxu1 %vm119_vm0, %v3695_v12 }
  0x83   :  { %2772 = vmatmul.msk.f32.gmra.mxu2 %vm119_vm0, %v3682_v11  ;;  %2800 = vmatmul.msk.f32.gmra.mxu3 %vm119_vm0, %v3682_v11 }
  0x8a   :  { %2717 = vmatmul.msk.f32.gmra.mxu0 %vm119_vm0, %v3714_v15  ;;  %2745 = vmatmul.msk.f32.gmra.mxu1 %vm119_vm0, %v3714_v15 }
  0x8b   :  { %2773 = vmatmul.msk.f32.gmra.mxu2 %vm119_vm0, %v3695_v12  ;;  %2801 = vmatmul.msk.f32.gmra.mxu3 %vm119_vm0, %v3695_v12 }
  0x92   :  { %2718 = vmatmul.msk.f32.gmra.mxu0 %vm119_vm0, %v3727_v16  ;;  %2746 = vmatmul.msk.f32.gmra.mxu1 %vm119_vm0, %v3727_v16 }
  0x93   :  { %2774 = vmatmul.msk.f32.gmra.mxu2 %vm119_vm0, %v3714_v15  ;;  %2802 = vmatmul.msk.f32.gmra.mxu3 %vm119_vm0, %v3714_v15 }
  0x97   :  { %v221_v19 = vpop.f32.mrf.mxu0  ;;  %v322_v20 = vpop.f32.mrf.mxu1 }
  0x9a   :  { %2719 = vmatmul.msk.f32.gmra.mxu0 %vm119_vm0, %v3746_v21  ;;  %2747 = vmatmul.msk.f32.gmra.mxu1 %vm119_vm0, %v3746_v21 }
  0x9b   :  { %2775 = vmatmul.msk.f32.gmra.mxu2 %vm119_vm0, %v3727_v16  ;;  %2803 = vmatmul.msk.f32.gmra.mxu3 %vm119_vm0, %v3727_v16 }
  0x9e   :  { %v426_v22 = vpop.f32.mrf.mxu2  ;;  %v527_v23 = vpop.f32.mrf.mxu3 }
  0x9f   :  { %v3756_v24 = vadd.f32 %v426_v22, %v221_v19  ;;  %v3758_v25 = vadd.f32 %v527_v23, %v322_v20  ;;  %v224_v26 = vpop.f32.mrf.mxu0  ;;  %v325_v27 = vpop.f32.mrf.mxu1 }
  0xa2   :  { %2720 = vmatmul.msk.f32.gmra.mxu0 %vm119_vm0, %v3763_v28  ;;  %2748 = vmatmul.msk.f32.gmra.mxu1 %vm119_vm0, %v3763_v28 }
  0xa3   :  { %2776 = vmatmul.msk.f32.gmra.mxu2 %vm119_vm0, %v3746_v21  ;;  %2804 = vmatmul.msk.f32.gmra.mxu3 %vm119_vm0, %v3746_v21 }
  0xa6   :  { %v429_v31 = vpop.f32.mrf.mxu2  ;;  %v530_v32 = vpop.f32.mrf.mxu3 }
  0xa7   :  { %v3779_v33 = vadd.f32 %v429_v31, %v224_v26  ;;  %v3781_v34 = vadd.f32 %v530_v32, %v325_v27  ;;  %v227_v35 = vpop.f32.mrf.mxu0  ;;  %v328_v36 = vpop.f32.mrf.mxu1  ;;  %v2913_v26 = vld [vmem:[%s6037_s1 + $0x2d0] sm:$0xff]  ;;  %v2914_v27 = vld [vmem:[%s6037_s1 + $0x2d8] sm:$0xff]  ;;  %v2911_v31 = vld [vmem:[%s6037_s1 + $0x2c0] sm:$0xff] }
  0xa8   :  { %931 = vmatpush.msrb.mxu2 %v2913_v26  ;;  %1032 = vmatpush.msrb.mxu3 %v2914_v27  ;;  %v2912_v32 = vld [vmem:[%s6037_s1 + $0x2c8] sm:$0xff]  ;;  %v2899_v26 = vld [vmem:[%s6037_s1 + $0x260] sm:$0xff] }
  0xa9   :  { %v2900_v27 = vld [vmem:[%s6037_s1 + $0x268] sm:$0xff] }
  0xaa   :  { %2721 = vmatmul.msk.f32.gmra.mxu0 %vm119_vm0, %v3786_v37  ;;  %2749 = vmatmul.msk.f32.gmra.mxu1 %vm119_vm0, %v3786_v37 }
  0xab   :  { %2777 = vmatmul.msk.f32.gmra.mxu2 %vm119_vm0, %v3763_v28  ;;  %2805 = vmatmul.msk.f32.gmra.mxu3 %vm119_vm0, %v3763_v28 }
  0xac   :  { %932 = vmatpush.msrb.mxu2 %v2911_v31  ;;  %1033 = vmatpush.msrb.mxu3 %v2912_v32  ;;  %v2997_v31 = vld [vmem:[%s6037_s1 + $0x3b0] sm:$0xff]  ;;  %v2998_v32 = vld [vmem:[%s6037_s1 + $0x3b8] sm:$0xff] }
  0xad   :  { %1215 = vmatpush.msra.mxu0 %v2997_v31  ;;  %1316 = vmatpush.msra.mxu1 %v2998_v32  ;;  %v4029_v31 = vld [vmem:[%s6038_s0 + $0xe0] sm:$0xff] }
  0xae   :  { %v432_v38 = vpop.f32.mrf.mxu2  ;;  %v533_v39 = vpop.f32.mrf.mxu3  ;;  %v2995_v32 = vld [vmem:[%s6037_s1 + $0x3a0] sm:$0xff] }
  0xaf   :  { %v3796_v40 = vadd.f32 %v432_v38, %v227_v35  ;;  %v3798_v41 = vadd.f32 %v533_v39, %v328_v36  ;;  %v230_v42 = vpop.f32.mrf.mxu0  ;;  %v331_v43 = vpop.f32.mrf.mxu1  ;;  %v2909_v35 = vld [vmem:[%s6037_s1 + $0x2b0] sm:$0xff]  ;;  %v2910_v36 = vld [vmem:[%s6037_s1 + $0x2b8] sm:$0xff]  ;;  %v2907_v38 = vld [vmem:[%s6037_s1 + $0x2a0] sm:$0xff]  ;;  %1216 = vmatpush.msra.mxu0 %v2995_v32 }
  0xb0   :  { %v2908_v39 = vld [vmem:[%s6037_s1 + $0x2a8] sm:$0xff]  ;;  %933 = vmatpush.msrb.mxu2 %v2909_v35  ;;  %1034 = vmatpush.msrb.mxu3 %v2910_v36  ;;  %v2895_v35 = vld [vmem:[%s6037_s1 + $0x240] sm:$0xff] }
  0xb1   :  { %v2896_v36 = vld [vmem:[%s6037_s1 + $0x248] sm:$0xff] }
  0xb2   :  { %2722 = vmatmul.msk.f32.gmra.mxu0 %vm119_vm0, %v3803_v44  ;;  %2750 = vmatmul.msk.f32.gmra.mxu1 %vm119_vm0, %v3803_v44 }
  0xb3   :  { %2778 = vmatmul.msk.f32.gmra.mxu2 %vm119_vm0, %v3786_v37  ;;  %2806 = vmatmul.msk.f32.gmra.mxu3 %vm119_vm0, %v3786_v37 }
  0xb4   :  { %934 = vmatpush.msrb.mxu2 %v2907_v38  ;;  %1035 = vmatpush.msrb.mxu3 %v2908_v39 }
  0xb6   :  { %v435_v45 = vpop.f32.mrf.mxu2  ;;  %v536_v46 = vpop.f32.mrf.mxu3  ;;  %935 = vmatpush.msrb.mxu2 %v2905_v53  ;;  %v3995_v53 = vld [vmem:[%s6038_s0 + $0xd0] sm:$0xff] }
  0xb7   :  { %v3813_v47 = vadd.f32 %v435_v45, %v230_v42  ;;  %v3815_v48 = vadd.f32 %v536_v46, %v331_v43  ;;  %v233_v49 = vpop.f32.mrf.mxu0  ;;  %v334_v50 = vpop.f32.mrf.mxu1 }
  0xba   :  { %2723 = vmatmul.msk.f32.gmra.mxu0 %vm119_vm0, %v3820_v51  ;;  %2751 = vmatmul.msk.f32.gmra.mxu1 %vm119_vm0, %v3820_v51 }
  0xbb   :  { %2779 = vmatmul.msk.f32.gmra.mxu2 %vm119_vm0, %v3803_v44  ;;  %2807 = vmatmul.msk.f32.gmra.mxu3 %vm119_vm0, %v3803_v44 }
  0xbe   :  { %v438_v54 = vpop.f32.mrf.mxu2  ;;  %v539_v55 = vpop.f32.mrf.mxu3 }
  0xbf   :  { %v3836_v59 = vadd.f32 %v438_v54, %v233_v49  ;;  %v3838_v60 = vadd.f32 %v539_v55, %v334_v50  ;;  %v236_v63 = vpop.f32.mrf.mxu0  ;;  %v337_v0 = vpop.f32.mrf.mxu1  ;;  %v2906_v54 = vld [vmem:[%s6037_s1 + $0x298] sm:$0xff]  ;;  %v2903_v55 = vld [vmem:[%s6037_s1 + $0x280] sm:$0xff] }
  0xc0   :  { %1036 = vmatpush.msrb.mxu3 %v2906_v54  ;;  %936 = vmatpush.msrb.mxu2 %v2903_v55 }
  0xc2   :  { %2724 = vmatmul.msk.f32.gmra.mxu0 %vm119_vm0, %v3843_v3  ;;  %2752 = vmatmul.msk.f32.gmra.mxu1 %vm119_vm0, %v3843_v3 }
  0xc3   :  { %2780 = vmatmul.msk.f32.gmra.mxu2 %vm119_vm0, %v3820_v51  ;;  %2808 = vmatmul.msk.f32.gmra.mxu3 %vm119_vm0, %v3820_v51 }
  0xc6   :  { %v441_v14 = vpop.f32.mrf.mxu2  ;;  %v542_v17 = vpop.f32.mrf.mxu3 }
  0xc7   :  { %v3870_v19 = vadd.f32 %v441_v14, %v236_v63  ;;  %v3872_v20 = vadd.f32 %v542_v17, %v337_v0  ;;  %v239_v22 = vpop.f32.mrf.mxu0  ;;  %v340_v23 = vpop.f32.mrf.mxu1  ;;  %v2904_v63 = vld [vmem:[%s6037_s1 + $0x288] sm:$0xff]  ;;  %v2901_v0 = vld [vmem:[%s6037_s1 + $0x270] sm:$0xff] }
  0xc8   :  { %1037 = vmatpush.msrb.mxu3 %v2904_v63  ;;  %937 = vmatpush.msrb.mxu2 %v2901_v0 }
  0xca   :  { %2725 = vmatmul.msk.f32.gmra.mxu0 %vm119_vm0, %v3868_v18  ;;  %2753 = vmatmul.msk.f32.gmra.mxu1 %vm119_vm0, %v3868_v18 }
  0xcb   :  { %2781 = vmatmul.msk.f32.gmra.mxu2 %vm119_vm0, %v3843_v3  ;;  %2809 = vmatmul.msk.f32.gmra.mxu3 %vm119_vm0, %v3843_v3 }
  0xcc   :  { %1038 = vmatpush.msrb.mxu3 %v2902_v4  ;;  %938 = vmatpush.msrb.mxu2 %v2899_v26 }
  0xce   :  { %v444_v42 = vpop.f32.mrf.mxu2  ;;  %v545_v43 = vpop.f32.mrf.mxu3  ;;  %1039 = vmatpush.msrb.mxu3 %v2900_v27  ;;  %939 = vmatpush.msrb.mxu2 %v2897_v29 }
  0xcf   :  { %v3912_v45 = vadd.f32 %v444_v42, %v239_v22  ;;  %v3914_v46 = vadd.f32 %v545_v43, %v340_v23  ;;  %v242_v49 = vpop.f32.mrf.mxu0  ;;  %v343_v50 = vpop.f32.mrf.mxu1  ;;  %v3954_v23 = vld [vmem:[%s6038_s0 + $0xc8] sm:$0xff] }
  0xd0   :  { %1040 = vmatpush.msrb.mxu3 %v2898_v30  ;;  %940 = vmatpush.msrb.mxu2 %v2895_v35  ;;  %v2996_v35 = vld [vmem:[%s6037_s1 + $0x3a8] sm:$0xff] }
  0xd1   :  { %1317 = vmatpush.msra.mxu1 %v2996_v35 }
  0xd2   :  { %2726 = vmatmul.msk.f32.gmra.mxu0 %vm119_vm0, %v3919_v52  ;;  %2754 = vmatmul.msk.f32.gmra.mxu1 %vm119_vm0, %v3919_v52 }
  0xd3   :  { %2782 = vmatmul.msk.f32.gmra.mxu2 %vm119_vm0, %v3868_v18  ;;  %2810 = vmatmul.msk.f32.gmra.mxu3 %vm119_vm0, %v3868_v18 }
  0xd4   :  { %1041 = vmatpush.msrb.mxu3 %v2896_v36 }
  0xd6   :  { %v447_v8 = vpop.f32.mrf.mxu2  ;;  %v548_v9 = vpop.f32.mrf.mxu3 }
  0xd7   :  { %v3947_v13 = vadd.f32 %v447_v8, %v242_v49  ;;  %v3949_v14 = vadd.f32 %v548_v9, %v343_v50  ;;  %v245_v17 = vpop.f32.mrf.mxu0  ;;  %v346_v22 = vpop.f32.mrf.mxu1  ;;  %v4012_v9 = vld [vmem:[%s6038_s0 + $0xd8] sm:$0xff] }
  0xda   :  { %2727 = vmatmul.msk.f32.gmra.mxu0 %vm119_vm0, %v3954_v23  ;;  %2755 = vmatmul.msk.f32.gmra.mxu1 %vm119_vm0, %v3954_v23 }
  0xdb   :  { %2783 = vmatmul.msk.f32.gmra.mxu2 %vm119_vm0, %v3919_v52  ;;  %2811 = vmatmul.msk.f32.gmra.mxu3 %vm119_vm0, %v3919_v52 }
  0xde   :  { %v450_v38 = vpop.f32.mrf.mxu2  ;;  %v551_v39 = vpop.f32.mrf.mxu3 }
  0xdf   :  { %v3988_v42 = vadd.f32 %v450_v38, %v245_v17  ;;  %v3990_v43 = vadd.f32 %v551_v39, %v346_v22  ;;  %v248_v49 = vpop.f32.mrf.mxu0  ;;  %v349_v50 = vpop.f32.mrf.mxu1 }
  0xe2   :  { %2728 = vmatmul.msk.f32.gmra.mxu0 %vm119_vm0, %v3995_v53  ;;  %2756 = vmatmul.msk.f32.gmra.mxu1 %vm119_vm0, %v3995_v53 }
  0xe3   :  { %2784 = vmatmul.msk.f32.gmra.mxu2 %vm119_vm0, %v3954_v23  ;;  %2812 = vmatmul.msk.f32.gmra.mxu3 %vm119_vm0, %v3954_v23 }
  0xe6   :  { %v453_v54 = vpop.f32.mrf.mxu2  ;;  %v554_v55 = vpop.f32.mrf.mxu3 }
  0xe7   :  { %v4005_v63 = vadd.f32 %v453_v54, %v248_v49  ;;  %v4007_v0 = vadd.f32 %v554_v55, %v349_v50  ;;  %v251_v4 = vpop.f32.mrf.mxu0  ;;  %v352_v8 = vpop.f32.mrf.mxu1 }
  0xea   :  { %2729 = vmatmul.msk.f32.gmra.mxu0 %vm119_vm0, %v4012_v9  ;;  %2757 = vmatmul.msk.f32.gmra.mxu1 %vm119_vm0, %v4012_v9 }
  0xeb   :  { %2785 = vmatmul.msk.f32.gmra.mxu2 %vm119_vm0, %v3995_v53  ;;  %2813 = vmatmul.msk.f32.gmra.mxu3 %vm119_vm0, %v3995_v53 }
  0xee   :  { %v456_v17 = vpop.f32.mrf.mxu2  ;;  %v557_v22 = vpop.f32.mrf.mxu3 }
  0xef   :  { %v4022_v26 = vadd.f32 %v456_v17, %v251_v4  ;;  %v4024_v27 = vadd.f32 %v557_v22, %v352_v8  ;;  %v254_v29 = vpop.f32.mrf.mxu0  ;;  %v355_v30 = vpop.f32.mrf.mxu1 }
  0xf2   :  { %2730 = vmatmul.msk.f32.gmra.mxu0 %vm119_vm0, %v4029_v31  ;;  %2758 = vmatmul.msk.f32.gmra.mxu1 %vm119_vm0, %v4029_v31 }
  0xf3   :  { %2786 = vmatmul.msk.f32.gmra.mxu2 %vm119_vm0, %v4012_v9  ;;  %2814 = vmatmul.msk.f32.gmra.mxu3 %vm119_vm0, %v4012_v9 }
  0xf6   :  { %v459_v36 = vpop.f32.mrf.mxu2  ;;  %v560_v38 = vpop.f32.mrf.mxu3 }
  0xf7   :  { %v4045_v39 = vadd.f32 %v459_v36, %v254_v29  ;;  %v4047_v49 = vadd.f32 %v560_v38, %v355_v30  ;;  %v257_v50 = vpop.f32.mrf.mxu0  ;;  %v358_v54 = vpop.f32.mrf.mxu1  ;;  %v2993_v30 = vld [vmem:[%s6037_s1 + $0x390] sm:$0xff] }
  0xf8   :  { %1217 = vmatpush.msra.mxu0 %v2993_v30 }
  0xfa   :  { %2839 = vmatmul.msk.f32.vlgmr.msrb.gmra.mxu0 %vm119_vm0, %v3517_v56  ;;  %2867 = vmatmul.msk.f32.vlgmr.msrb.gmra.mxu1 %vm119_vm0, %v3517_v56  ;;  %v2994_v56 = vld [vmem:[%s6037_s1 + $0x398] sm:$0xff] }
  0xfb   :  { %2919 = vmatmul.msk.f32.vlgmr.msrb.gmra.mxu2 %vm119_vm0, %v3528_v57  ;;  %2947 = vmatmul.msk.f32.vlgmr.msrb.gmra.mxu3 %vm119_vm0, %v3528_v57 }
  0xfc   :  { %1318 = vmatpush.msra.mxu1 %v2994_v56  ;;  %v2992_v56 = vld [vmem:[%s6037_s1 + $0x388] sm:$0xff] }
  0xfe   :  { %v462_v55 = vpop.f32.mrf.mxu2  ;;  %v563_v4 = vpop.f32.mrf.mxu3  ;;  %1319 = vmatpush.msra.mxu1 %v2992_v56 }
  0xff   :  { %v4057_v8 = vadd.f32 %v462_v55, %v257_v50  ;;  %v4059_v17 = vadd.f32 %v563_v4, %v358_v54  ;;  %v260_v22 = vpop.f32.mrf.mxu0  ;;  %v361_v29 = vpop.f32.mrf.mxu1 }
 0x101   :  { %6050 = vst [vmem:[#allocation2_spill] sm:$0xff] %v4057_v8 }
 0x102   :  { %6051 = vst [vmem:[#allocation3_spill] sm:$0xff] %v4059_v17  ;;  %2840 = vmatmul.msk.f32.gmra.mxu0 %vm119_vm0, %v3528_v57  ;;  %2868 = vmatmul.msk.f32.gmra.mxu1 %vm119_vm0, %v3528_v57 }
 0x103   :  { %2920 = vmatmul.msk.f32.gmra.mxu2 %vm119_vm0, %v3541_v58  ;;  %2948 = vmatmul.msk.f32.gmra.mxu3 %vm119_vm0, %v3541_v58 }
 0x106   :  { %v465_v32 = vpop.f32.mrf.mxu2  ;;  %v566_v35 = vpop.f32.mrf.mxu3 }
 0x107   :  { %v4075_v36 = vadd.f32 %v465_v32, %v260_v22  ;;  %v4077_v38 = vadd.f32 %v566_v35, %v361_v29  ;;  %v263_v50 = vpop.f32.mrf.mxu0  ;;  %v364_v54 = vpop.f32.mrf.mxu1 }
 0x109   :  { %6052 = vst [vmem:[#allocation4_spill] sm:$0xff] %v4075_v36 }
 0x10a   :  { %6053 = vst [vmem:[#allocation5_spill] sm:$0xff] %v4077_v38  ;;  %2841 = vmatmul.msk.f32.gmra.mxu0 %vm119_vm0, %v3541_v58  ;;  %2869 = vmatmul.msk.f32.gmra.mxu1 %vm119_vm0, %v3541_v58  ;;  %v2991_v58 = vld [vmem:[%s6037_s1 + $0x380] sm:$0xff] }
 0x10b   :  { %2921 = vmatmul.msk.f32.gmra.mxu2 %vm119_vm0, %v3560_v61  ;;  %2949 = vmatmul.msk.f32.gmra.mxu3 %vm119_vm0, %v3560_v61 }
 0x10c   :  { %1218 = vmatpush.msra.mxu0 %v2991_v58 }
 0x10e   :  { %v468_v57 = vpop.f32.mrf.mxu2  ;;  %v569_v55 = vpop.f32.mrf.mxu3 }
 0x10f   :  { %v4087_v4 = vadd.f32 %v468_v57, %v263_v50  ;;  %v4089_v22 = vadd.f32 %v569_v55, %v364_v54  ;;  %v266_v29 = vpop.f32.mrf.mxu0  ;;  %v367_v30 = vpop.f32.mrf.mxu1 }
 0x111   :  { %6054 = vst [vmem:[#allocation6_spill] sm:$0xff] %v4087_v4  ;;  %v3273_v4 = vld [vmem:[%s6038_s0 + $0xa0] sm:$0xff] }
 0x112   :  { %6055 = vst [vmem:[#allocation7_spill] sm:$0xff] %v4089_v22  ;;  %2842 = vmatmul.msk.f32.gmra.mxu0 %vm119_vm0, %v3560_v61  ;;  %2870 = vmatmul.msk.f32.gmra.mxu1 %vm119_vm0, %v3560_v61 }
 0x113   :  { %2922 = vmatmul.msk.f32.gmra.mxu2 %vm119_vm0, %v3573_v62  ;;  %2950 = vmatmul.msk.f32.gmra.mxu3 %vm119_vm0, %v3573_v62 }
 0x116   :  { %v471_v32 = vpop.f32.mrf.mxu2  ;;  %v572_v35 = vpop.f32.mrf.mxu3 }
 0x117   :  { %v4105_v50 = vadd.f32 %v471_v32, %v266_v29  ;;  %v4107_v61 = vadd.f32 %v572_v35, %v367_v30  ;;  %v269_v54 = vpop.f32.mrf.mxu0  ;;  %v370_v57 = vpop.f32.mrf.mxu1 }
 0x119   :  { %6056 = vst [vmem:[#allocation8_spill] sm:$0xff] %v4105_v50  ;;  %v3064_v50 = vld [vmem:[%s6039_s3 + $0x148] sm:$0xff] }
 0x11a   :  { %6057 = vst [vmem:[#allocation9_spill] sm:$0xff] %v4107_v61  ;;  %2843 = vmatmul.msk.f32.gmra.mxu0 %vm119_vm0, %v3573_v62  ;;  %2871 = vmatmul.msk.f32.gmra.mxu1 %vm119_vm0, %v3573_v62 }
 0x11b   :  { %2923 = vmatmul.msk.f32.gmra.mxu2 %vm119_vm0, %v3592_v1  ;;  %2951 = vmatmul.msk.f32.gmra.mxu3 %vm119_vm0, %v3592_v1 }
 0x11e   :  { %v474_v55 = vpop.f32.mrf.mxu2  ;;  %v575_v58 = vpop.f32.mrf.mxu3 }
 0x11f   :  { %v4117_v29 = vadd.f32 %v474_v55, %v269_v54  ;;  %v4119_v30 = vadd.f32 %v575_v58, %v370_v57  ;;  %v272_v56 = vpop.f32.mrf.mxu0  ;;  %v373_v32 = vpop.f32.mrf.mxu1 }
 0x121   :  { %6058 = vst [vmem:[#allocation10_spill] sm:$0xff] %v4117_v29  ;;  %v3262_v29 = vld [vmem:[%s6038_s0 + $0x48] sm:$0xff] }
 0x122   :  { %6059 = vst [vmem:[#allocation11_spill] sm:$0xff] %v4119_v30  ;;  %2844 = vmatmul.msk.f32.gmra.mxu0 %vm119_vm0, %v3592_v1  ;;  %2872 = vmatmul.msk.f32.gmra.mxu1 %vm119_vm0, %v3592_v1  ;;  %v2989_v30 = vld [vmem:[%s6037_s1 + $0x370] sm:$0xff]  ;;  %v2990_v1 = vld [vmem:[%s6037_s1 + $0x378] sm:$0xff] }
 0x123   :  { %2924 = vmatmul.msk.f32.gmra.mxu2 %vm119_vm0, %v3605_v2  ;;  %2952 = vmatmul.msk.f32.gmra.mxu3 %vm119_vm0, %v3605_v2 }
 0x124   :  { %1219 = vmatpush.msra.mxu0 %v2989_v30  ;;  %1320 = vmatpush.msra.mxu1 %v2990_v1 }
 0x126   :  { %v477_v62 = vpop.f32.mrf.mxu2  ;;  %v578_v35 = vpop.f32.mrf.mxu3 }
 0x127   :  { %v4129_v54 = vadd.f32 %v477_v62, %v272_v56  ;;  %v4131_v57 = vadd.f32 %v578_v35, %v373_v32  ;;  %v275_v55 = vpop.f32.mrf.mxu0  ;;  %v376_v58 = vpop.f32.mrf.mxu1 }
 0x129   :  { %6060 = vst [vmem:[#allocation12_spill] sm:$0xff] %v4129_v54 }
 0x12a   :  { %6061 = vst [vmem:[#allocation13_spill] sm:$0xff] %v4131_v57  ;;  %2845 = vmatmul.msk.f32.gmra.mxu0 %vm119_vm0, %v3605_v2  ;;  %2873 = vmatmul.msk.f32.gmra.mxu1 %vm119_vm0, %v3605_v2 }
 0x12b   :  { %2925 = vmatmul.msk.f32.gmra.mxu2 %vm119_vm0, %v3624_v5  ;;  %2953 = vmatmul.msk.f32.gmra.mxu3 %vm119_vm0, %v3624_v5 }
 0x12e   :  { %v480_v56 = vpop.f32.mrf.mxu2  ;;  %v581_v32 = vpop.f32.mrf.mxu3 }
 0x12f   :  { %v4147_v62 = vadd.f32 %v480_v56, %v275_v55  ;;  %v4149_v35 = vadd.f32 %v581_v32, %v376_v58  ;;  %v278_v30 = vpop.f32.mrf.mxu0  ;;  %v379_v1 = vpop.f32.mrf.mxu1 }
 0x131   :  { %6062 = vst [vmem:[#allocation14_spill] sm:$0xff] %v4147_v62  ;;  %v3260_v62 = vld [vmem:[%s6038_s0 + $0x38] sm:$0xff] }
 0x132   :  { %6063 = vst [vmem:[#allocation15_spill] sm:$0xff] %v4149_v35  ;;  %2846 = vmatmul.msk.f32.gmra.mxu0 %vm119_vm0, %v3624_v5  ;;  %2874 = vmatmul.msk.f32.gmra.mxu1 %vm119_vm0, %v3624_v5  ;;  %v2987_v35 = vld [vmem:[%s6037_s1 + $0x360] sm:$0xff]  ;;  %v2988_v5 = vld [vmem:[%s6037_s1 + $0x368] sm:$0xff] }
 0x133   :  { %2926 = vmatmul.msk.f32.gmra.mxu2 %vm119_vm0, %v3637_v6  ;;  %2954 = vmatmul.msk.f32.gmra.mxu3 %vm119_vm0, %v3637_v6 }
 0x134   :  { %1220 = vmatpush.msra.mxu0 %v2987_v35  ;;  %1321 = vmatpush.msra.mxu1 %v2988_v5 }
 0x136   :  { %v483_v2 = vpop.f32.mrf.mxu2  ;;  %v584_v57 = vpop.f32.mrf.mxu3 }
 0x137   :  { %v4159_v55 = vadd.f32 %v483_v2, %v278_v30  ;;  %v4161_v58 = vadd.f32 %v584_v57, %v379_v1  ;;  %v281_v56 = vpop.f32.mrf.mxu0  ;;  %v382_v32 = vpop.f32.mrf.mxu1 }
 0x139   :  { %6064 = vst [vmem:[#allocation16_spill] sm:$0xff] %v4159_v55 }
 0x13a   :  { %6065 = vst [vmem:[#allocation17_spill] sm:$0xff] %v4161_v58  ;;  %2847 = vmatmul.msk.f32.gmra.mxu0 %vm119_vm0, %v3637_v6  ;;  %2875 = vmatmul.msk.f32.gmra.mxu1 %vm119_vm0, %v3637_v6 }
 0x13b   :  { %2927 = vmatmul.msk.f32.gmra.mxu2 %vm119_vm0, %v3650_v7  ;;  %2955 = vmatmul.msk.f32.gmra.mxu3 %vm119_vm0, %v3650_v7 }
 0x13e   :  { %v486_v57 = vpop.f32.mrf.mxu2  ;;  %v587_v30 = vpop.f32.mrf.mxu3 }
 0x13f   :  { %v4177_v1 = vadd.f32 %v486_v57, %v281_v56  ;;  %v4179_v2 = vadd.f32 %v587_v30, %v382_v32  ;;  %v284_v35 = vpop.f32.mrf.mxu0  ;;  %v385_v5 = vpop.f32.mrf.mxu1 }
 0x141   :  { %6066 = vst [vmem:[#allocation18_spill] sm:$0xff] %v4177_v1  ;;  %v3259_v1 = vld [vmem:[%s6038_s0 + $0x30] sm:$0xff] }
 0x142   :  { %6067 = vst [vmem:[#allocation19_spill] sm:$0xff] %v4179_v2  ;;  %2848 = vmatmul.msk.f32.gmra.mxu0 %vm119_vm0, %v3650_v7  ;;  %2876 = vmatmul.msk.f32.gmra.mxu1 %vm119_vm0, %v3650_v7  ;;  %v2985_v7 = vld [vmem:[%s6037_s1 + $0x350] sm:$0xff] }
 0x143   :  { %2928 = vmatmul.msk.f32.gmra.mxu2 %vm119_vm0, %v3669_v10  ;;  %2956 = vmatmul.msk.f32.gmra.mxu3 %vm119_vm0, %v3669_v10 }
 0x144   :  { %1221 = vmatpush.msra.mxu0 %v2985_v7 }
 0x146   :  { %v489_v6 = vpop.f32.mrf.mxu2  ;;  %v590_v58 = vpop.f32.mrf.mxu3 }
 0x147   :  { %v4189_v56 = vadd.f32 %v489_v6, %v284_v35  ;;  %v4191_v32 = vadd.f32 %v590_v58, %v385_v5  ;;  %v287_v57 = vpop.f32.mrf.mxu0  ;;  %v388_v30 = vpop.f32.mrf.mxu1  ;;  %v2986_v58 = vld [vmem:[%s6037_s1 + $0x358] sm:$0xff] }
 0x148   :  { %1322 = vmatpush.msra.mxu1 %v2986_v58 }
 0x149   :  { %6068 = vst [vmem:[#allocation20_spill] sm:$0xff] %v4189_v56 }
 0x14a   :  { %6069 = vst [vmem:[#allocation21_spill] sm:$0xff] %v4191_v32  ;;  %2849 = vmatmul.msk.f32.gmra.mxu0 %vm119_vm0, %v3669_v10  ;;  %2877 = vmatmul.msk.f32.gmra.mxu1 %vm119_vm0, %v3669_v10 }
 0x14b   :  { %2929 = vmatmul.msk.f32.gmra.mxu2 %vm119_vm0, %v3682_v11  ;;  %2957 = vmatmul.msk.f32.gmra.mxu3 %vm119_vm0, %v3682_v11 }
 0x14e   :  { %v492_v35 = vpop.f32.mrf.mxu2  ;;  %v593_v5 = vpop.f32.mrf.mxu3 }
 0x14f   :  { %v4207_v6 = vadd.f32 %v492_v35, %v287_v57  ;;  %v4209_v10 = vadd.f32 %v593_v5, %v388_v30  ;;  %v290_v32 = vpop.f32.mrf.mxu0  ;;  %v391_v56 = vpop.f32.mrf.mxu1 }
 0x151   :  { %6070 = vst [vmem:[#allocation22_spill] sm:$0xff] %v4207_v6  ;;  %v3258_v6 = vld [vmem:[%s6038_s0 + $0x28] sm:$0xff] }
 0x152   :  { %6071 = vst [vmem:[#allocation23_spill] sm:$0xff] %v4209_v10  ;;  %2850 = vmatmul.msk.f32.gmra.mxu0 %vm119_vm0, %v3682_v11  ;;  %2878 = vmatmul.msk.f32.gmra.mxu1 %vm119_vm0, %v3682_v11 }
 0x153   :  { %2930 = vmatmul.msk.f32.gmra.mxu2 %vm119_vm0, %v3695_v12  ;;  %2958 = vmatmul.msk.f32.gmra.mxu3 %vm119_vm0, %v3695_v12 }
 0x156   :  { %v495_v7 = vpop.f32.mrf.mxu2  ;;  %v596_v58 = vpop.f32.mrf.mxu3 }
 0x157   :  { %v4219_v57 = vadd.f32 %v495_v7, %v290_v32  ;;  %v4221_v30 = vadd.f32 %v596_v58, %v391_v56  ;;  %v293_v35 = vpop.f32.mrf.mxu0  ;;  %v394_v5 = vpop.f32.mrf.mxu1 }
 0x159   :  { %6072 = vst [vmem:[#allocation24_spill] sm:$0xff] %v4219_v57  ;;  %v3082_v57 = vld [vmem:[%s6039_s3 + $0x1d8] sm:$0xff] }
 0x15a   :  { %6073 = vst [vmem:[#allocation25_spill] sm:$0xff] %v4221_v30  ;;  %2851 = vmatmul.msk.f32.gmra.mxu0 %vm119_vm0, %v3695_v12  ;;  %2879 = vmatmul.msk.f32.gmra.mxu1 %vm119_vm0, %v3695_v12  ;;  %v2983_v30 = vld [vmem:[%s6037_s1 + $0x340] sm:$0xff]  ;;  %v2984_v12 = vld [vmem:[%s6037_s1 + $0x348] sm:$0xff] }
 0x15b   :  { %2931 = vmatmul.msk.f32.gmra.mxu2 %vm119_vm0, %v3714_v15  ;;  %2959 = vmatmul.msk.f32.gmra.mxu3 %vm119_vm0, %v3714_v15 }
 0x15c   :  { %1222 = vmatpush.msra.mxu0 %v2983_v30  ;;  %1323 = vmatpush.msra.mxu1 %v2984_v12 }
 0x15e   :  { %v498_v11 = vpop.f32.mrf.mxu2  ;;  %v599_v10 = vpop.f32.mrf.mxu3 }
 0x15f   :  { %v4231_v32 = vadd.f32 %v498_v11, %v293_v35  ;;  %v4233_v56 = vadd.f32 %v599_v10, %v394_v5  ;;  %v296_v7 = vpop.f32.mrf.mxu0  ;;  %v397_v58 = vpop.f32.mrf.mxu1 }
 0x161   :  { %6074 = vst [vmem:[#allocation26_spill] sm:$0xff] %v4231_v32  ;;  %v3081_v32 = vld [vmem:[%s6039_s3 + $0x1d0] sm:$0xff] }
 0x162   :  { %6075 = vst [vmem:[#allocation27_spill] sm:$0xff] %v4233_v56  ;;  %2852 = vmatmul.msk.f32.gmra.mxu0 %vm119_vm0, %v3714_v15  ;;  %2880 = vmatmul.msk.f32.gmra.mxu1 %vm119_vm0, %v3714_v15 }
 0x163   :  { %2932 = vmatmul.msk.f32.gmra.mxu2 %vm119_vm0, %v3727_v16  ;;  %2960 = vmatmul.msk.f32.gmra.mxu3 %vm119_vm0, %v3727_v16 }
 0x166   :  { %v501_v10 = vpop.f32.mrf.mxu2  ;;  %v602_v35 = vpop.f32.mrf.mxu3 }
 0x167   :  { %v4249_v5 = vadd.f32 %v501_v10, %v296_v7  ;;  %v4251_v11 = vadd.f32 %v602_v35, %v397_v58  ;;  %v299_v30 = vpop.f32.mrf.mxu0  ;;  %v400_v12 = vpop.f32.mrf.mxu1 }
 0x169   :  { %6076 = vst [vmem:[#allocation28_spill] sm:$0xff] %v4249_v5 }
 0x16a   :  { %6077 = vst [vmem:[#allocation29_spill] sm:$0xff] %v4251_v11  ;;  %2853 = vmatmul.msk.f32.gmra.mxu0 %vm119_vm0, %v3727_v16  ;;  %2881 = vmatmul.msk.f32.gmra.mxu1 %vm119_vm0, %v3727_v16  ;;  %v2981_v11 = vld [vmem:[%s6037_s1 + $0x330] sm:$0xff]  ;;  %v2982_v16 = vld [vmem:[%s6037_s1 + $0x338] sm:$0xff] }
 0x16b   :  { %2933 = vmatmul.msk.f32.gmra.mxu2 %vm119_vm0, %v3746_v21  ;;  %2961 = vmatmul.msk.f32.gmra.mxu3 %vm119_vm0, %v3746_v21 }
 0x16c   :  { %1223 = vmatpush.msra.mxu0 %v2981_v11  ;;  %1324 = vmatpush.msra.mxu1 %v2982_v16 }
 0x16e   :  { %v504_v15 = vpop.f32.mrf.mxu2  ;;  %v605_v56 = vpop.f32.mrf.mxu3 }
 0x16f   :  { %v4261_v7 = vadd.f32 %v504_v15, %v299_v30  ;;  %v4263_v58 = vadd.f32 %v605_v56, %v400_v12  ;;  %v302_v10 = vpop.f32.mrf.mxu0  ;;  %v403_v35 = vpop.f32.mrf.mxu1 }
 0x171   :  { %6078 = vst [vmem:[#allocation30_spill] sm:$0xff] %v4261_v7 }
 0x172   :  { %6079 = vst [vmem:[#allocation31_spill] sm:$0xff] %v4263_v58  ;;  %2854 = vmatmul.msk.f32.gmra.mxu0 %vm119_vm0, %v3746_v21  ;;  %2882 = vmatmul.msk.f32.gmra.mxu1 %vm119_vm0, %v3746_v21 }
 0x173   :  { %2934 = vmatmul.msk.f32.gmra.mxu2 %vm119_vm0, %v3763_v28  ;;  %2962 = vmatmul.msk.f32.gmra.mxu3 %vm119_vm0, %v3763_v28 }
 0x176   :  { %v507_v56 = vpop.f32.mrf.mxu2  ;;  %v608_v30 = vpop.f32.mrf.mxu3 }
 0x177   :  { %v4279_v12 = vadd.f32 %v507_v56, %v302_v10  ;;  %v4281_v15 = vadd.f32 %v608_v30, %v403_v35  ;;  %v656_v11 = vpop.f32.mrf.mxu0  ;;  %v757_v16 = vpop.f32.mrf.mxu1 }
 0x178   :  { %v841_v21 = vadd.f32 %v656_v11, %v3756_v24  ;;  %v842_v10 = vadd.f32 %v757_v16, %v3758_v25  ;;  %v2979_v24 = vld [vmem:[%s6037_s1 + $0x320] sm:$0xff]  ;;  %v2980_v25 = vld [vmem:[%s6037_s1 + $0x328] sm:$0xff] }
 0x179   :  { %6080 = vst [vmem:[#allocation32_spill] sm:$0xff] %v4279_v12  ;;  %1224 = vmatpush.msra.mxu0 %v2979_v24  ;;  %1325 = vmatpush.msra.mxu1 %v2980_v25 }
 0x17a   :  { %6081 = vst [vmem:[#allocation33_spill] sm:$0xff] %v4281_v15  ;;  %2855 = vmatmul.msk.f32.gmra.mxu0 %vm119_vm0, %v3763_v28  ;;  %2883 = vmatmul.msk.f32.gmra.mxu1 %vm119_vm0, %v3763_v28 }
 0x17b   :  { %2935 = vmatmul.msk.f32.gmra.mxu2 %vm119_vm0, %v3786_v37  ;;  %2963 = vmatmul.msk.f32.gmra.mxu3 %vm119_vm0, %v3786_v37 }
 0x17e   :  { %v942_v35 = vpop.f32.mrf.mxu2  ;;  %v1043_v56 = vpop.f32.mrf.mxu3 }
 0x17f   :  { %v4293_v30 = vadd.f32 %v942_v35, %v841_v21  ;;  %v4295_v15 = vadd.f32 %v1043_v56, %v842_v10  ;;  %v659_v12 = vpop.f32.mrf.mxu0  ;;  %v760_v58 = vpop.f32.mrf.mxu1 }
 0x180   :  { %v843_v28 = vadd.f32 %v659_v12, %v3779_v33 }
 0x182   :  { %2856 = vmatmul.msk.f32.gmra.mxu0 %vm119_vm0, %v3786_v37  ;;  %2884 = vmatmul.msk.f32.gmra.mxu1 %vm119_vm0, %v3786_v37  ;;  %v844_v37 = vadd.f32 %v760_v58, %v3781_v34 }
 0x183   :  { %2936 = vmatmul.msk.f32.gmra.mxu2 %vm119_vm0, %v3803_v44  ;;  %2964 = vmatmul.msk.f32.gmra.mxu3 %vm119_vm0, %v3803_v44 }
 0x186   :  { %v945_v11 = vpop.f32.mrf.mxu2  ;;  %v1046_v16 = vpop.f32.mrf.mxu3 }
 0x187   :  { %v4313_v21 = vadd.f32 %v945_v11, %v843_v28  ;;  %v4315_v10 = vadd.f32 %v1046_v16, %v844_v37  ;;  %v662_v35 = vpop.f32.mrf.mxu0  ;;  %v763_v56 = vpop.f32.mrf.mxu1 }
 0x188   :  { %v845_v33 = vadd.f32 %v662_v35, %v3796_v40  ;;  %v846_v34 = vadd.f32 %v763_v56, %v3798_v41 }
 0x18a   :  { %2857 = vmatmul.msk.f32.gmra.mxu0 %vm119_vm0, %v3803_v44  ;;  %2885 = vmatmul.msk.f32.gmra.mxu1 %vm119_vm0, %v3803_v44 }
 0x18b   :  { %2937 = vmatmul.msk.f32.gmra.mxu2 %vm119_vm0, %v3820_v51  ;;  %2965 = vmatmul.msk.f32.gmra.mxu3 %vm119_vm0, %v3820_v51 }
 0x18e   :  { %v948_v58 = vpop.f32.mrf.mxu2  ;;  %v1049_v12 = vpop.f32.mrf.mxu3 }
 0x18f   :  { %v4327_v24 = vadd.f32 %v948_v58, %v845_v33  ;;  %v4329_v25 = vadd.f32 %v1049_v12, %v846_v34  ;;  %v665_v28 = vpop.f32.mrf.mxu0  ;;  %v766_v37 = vpop.f32.mrf.mxu1  ;;  %v2975_v12 = vld [vmem:[%s6037_s1 + $0x300] sm:$0xff] }
 0x190   :  { %v847_v40 = vadd.f32 %v665_v28, %v3813_v47  ;;  %v848_v41 = vadd.f32 %v766_v37, %v3815_v48  ;;  %v2978_v47 = vld [vmem:[%s6037_s1 + $0x318] sm:$0xff]  ;;  %v2976_v28 = vld [vmem:[%s6037_s1 + $0x308] sm:$0xff] }
 0x191   :  { %1326 = vmatpush.msra.mxu1 %v2978_v47 }
 0x192   :  { %2858 = vmatmul.msk.f32.gmra.mxu0 %vm119_vm0, %v3820_v51  ;;  %2886 = vmatmul.msk.f32.gmra.mxu1 %vm119_vm0, %v3820_v51  ;;  %v2977_v51 = vld [vmem:[%s6037_s1 + $0x310] sm:$0xff] }
 0x193   :  { %2938 = vmatmul.msk.f32.gmra.mxu2 %vm119_vm0, %v3843_v3  ;;  %2966 = vmatmul.msk.f32.gmra.mxu3 %vm119_vm0, %v3843_v3 }
 0x194   :  { %1225 = vmatpush.msra.mxu0 %v2977_v51  ;;  %1327 = vmatpush.msra.mxu1 %v2976_v28  ;;  %v4459_v28 = vld [vmem:[%s6038_s0 + $0xf0] sm:$0xff] }
 0x196   :  { %v951_v44 = vpop.f32.mrf.mxu2  ;;  %v1052_v11 = vpop.f32.mrf.mxu3  ;;  %1226 = vmatpush.msra.mxu0 %v2975_v12 }
 0x197   :  { %v4341_v16 = vadd.f32 %v951_v44, %v847_v40  ;;  %v4343_v35 = vadd.f32 %v1052_v11, %v848_v41  ;;  %v4345_v56 = vpop.f32.mrf.mxu0  ;;  %v4347_v33 = vpop.f32.mrf.mxu1  ;;  %v3086_v44 = vld [vmem:[%s6039_s3 + $0x1f8] sm:$0xff] }
 0x198   :  { %1741 = vmatpush.msra.mxu3 %v3086_v44 }
 0x19a   :  { %2859 = vmatmul.msk.f32.gmra.mxu0 %vm119_vm0, %v3843_v3  ;;  %2887 = vmatmul.msk.f32.gmra.mxu1 %vm119_vm0, %v3843_v3 }
 0x19b   :  { %2939 = vmatmul.msk.f32.gmra.mxu2 %vm119_vm0, %v3868_v18  ;;  %2967 = vmatmul.msk.f32.gmra.mxu3 %vm119_vm0, %v3868_v18 }
 0x19f   :  { %v4363_v48 = vpop.f32.mrf.mxu0  ;;  %v4365_v34 = vpop.f32.mrf.mxu1 }
 0x1a2   :  { %2860 = vmatmul.msk.f32.gmra.mxu0 %vm119_vm0, %v3868_v18  ;;  %2888 = vmatmul.msk.f32.gmra.mxu1 %vm119_vm0, %v3868_v18 }
 0x1a3   :  { %2940 = vmatmul.msk.f32.gmra.mxu2 %vm119_vm0, %v3919_v52  ;;  %2968 = vmatmul.msk.f32.gmra.mxu3 %vm119_vm0, %v3919_v52 }
 0x1a7   :  { %v4375_v3 = vpop.f32.mrf.mxu0  ;;  %v4377_v58 = vpop.f32.mrf.mxu1 }
 0x1aa   :  { %2861 = vmatmul.msk.f32.gmra.mxu0 %vm119_vm0, %v3919_v52  ;;  %2889 = vmatmul.msk.f32.gmra.mxu1 %vm119_vm0, %v3919_v52 }
 0x1ab   :  { %2941 = vmatmul.msk.f32.gmra.mxu2 %vm119_vm0, %v3954_v23  ;;  %2969 = vmatmul.msk.f32.gmra.mxu3 %vm119_vm0, %v3954_v23 }
 0x1af   :  { %v4393_v18 = vpop.f32.mrf.mxu0  ;;  %v4395_v37 = vpop.f32.mrf.mxu1 }
 0x1b2   :  { %2862 = vmatmul.msk.f32.gmra.mxu0 %vm119_vm0, %v3954_v23  ;;  %2890 = vmatmul.msk.f32.gmra.mxu1 %vm119_vm0, %v3954_v23 }
 0x1b3   :  { %2942 = vmatmul.msk.f32.gmra.mxu2 %vm119_vm0, %v3995_v53  ;;  %2970 = vmatmul.msk.f32.gmra.mxu3 %vm119_vm0, %v3995_v53 }
 0x1b7   :  { %v4405_v52 = vpop.f32.mrf.mxu0  ;;  %v4407_v40 = vpop.f32.mrf.mxu1 }
 0x1ba   :  { %2863 = vmatmul.msk.f32.gmra.mxu0 %vm119_vm0, %v3995_v53  ;;  %2891 = vmatmul.msk.f32.gmra.mxu1 %vm119_vm0, %v3995_v53  ;;  %v3085_v53 = vld [vmem:[%s6039_s3 + $0x1f0] sm:$0xff] }
 0x1bb   :  { %2943 = vmatmul.msk.f32.gmra.mxu2 %vm119_vm0, %v4012_v9  ;;  %2971 = vmatmul.msk.f32.gmra.mxu3 %vm119_vm0, %v4012_v9 }
 0x1bc   :  { %1694 = vmatpush.msra.mxu2 %v3085_v53  ;;  %v3083_v53 = vld [vmem:[%s6039_s3 + $0x1e0] sm:$0xff] }
 0x1be   :  { %1695 = vmatpush.msra.mxu2 %v3083_v53  ;;  %v3257_v53 = vld [vmem:[%s6038_s0 + $0x20] sm:$0xff] }
 0x1bf   :  { %v4417_v23 = vpop.f32.mrf.mxu0  ;;  %v4419_v41 = vpop.f32.mrf.mxu1 }
 0x1c0   :  { %1696 = vmatpush.msra.mxu2 %v3081_v32 }
 0x1c2   :  { %2864 = vmatmul.msk.f32.gmra.mxu0 %vm119_vm0, %v4012_v9  ;;  %2892 = vmatmul.msk.f32.gmra.mxu1 %vm119_vm0, %v4012_v9  ;;  %v4442_v9 = vld [vmem:[%s6038_s0 + $0xe8] sm:$0xff] }
 0x1c3   :  { %2944 = vmatmul.msk.f32.gmra.mxu2 %vm119_vm0, %v4029_v31  ;;  %2972 = vmatmul.msk.f32.gmra.mxu3 %vm119_vm0, %v4029_v31 }
 0x1c7   :  { %v4435_v11 = vpop.f32.mrf.mxu0  ;;  %v4437_v51 = vpop.f32.mrf.mxu1 }
 0x1ca   :  { %2865 = vmatmul.msk.f32.gmra.mxu0 %vm119_vm0, %v4029_v31  ;;  %2893 = vmatmul.msk.f32.gmra.mxu1 %vm119_vm0, %v4029_v31  ;;  %v3084_v31 = vld [vmem:[%s6039_s3 + $0x1e8] sm:$0xff] }
 0x1cb   :  { %2945 = vmatmul.msk.f32.gmra.mxu2 %vm119_vm0, %v4442_v9  ;;  %2973 = vmatmul.msk.f32.gmra.mxu3 %vm119_vm0, %v4442_v9 }
 0x1cc   :  { %1742 = vmatpush.msra.mxu3 %v3084_v31 }
 0x1ce   :  { %1743 = vmatpush.msra.mxu3 %v3082_v57  ;;  %v3079_v57 = vld [vmem:[%s6039_s3 + $0x1c0] sm:$0xff] }
 0x1cf   :  { %v4452_v47 = vpop.f32.mrf.mxu0  ;;  %v4454_v12 = vpop.f32.mrf.mxu1  ;;  %1697 = vmatpush.msra.mxu2 %v3079_v57  ;;  %v3261_v57 = vld [vmem:[%s6038_s0 + $0x40] sm:$0xff] }
 0x1d2   :  { %2866 = vmatmul.msk.f32.gmra.mxu0 %vm119_vm0, %v4442_v9  ;;  %2894 = vmatmul.msk.f32.gmra.mxu1 %vm119_vm0, %v4442_v9 }
 0x1d3   :  { %2946 = vmatmul.msk.f32.gmra.mxu2 %vm119_vm0, %v4459_v28  ;;  %2974 = vmatmul.msk.f32.gmra.mxu3 %vm119_vm0, %v4459_v28 }
 0x1d7   :  { %v4475_v44 = vpop.f32.mrf.mxu0  ;;  %v4477_v7 = vpop.f32.mrf.mxu1 }
 0x1d8   :  { %6082 = vst [vmem:[#allocation34_spill] sm:$0xff] %v4475_v44 }
 0x1d9   :  { %6083 = vst [vmem:[#allocation35_spill] sm:$0xff] %v4477_v7 }
 0x1da   :  { %2999 = vmatmul.msk.f32.vlgmr.msra.gmra.mxu0 %vm119_vm0, %v3257_v53  ;;  %3027 = vmatmul.msk.f32.vlgmr.msra.gmra.mxu1 %vm119_vm0, %v3257_v53 }
 0x1df   :  { %v4484_v31 = vpop.f32.mrf.mxu0  ;;  %v4486_v5 = vpop.f32.mrf.mxu1 }
 0x1e0   :  { %6084 = vst [vmem:[#allocation36_spill] sm:$0xff] %v4484_v31 }
 0x1e1   :  { %6085 = vst [vmem:[#allocation37_spill] sm:$0xff] %v4486_v5 }
 0x1e2   :  { %3000 = vmatmul.msk.f32.gmra.mxu0 %vm119_vm0, %v3258_v6  ;;  %3028 = vmatmul.msk.f32.gmra.mxu1 %vm119_vm0, %v3258_v6  ;;  %v3080_v6 = vld [vmem:[%s6039_s3 + $0x1c8] sm:$0xff] }
 0x1e3   :  { %1744 = vmatpush.msra.mxu3 %v3080_v6  ;;  %v3077_v6 = vld [vmem:[%s6039_s3 + $0x1b0] sm:$0xff] }
 0x1e4   :  { %1698 = vmatpush.msra.mxu2 %v3077_v6  ;;  %v3075_v6 = vld [vmem:[%s6039_s3 + $0x1a0] sm:$0xff] }
 0x1e6   :  { %1699 = vmatpush.msra.mxu2 %v3075_v6 }
 0x1e7   :  { %v4499_v53 = vpop.f32.mrf.mxu0  ;;  %v4501_v2 = vpop.f32.mrf.mxu1 }
 0x1e8   :  { %6086 = vst [vmem:[#allocation38_spill] sm:$0xff] %v4499_v53  ;;  %v1469_v53 = vld [vmem:[%s6040_s2] sm:$0x3] }
 0x1e9   :  { %6087 = vst [vmem:[#allocation39_spill] sm:$0xff] %v4501_v2  ;;  %v3057_v2 = vld [vmem:[%s6039_s3 + $0x110] sm:$0xff]  ;;  %v4727_v38 = vperm.slane %v1469_v53, 1 }
 0x1ea   :  { %3001 = vmatmul.msk.f32.gmra.mxu0 %vm119_vm0, %v3259_v1  ;;  %3029 = vmatmul.msk.f32.gmra.mxu1 %vm119_vm0, %v3259_v1 }
 0x1ef   :  { %v4514_v32 = vpop.f32.mrf.mxu0  ;;  %v4516_v55 = vpop.f32.mrf.mxu1 }
 0x1f0   :  { %6088 = vst [vmem:[#allocation40_spill] sm:$0xff] %v4514_v32 }
 0x1f1   :  { %6089 = vst [vmem:[#allocation41_spill] sm:$0xff] %v4516_v55 }
 0x1f2   :  { %3002 = vmatmul.msk.f32.gmra.mxu0 %vm119_vm0, %v3260_v62  ;;  %3030 = vmatmul.msk.f32.gmra.mxu1 %vm119_vm0, %v3260_v62  ;;  %v3078_v62 = vld [vmem:[%s6039_s3 + $0x1b8] sm:$0xff] }
 0x1f3   :  { %1745 = vmatpush.msra.mxu3 %v3078_v62  ;;  %v3076_v62 = vld [vmem:[%s6039_s3 + $0x1a8] sm:$0xff] }
 0x1f5   :  { %1746 = vmatpush.msra.mxu3 %v3076_v62 }
 0x1f7   :  { %v4523_v1 = vpop.f32.mrf.mxu0  ;;  %v4525_v54 = vpop.f32.mrf.mxu1 }
 0x1f8   :  { %6090 = vst [vmem:[#allocation42_spill] sm:$0xff] %v4523_v1 }
 0x1f9   :  { %6091 = vst [vmem:[#allocation43_spill] sm:$0xff] %v4525_v54 }
 0x1fa   :  { %3003 = vmatmul.msk.f32.gmra.mxu0 %vm119_vm0, %v3261_v57  ;;  %3031 = vmatmul.msk.f32.gmra.mxu1 %vm119_vm0, %v3261_v57 }
 0x1ff   :  { %v4538_v1 = vpop.f32.mrf.mxu0  ;;  %v4540_v54 = vpop.f32.mrf.mxu1 }
 0x200   :  { %6092 = vst [vmem:[#allocation44_spill] sm:$0xff] %v4538_v1 }
 0x201   :  { %6093 = vst [vmem:[#allocation45_spill] sm:$0xff] %v4540_v54  ;;  %v3263_v54 = vld [vmem:[%s6038_s0 + $0x50] sm:$0xff] }
 0x202   :  { %3004 = vmatmul.msk.f32.gmra.mxu0 %vm119_vm0, %v3262_v29  ;;  %3032 = vmatmul.msk.f32.gmra.mxu1 %vm119_vm0, %v3262_v29 }
 0x207   :  { %v4547_v57 = vpop.f32.mrf.mxu0  ;;  %v4549_v55 = vpop.f32.mrf.mxu1 }
 0x208   :  { %6094 = vst [vmem:[#allocation46_spill] sm:$0xff] %v4547_v57  ;;  %v3264_v57 = vld [vmem:[%s6038_s0 + $0x58] sm:$0xff] }
 0x209   :  { %6095 = vst [vmem:[#allocation47_spill] sm:$0xff] %v4549_v55 }
 0x20a   :  { %3005 = vmatmul.msk.f32.gmra.mxu0 %vm119_vm0, %v3263_v54  ;;  %3033 = vmatmul.msk.f32.gmra.mxu1 %vm119_vm0, %v3263_v54  ;;  %v3073_v54 = vld [vmem:[%s6039_s3 + $0x190] sm:$0xff] }
 0x20b   :  { %1700 = vmatpush.msra.mxu2 %v3073_v54 }
 0x20f   :  { %v4562_v29 = vpop.f32.mrf.mxu0  ;;  %v4564_v55 = vpop.f32.mrf.mxu1 }
 0x210   :  { %6096 = vst [vmem:[#allocation48_spill] sm:$0xff] %v4562_v29  ;;  %v3265_v29 = vld [vmem:[%s6038_s0 + $0x60] sm:$0xff] }
 0x211   :  { %6097 = vst [vmem:[#allocation49_spill] sm:$0xff] %v4564_v55  ;;  %v3074_v55 = vld [vmem:[%s6039_s3 + $0x198] sm:$0xff] }
 0x212   :  { %3006 = vmatmul.msk.f32.gmra.mxu0 %vm119_vm0, %v3264_v57  ;;  %3034 = vmatmul.msk.f32.gmra.mxu1 %vm119_vm0, %v3264_v57 }
 0x213   :  { %1747 = vmatpush.msra.mxu3 %v3074_v55  ;;  %v3071_v55 = vld [vmem:[%s6039_s3 + $0x180] sm:$0xff] }
 0x214   :  { %1701 = vmatpush.msra.mxu2 %v3071_v55  ;;  %v3268_v55 = vld [vmem:[%s6038_s0 + $0x78] sm:$0xff] }
 0x217   :  { %v4571_v6 = vpop.f32.mrf.mxu0  ;;  %v4573_v62 = vpop.f32.mrf.mxu1 }
 0x218   :  { %6098 = vst [vmem:[#allocation50_spill] sm:$0xff] %v4571_v6  ;;  %v3266_v6 = vld [vmem:[%s6038_s0 + $0x68] sm:$0xff] }
 0x219   :  { %6099 = vst [vmem:[#allocation51_spill] sm:$0xff] %v4573_v62 }
 0x21a   :  { %3007 = vmatmul.msk.f32.gmra.mxu0 %vm119_vm0, %v3265_v29  ;;  %3035 = vmatmul.msk.f32.gmra.mxu1 %vm119_vm0, %v3265_v29  ;;  %v3072_v29 = vld [vmem:[%s6039_s3 + $0x188] sm:$0xff] }
 0x21b   :  { %1748 = vmatpush.msra.mxu3 %v3072_v29  ;;  %v3069_v29 = vld [vmem:[%s6039_s3 + $0x170] sm:$0xff] }
 0x21c   :  { %1702 = vmatpush.msra.mxu2 %v3069_v29  ;;  %v3270_v29 = vld [vmem:[%s6038_s0 + $0x88] sm:$0xff] }
 0x21f   :  { %v4586_v57 = vpop.f32.mrf.mxu0  ;;  %v4588_v62 = vpop.f32.mrf.mxu1 }
 0x220   :  { %6100 = vst [vmem:[#allocation52_spill] sm:$0xff] %v4586_v57  ;;  %v3267_v57 = vld [vmem:[%s6038_s0 + $0x70] sm:$0xff] }
 0x221   :  { %6101 = vst [vmem:[#allocation53_spill] sm:$0xff] %v4588_v62 }
 0x222   :  { %3008 = vmatmul.msk.f32.gmra.mxu0 %vm119_vm0, %v3266_v6  ;;  %3036 = vmatmul.msk.f32.gmra.mxu1 %vm119_vm0, %v3266_v6 }
 0x227   :  { %v4601_v54 = vpop.f32.mrf.mxu0  ;;  %v4603_v62 = vpop.f32.mrf.mxu1 }
 0x228   :  { %6102 = vst [vmem:[#allocation54_spill] sm:$0xff] %v4601_v54 }
 0x229   :  { %6103 = vst [vmem:[#allocation55_spill] sm:$0xff] %v4603_v62  ;;  %v3269_v62 = vld [vmem:[%s6038_s0 + $0x80] sm:$0xff] }
 0x22a   :  { %3009 = vmatmul.msk.f32.gmra.mxu0 %vm119_vm0, %v3267_v57  ;;  %3037 = vmatmul.msk.f32.gmra.mxu1 %vm119_vm0, %v3267_v57  ;;  %v3070_v57 = vld [vmem:[%s6039_s3 + $0x178] sm:$0xff] }
 0x22b   :  { %1749 = vmatpush.msra.mxu3 %v3070_v57  ;;  %v4643_v57 = vpop.f32.mrf.mxu2 }
 0x22f   :  { %v4610_v6 = vpop.f32.mrf.mxu0  ;;  %v4612_v1 = vpop.f32.mrf.mxu1 }
 0x230   :  { %6104 = vst [vmem:[#allocation56_spill] sm:$0xff] %v4610_v6 }
 0x231   :  { %6105 = vst [vmem:[#allocation57_spill] sm:$0xff] %v4612_v1 }
 0x232   :  { %3010 = vmatmul.msk.f32.gmra.mxu0 %vm119_vm0, %v3268_v55  ;;  %3038 = vmatmul.msk.f32.gmra.mxu1 %vm119_vm0, %v3268_v55 }
 0x237   :  { %v4625_v6 = vpop.f32.mrf.mxu0  ;;  %v4627_v1 = vpop.f32.mrf.mxu1 }
 0x238   :  { %6106 = vst [vmem:[#allocation58_spill] sm:$0xff] %v4625_v6 }
 0x239   :  { %6107 = vst [vmem:[#allocation59_spill] sm:$0xff] %v4627_v1  ;;  %v4645_v1 = vpop.f32.mrf.mxu3 }
 0x23a   :  { %3011 = vmatmul.msk.f32.gmra.mxu0 %vm119_vm0, %v3269_v62  ;;  %3039 = vmatmul.msk.f32.gmra.mxu1 %vm119_vm0, %v3269_v62  ;;  %v3067_v62 = vld [vmem:[%s6039_s3 + $0x160] sm:$0xff] }
 0x23b   :  { %1703 = vmatpush.msra.mxu2 %v3067_v62  ;;  %v4668_v62 = vpop.f32.mrf.mxu2 }
 0x23f   :  { %v4634_v55 = vpop.f32.mrf.mxu0  ;;  %v4636_v54 = vpop.f32.mrf.mxu1 }
 0x240   :  { %6108 = vst [vmem:[#allocation60_spill] sm:$0xff] %v4634_v55 }
 0x241   :  { %6109 = vst [vmem:[#allocation61_spill] sm:$0xff] %v4636_v54  ;;  %v3068_v54 = vld [vmem:[%s6039_s3 + $0x168] sm:$0xff] }
 0x242   :  { %3012 = vmatmul.msk.f32.gmra.mxu0 %vm119_vm0, %v3270_v29  ;;  %3040 = vmatmul.msk.f32.gmra.mxu1 %vm119_vm0, %v3270_v29  ;;  %v3271_v29 = vld [vmem:[%s6038_s0 + $0x90] sm:$0xff] }
 0x243   :  { %1750 = vmatpush.msra.mxu3 %v3068_v54  ;;  %v4670_v54 = vpop.f32.mrf.mxu3 }
 0x247   :  { %v4647_v6 = vpop.f32.mrf.mxu0  ;;  %v4649_v61 = vpop.f32.mrf.mxu1 }
 0x248   :  { %6110 = vst [vmem:[#allocation62_spill] sm:$0xff] %v4647_v6  ;;  %v3066_v6 = vld [vmem:[%s6039_s3 + $0x158] sm:$0xff] }
 0x249   :  { %6111 = vst [vmem:[#allocation63_spill] sm:$0xff] %v4649_v61  ;;  %v3065_v61 = vld [vmem:[%s6039_s3 + $0x150] sm:$0xff]  ;;  %1751 = vmatpush.msra.mxu3 %v3066_v6 }
 0x24a   :  { %3013 = vmatmul.msk.f32.gmra.mxu0 %vm119_vm0, %v3271_v29  ;;  %3041 = vmatmul.msk.f32.gmra.mxu1 %vm119_vm0, %v3271_v29  ;;  %v3063_v29 = vld [vmem:[%s6039_s3 + $0x140] sm:$0xff]  ;;  %v3061_v6 = vld [vmem:[%s6039_s3 + $0x130] sm:$0xff] }
 0x24b   :  { %1704 = vmatpush.msra.mxu2 %v3065_v61  ;;  %v3272_v61 = vld [vmem:[%s6038_s0 + $0x98] sm:$0xff]  ;;  %1752 = vmatpush.msra.mxu3 %v3064_v50  ;;  %v4707_v22 = vpop.f32.mrf.mxu3 }
 0x24d   :  { %1705 = vmatpush.msra.mxu2 %v3063_v29 }
 0x24f   :  { %v4672_v55 = vpop.f32.mrf.mxu0  ;;  %v4674_v32 = vpop.f32.mrf.mxu1  ;;  %1706 = vmatpush.msra.mxu2 %v3061_v6 }
 0x250   :  { %6112 = vst [vmem:[#allocation64_spill] sm:$0xff] %v4672_v55  ;;  %v3059_v55 = vld [vmem:[%s6039_s3 + $0x120] sm:$0xff]  ;;  %v4705_v6 = vpop.f32.mrf.mxu2 }
 0x251   :  { %6113 = vst [vmem:[#allocation65_spill] sm:$0xff] %v4674_v32  ;;  %v3062_v32 = vld [vmem:[%s6039_s3 + $0x138] sm:$0xff]  ;;  %1707 = vmatpush.msra.mxu2 %v3059_v55  ;;  %v3055_v55 = vld [vmem:[%s6039_s3 + $0x100] sm:$0xff] }
 0x252   :  { %3014 = vmatmul.msk.f32.gmra.mxu0 %vm119_vm0, %v3272_v61  ;;  %3042 = vmatmul.msk.f32.gmra.mxu1 %vm119_vm0, %v3272_v61  ;;  %v3060_v61 = vld [vmem:[%s6039_s3 + $0x128] sm:$0xff] }
 0x253   :  { %1753 = vmatpush.msra.mxu3 %v3062_v32  ;;  %v3058_v32 = vld [vmem:[%s6039_s3 + $0x118] sm:$0xff]  ;;  %1708 = vmatpush.msra.mxu2 %v3057_v2 }
 0x255   :  { %1754 = vmatpush.msra.mxu3 %v3060_v61  ;;  %v3056_v61 = vld [vmem:[%s6039_s3 + $0x108] sm:$0xff]  ;;  %1709 = vmatpush.msra.mxu2 %v3055_v55 }
 0x257   :  { %v1228_v29 = vpop.f32.mrf.mxu0  ;;  %v1329_v50 = vpop.f32.mrf.mxu1  ;;  %1755 = vmatpush.msra.mxu3 %v3058_v32  ;;  %v4724_v32 = vperm.slane %v1469_v53, 0  ;;  %v3274_v53 = vld [vmem:[%s6038_s0 + $0xa8] sm:$0xff] }
 0x258   :  { %v1413_v2 = vadd.f32 %v1228_v29, %v4293_v30  ;;  %v1414_v5 = vadd.f32 %v1329_v50, %v4295_v15  ;;  %v4733_v55 = vpop.f32.mrf.mxu2 }
 0x259   :  { %1756 = vmatpush.msra.mxu3 %v3056_v61  ;;  %v4735_v61 = vpop.f32.mrf.mxu3 }
 0x25a   :  { %3015 = vmatmul.msk.f32.gmra.mxu0 %vm119_vm0, %v3273_v4  ;;  %3043 = vmatmul.msk.f32.gmra.mxu1 %vm119_vm0, %v3273_v4  ;;  %v1475_v7 = vadd.f32 %v4724_v32, %v1413_v2  ;;  %v1476_v17 = vadd.f32 %v4727_v38, %v1414_v5 }
 0x25c   :  { %v1531_v5 = vmax.f32 %v1475_v7, 0.0 }
 0x25f   :  { %v1231_v31 = vpop.f32.mrf.mxu0  ;;  %v1332_v36 = vpop.f32.mrf.mxu1 }
 0x260   :  { %v1415_v44 = vadd.f32 %v1231_v31, %v4313_v21  ;;  %v1416_v4 = vadd.f32 %v1332_v36, %v4315_v10  ;;  %v1532_v21 = vmax.f32 %v1476_v17, 0.0 }
 0x261   :  { %v4753_v7 = vpop.f32.mrf.mxu3 }
 0x262   :  { %v1477_v30 = vadd.f32 %v4724_v32, %v1415_v44  ;;  %v1478_v15 = vadd.f32 %v4727_v38, %v1416_v4  ;;  %3016 = vmatmul.msk.f32.gmra.mxu0 %vm119_vm0, %v3274_v53  ;;  %3044 = vmatmul.msk.f32.gmra.mxu1 %vm119_vm0, %v3274_v53  ;;  %v3275_v44 = vld [vmem:[%s6038_s0 + $0xb0] sm:$0xff]  ;;  %v4751_v4 = vpop.f32.mrf.mxu2 }
 0x264   :  { %v1533_v31 = vmax.f32 %v1477_v30, 0.0  ;;  %v1534_v36 = vmax.f32 %v1478_v15, 0.0 }
 0x266   :  { %v1587_v10 = vmax.f32 %v1531_v5, %v1533_v31  ;;  %v1588_v29 = vmax.f32 %v1532_v21, %v1534_v36 }
 0x267   :  { %v1234_v50 = vpop.f32.mrf.mxu0  ;;  %v1335_v2 = vpop.f32.mrf.mxu1 }
 0x268   :  { %v4744_v8 = vmax.f32 %v1587_v10, %v1588_v29  ;;  %v1417_v17 = vadd.f32 %v1234_v50, %v4327_v24  ;;  %v1418_v30 = vadd.f32 %v1335_v2, %v4329_v25  ;;  %v3276_v24 = vld [vmem:[%s6038_s0 + $0xb8] sm:$0xff] }
 0x26a   :  { %6114 = vst [vmem:[#allocation66_spill] sm:$0xff] %v4744_v8  ;;  %3017 = vmatmul.msk.f32.gmra.mxu0 %vm119_vm0, %v3275_v44  ;;  %3045 = vmatmul.msk.f32.gmra.mxu1 %vm119_vm0, %v3275_v44  ;;  %v1479_v5 = vadd.f32 %v4724_v32, %v1417_v17  ;;  %v1480_v21 = vadd.f32 %v4727_v38, %v1418_v30  ;;  %v4768_v17 = vpop.f32.mrf.mxu2 }
 0x26c   :  { %v1535_v25 = vmax.f32 %v1479_v5, 0.0  ;;  %v1536_v50 = vmax.f32 %v1480_v21, 0.0 }
 0x26f   :  { %v1237_v15 = vpop.f32.mrf.mxu0  ;;  %v1338_v53 = vpop.f32.mrf.mxu1 }
 0x270   :  { %v1419_v31 = vadd.f32 %v1237_v15, %v4341_v16  ;;  %v1420_v36 = vadd.f32 %v1338_v53, %v4343_v35  ;;  %v4770_v16 = vpop.f32.mrf.mxu3  ;;  %v849_v15 = vadd.f32 %v4345_v56, %v3836_v59  ;;  %v3150_v56 = vld [vmem:[%s6039_s3 + $0x3f8] sm:$0xff] }
 0x271   :  { %2109 = vmatpush.msrb.mxu1 %v3150_v56 }
 0x272   :  { %v1481_v10 = vadd.f32 %v4724_v32, %v1419_v31  ;;  %v1482_v29 = vadd.f32 %v4727_v38, %v1420_v36  ;;  %3018 = vmatmul.msk.f32.gmra.mxu0 %vm119_vm0, %v3276_v24  ;;  %3046 = vmatmul.msk.f32.gmra.mxu1 %vm119_vm0, %v3276_v24  ;;  %v850_v36 = vadd.f32 %v4347_v33, %v3838_v60  ;;  %v3149_v60 = vld [vmem:[%s6039_s3 + $0x3f0] sm:$0xff]  ;;  %v3148_v24 = vld [vmem:[%s6039_s3 + $0x3e8] sm:$0xff] }
 0x273   :  { %v1135_v5 = vadd.f32 %v4643_v57, %v849_v15  ;;  %v851_v33 = vadd.f32 %v4363_v48, %v3870_v19  ;;  %2062 = vmatpush.msrb.mxu0 %v3149_v60  ;;  %2110 = vmatpush.msrb.mxu1 %v3148_v24  ;;  %v3143_v15 = vld [vmem:[%s6039_s3 + $0x3c0] sm:$0xff] }
 0x274   :  { %v1537_v2 = vmax.f32 %v1481_v10, 0.0  ;;  %v1538_v44 = vmax.f32 %v1482_v29, 0.0  ;;  %v1136_v21 = vadd.f32 %v4645_v1, %v850_v36  ;;  %v3277_v10 = vld [vmem:[%s6038_s0 + $0xc0] sm:$0xff]  ;;  %v852_v1 = vadd.f32 %v4365_v34, %v3872_v20  ;;  %v3145_v34 = vld [vmem:[%s6039_s3 + $0x3d0] sm:$0xff] }
 0x275   :  { %v3147_v29 = vld [vmem:[%s6039_s3 + $0x3e0] sm:$0xff] }
 0x276   :  { %v1589_v35 = vmax.f32 %v1535_v25, %v1537_v2  ;;  %v1590_v30 = vmax.f32 %v1536_v50, %v1538_v44  ;;  %v1137_v25 = vadd.f32 %v4668_v62, %v851_v33  ;;  %v1138_v50 = vadd.f32 %v4670_v54, %v852_v1  ;;  %2063 = vmatpush.msrb.mxu0 %v3147_v29  ;;  %v3146_v2 = vld [vmem:[%s6039_s3 + $0x3d8] sm:$0xff]  ;;  %v4812_v44 = vpop.f32.mrf.mxu2  ;;  %v3139_v1 = vld [vmem:[%s6039_s3 + $0x3a0] sm:$0xff] }
 0x277   :  { %v1240_v53 = vpop.f32.mrf.mxu0  ;;  %v1341_v31 = vpop.f32.mrf.mxu1  ;;  %2111 = vmatpush.msrb.mxu1 %v3146_v2 }
 0x278   :  { %v4776_v8 = vmax.f32 %v1589_v35, %v1590_v30  ;;  %v1421_v59 = vadd.f32 %v1240_v53, %v1135_v5  ;;  %v1422_v57 = vadd.f32 %v1341_v31, %v1136_v21  ;;  %v4814_v35 = vpop.f32.mrf.mxu3  ;;  %2064 = vmatpush.msrb.mxu0 %v3145_v34  ;;  %v3144_v53 = vld [vmem:[%s6039_s3 + $0x3c8] sm:$0xff]  ;;  %v3141_v21 = vld [vmem:[%s6039_s3 + $0x3b0] sm:$0xff]  ;;  %v854_v34 = vadd.f32 %v4377_v58, %v3914_v46 }
 0x279   :  { %v3278_v5 = vld [vmem:[%s6038_s0 + $0xc8] sm:$0xff]  ;;  %2112 = vmatpush.msrb.mxu1 %v3144_v53  ;;  %v3279_v46 = vld [vmem:[%s6038_s0 + $0xd0] sm:$0xff]  ;;  %v855_v53 = vadd.f32 %v4393_v18, %v3947_v13 }
 0x27a   :  { %3019 = vmatmul.msk.f32.gmra.mxu0 %vm119_vm0, %v3277_v10  ;;  %3047 = vmatmul.msk.f32.gmra.mxu1 %vm119_vm0, %v3277_v10  ;;  %v1483_v19 = vadd.f32 %v4724_v32, %v1421_v59  ;;  %v1484_v62 = vadd.f32 %v4727_v38, %v1422_v57  ;;  %v3142_v10 = vld [vmem:[%s6039_s3 + $0x3b8] sm:$0xff]  ;;  %v3140_v57 = vld [vmem:[%s6039_s3 + $0x3a8] sm:$0xff] }
 0x27b   :  { %1710 = vmatmul.f32.vlgmr.msra.gmra.mxu2 %v4776_v8  ;;  %1757 = vmatmul.f32.vlgmr.msra.gmra.mxu3 %v4776_v8 }
 0x27c   :  { %2065 = vmatpush.msrb.mxu0 %v3143_v15  ;;  %v1539_v59 = vmax.f32 %v1483_v19, 0.0  ;;  %v1540_v60 = vmax.f32 %v1484_v62, 0.0  ;;  %2113 = vmatpush.msrb.mxu1 %v3142_v10  ;;  %v1141_v10 = vadd.f32 %v4733_v55, %v855_v53  ;;  %v3130_v55 = vld [vmem:[%s6039_s3 + $0x358] sm:$0xff]  ;;  %v857_v53 = vadd.f32 %v4405_v52, %v3988_v42  ;;  %v3281_v42 = vld [vmem:[%s6038_s0 + $0xe0] sm:$0xff] }
 0x27d   :  { %v3119_v52 = vld [vmem:[%s6039_s3 + $0x300] sm:$0xff] }
 0x27e   :  { %2066 = vmatpush.msrb.mxu0 %v3141_v21  ;;  %2114 = vmatpush.msrb.mxu1 %v3140_v57  ;;  %v3132_v21 = vld [vmem:[%s6039_s3 + $0x368] sm:$0xff]  ;;  %v3280_v57 = vld [vmem:[%s6038_s0 + $0xd8] sm:$0xff] }
 0x27f   :  { %v1243_v20 = vpop.f32.mrf.mxu0  ;;  %v1344_v48 = vpop.f32.mrf.mxu1 }
 0x280   :  { %v1423_v54 = vadd.f32 %v1243_v20, %v1137_v25  ;;  %v1424_v30 = vadd.f32 %v1344_v48, %v1138_v50  ;;  %v853_v25 = vadd.f32 %v4375_v3, %v3912_v45  ;;  %2067 = vmatpush.msrb.mxu0 %v3139_v1  ;;  %v3137_v20 = vld [vmem:[%s6039_s3 + $0x390] sm:$0xff]  ;;  %v3138_v48 = vld [vmem:[%s6039_s3 + $0x398] sm:$0xff]  ;;  %v3135_v45 = vld [vmem:[%s6039_s3 + $0x380] sm:$0xff]  ;;  %v4864_v15 = vpop.f32.mrf.mxu3 }
 0x281   :  { %2115 = vmatpush.msrb.mxu1 %v3138_v48  ;;  %v3136_v3 = vld [vmem:[%s6039_s3 + $0x388] sm:$0xff] }
 0x282   :  { %v1485_v31 = vadd.f32 %v4724_v32, %v1423_v54  ;;  %v1486_v36 = vadd.f32 %v4727_v38, %v1424_v30  ;;  %3020 = vmatmul.msk.f32.gmra.mxu0 %vm119_vm0, %v3278_v5  ;;  %3048 = vmatmul.msk.f32.gmra.mxu1 %vm119_vm0, %v3278_v5  ;;  %v1139_v62 = vadd.f32 %v4705_v6, %v853_v25  ;;  %v4862_v30 = vpop.f32.mrf.mxu2  ;;  %v3134_v6 = vld [vmem:[%s6039_s3 + $0x378] sm:$0xff]  ;;  %v3131_v5 = vld [vmem:[%s6039_s3 + $0x360] sm:$0xff] }
 0x283   :  { %2068 = vmatpush.msrb.mxu0 %v3137_v20  ;;  %v1140_v54 = vadd.f32 %v4707_v22, %v854_v34  ;;  %v3133_v22 = vld [vmem:[%s6039_s3 + $0x370] sm:$0xff]  ;;  %2116 = vmatpush.msrb.mxu1 %v3136_v3 }
 0x284   :  { %v1541_v56 = vmax.f32 %v1485_v31, 0.0  ;;  %v1542_v33 = vmax.f32 %v1486_v36, 0.0  ;;  %v856_v31 = vadd.f32 %v4395_v37, %v3949_v14 }
 0x285   :  { %2069 = vmatpush.msrb.mxu0 %v3135_v45  ;;  %2117 = vmatpush.msrb.mxu1 %v3134_v6  ;;  %v3126_v45 = vld [vmem:[%s6039_s3 + $0x338] sm:$0xff] }
 0x286   :  { %v1591_v29 = vmax.f32 %v1539_v59, %v1541_v56  ;;  %v1592_v24 = vmax.f32 %v1540_v60, %v1542_v33  ;;  %v1142_v59 = vadd.f32 %v4735_v61, %v856_v31  ;;  %v3129_v33 = vld [vmem:[%s6039_s3 + $0x350] sm:$0xff]  ;;  %v858_v31 = vadd.f32 %v4407_v40, %v3990_v43  ;;  %v3120_v40 = vld [vmem:[%s6039_s3 + $0x308] sm:$0xff] }
 0x287   :  { %v1246_v50 = vpop.f32.mrf.mxu0  ;;  %v1347_v19 = vpop.f32.mrf.mxu1  ;;  %2070 = vmatpush.msrb.mxu0 %v3133_v22  ;;  %2118 = vmatpush.msrb.mxu1 %v3132_v21  ;;  %v3122_v21 = vld [vmem:[%s6039_s3 + $0x318] sm:$0xff]  ;;  %v859_v43 = vadd.f32 %v4417_v23, %v4005_v63 }
 0x288   :  { %v4852_v2 = vmax.f32 %v1591_v29, %v1592_v24  ;;  %v1425_v58 = vadd.f32 %v1246_v50, %v1139_v62  ;;  %v1426_v36 = vadd.f32 %v1347_v19, %v1140_v54  ;;  %v3127_v29 = vld [vmem:[%s6039_s3 + $0x340] sm:$0xff]  ;;  %v3128_v24 = vld [vmem:[%s6039_s3 + $0x348] sm:$0xff]  ;;  %v4914_v50 = vpop.f32.mrf.mxu3  ;;  %v3125_v62 = vld [vmem:[%s6039_s3 + $0x330] sm:$0xff] }
 0x289   :  { %2071 = vmatpush.msrb.mxu0 %v3131_v5  ;;  %2119 = vmatpush.msrb.mxu1 %v3130_v55  ;;  %v3121_v5 = vld [vmem:[%s6039_s3 + $0x310] sm:$0xff]  ;;  %v1145_v63 = vadd.f32 %v4768_v17, %v859_v43 }
 0x28a   :  { %3021 = vmatmul.msk.f32.gmra.mxu0 %vm119_vm0, %v3279_v46  ;;  %3049 = vmatmul.msk.f32.gmra.mxu1 %vm119_vm0, %v3279_v46  ;;  %v1487_v13 = vadd.f32 %v4724_v32, %v1425_v58  ;;  %v1488_v37 = vadd.f32 %v4727_v38, %v1426_v36  ;;  %v4912_v25 = vpop.f32.mrf.mxu2  ;;  %v3123_v46 = vld [vmem:[%s6039_s3 + $0x320] sm:$0xff]  ;;  %v3124_v58 = vld [vmem:[%s6039_s3 + $0x328] sm:$0xff] }
 0x28b   :  { %1713 = vmatmul.f32.gmra.mxu2 %v4852_v2  ;;  %1760 = vmatmul.f32.gmra.mxu3 %v4852_v2 }
 0x28c   :  { %2072 = vmatpush.msrb.mxu0 %v3129_v33  ;;  %v1543_v19 = vmax.f32 %v1487_v13, 0.0  ;;  %v1544_v20 = vmax.f32 %v1488_v37, 0.0  ;;  %2120 = vmatpush.msrb.mxu1 %v3128_v24 }
 0x28e   :  { %2073 = vmatpush.msrb.mxu0 %v3127_v29  ;;  %2121 = vmatpush.msrb.mxu1 %v3126_v45 }
 0x28f   :  { %v1249_v14 = vpop.f32.mrf.mxu0  ;;  %v1350_v18 = vpop.f32.mrf.mxu1 }
 0x290   :  { %v1427_v60 = vadd.f32 %v1249_v14, %v1141_v10  ;;  %v1428_v56 = vadd.f32 %v1350_v18, %v1142_v59  ;;  %2074 = vmatpush.msrb.mxu0 %v3125_v62  ;;  %2122 = vmatpush.msrb.mxu1 %v3124_v58  ;;  %v1143_v10 = vadd.f32 %v4751_v4, %v857_v53  ;;  %v4963_v18 = vpop.f32.mrf.mxu3  ;;  %v1655_v58 = vld [vmem:[%s6039_s3 + $0xd0] sm:$0xff] }
 0x291   :  { %v1144_v59 = vadd.f32 %v4753_v7, %v858_v31  ;;  %v860_v4 = vadd.f32 %v4419_v41, %v4007_v0 }
 0x292   :  { %v1489_v61 = vadd.f32 %v4724_v32, %v1427_v60  ;;  %v1490_v1 = vadd.f32 %v4727_v38, %v1428_v56  ;;  %3022 = vmatmul.msk.f32.gmra.mxu0 %vm119_vm0, %v3280_v57  ;;  %3050 = vmatmul.msk.f32.gmra.mxu1 %vm119_vm0, %v3280_v57  ;;  %v4961_v14 = vpop.f32.mrf.mxu2 }
 0x293   :  { %2075 = vmatpush.msrb.mxu0 %v3123_v46  ;;  %2123 = vmatpush.msrb.mxu1 %v3122_v21  ;;  %v1146_v23 = vadd.f32 %v4770_v16, %v860_v4 }
 0x294   :  { %v1545_v48 = vmax.f32 %v1489_v61, 0.0  ;;  %v1546_v34 = vmax.f32 %v1490_v1, 0.0 }
 0x295   :  { %2076 = vmatpush.msrb.mxu0 %v3121_v5  ;;  %2124 = vmatpush.msrb.mxu1 %v3120_v40 }
 0x296   :  { %v1593_v3 = vmax.f32 %v1543_v19, %v1545_v48  ;;  %v1594_v54 = vmax.f32 %v1544_v20, %v1546_v34  ;;  %v861_v48 = vadd.f32 %v4435_v11, %v4022_v26  ;;  %v862_v34 = vadd.f32 %v4437_v51, %v4024_v27 }
 0x297   :  { %v1252_v22 = vpop.f32.mrf.mxu0  ;;  %v1353_v6 = vpop.f32.mrf.mxu1  ;;  %2077 = vmatpush.msrb.mxu0 %v3119_v52  ;;  %v863_v11 = vadd.f32 %v4452_v47, %v4045_v39  ;;  %v864_v51 = vadd.f32 %v4454_v12, %v4047_v49  ;;  %v1656_v39 = vld [vmem:[%s6039_s3 + $0xd8] sm:$0xff] }
 0x298   :  { %v4932_v36 = vmax.f32 %v1593_v3, %v1594_v54  ;;  %v1429_v7 = vadd.f32 %v1252_v22, %v1143_v10  ;;  %v1430_v13 = vadd.f32 %v1353_v6, %v1144_v59  ;;  %v4979_v45 = vpop.f32.mrf.mxu3  ;;  %v1660_v54 = vld [vmem:[%s6039_s3 + $0xf8] sm:$0xff]  ;;  %v1147_v26 = vadd.f32 %v4812_v44, %v861_v48 }
 0x299   :  { %1835 = vmatpush.msrb.mxu3 %v1660_v54  ;;  %v1148_v27 = vadd.f32 %v4814_v35, %v862_v34  ;;  %v1657_v35 = vld [vmem:[%s6039_s3 + $0xe0] sm:$0xff]  ;;  %v1149_v49 = vadd.f32 %v4862_v30, %v863_v11  ;;  %v1150_v47 = vadd.f32 %v4864_v15, %v864_v51  ;;  %v69_v6 = vld [vmem:[%s6038_s0 + $0xf8] sm:$0xff] }
 0x29a   :  { %3023 = vmatmul.msk.f32.gmra.mxu0 %vm119_vm0, %v3281_v42  ;;  %3051 = vmatmul.msk.f32.gmra.mxu1 %vm119_vm0, %v3281_v42  ;;  %v1491_v56 = vadd.f32 %v4724_v32, %v1429_v7  ;;  %v1492_v0 = vadd.f32 %v4727_v38, %v1430_v13  ;;  %v4977_v62 = vpop.f32.mrf.mxu2  ;;  %v6122_v48 = vld [vmem:[#allocation37_spill] sm:$0xff] }
 0x29b   :  { %1716 = vmatmul.f32.gmra.mxu2 %v4932_v36  ;;  %1763 = vmatmul.f32.gmra.mxu3 %v4932_v36 }
 0x29c   :  { %v1547_v16 = vmax.f32 %v1491_v56, 0.0  ;;  %v1548_v61 = vmax.f32 %v1492_v0, 0.0  ;;  %v6117_v56 = vld [vmem:[#allocation3_spill] sm:$0xff] }
 0x29d   :  { %v6118_v0 = vld [vmem:[#allocation35_spill] sm:$0xff] }
 0x29f   :  { %v1255_v37 = vpop.f32.mrf.mxu0  ;;  %v1356_v60 = vpop.f32.mrf.mxu1 }
 0x2a0   :  { %v1431_v41 = vadd.f32 %v1255_v37, %v1145_v63  ;;  %v1432_v33 = vadd.f32 %v1356_v60, %v1146_v23  ;;  %v5022_v59 = vpop.f32.mrf.mxu3  ;;  %v6115_v23 = vld [vmem:[#allocation2_spill] sm:$0xff] }
 0x2a1   :  { %v6116_v37 = vld [vmem:[#allocation34_spill] sm:$0xff] }
 0x2a2   :  { %v1493_v55 = vadd.f32 %v4724_v32, %v1431_v41  ;;  %v1494_v17 = vadd.f32 %v4727_v38, %v1432_v33  ;;  %3024 = vmatmul.msk.f32.gmra.mxu0 %vm119_vm0, %v4442_v9  ;;  %3052 = vmatmul.msk.f32.gmra.mxu1 %vm119_vm0, %v4442_v9  ;;  %v1659_v9 = vld [vmem:[%s6039_s3 + $0xf0] sm:$0xff]  ;;  %v5020_v10 = vpop.f32.mrf.mxu2  ;;  %v865_v60 = vadd.f32 %v6116_v37, %v6115_v23  ;;  %v1645_v23 = vld [vmem:[%s6039_s3 + $0x80] sm:$0xff]  ;;  %v1646_v37 = vld [vmem:[%s6039_s3 + $0x88] sm:$0xff] }
 0x2a3   :  { %1788 = vmatpush.msrb.mxu2 %v1659_v9  ;;  %v866_v41 = vadd.f32 %v6118_v0, %v6117_v56  ;;  %v6127_v0 = vld [vmem:[#allocation8_spill] sm:$0xff] }
 0x2a4   :  { %v1549_v1 = vmax.f32 %v1493_v55, 0.0  ;;  %v1550_v57 = vmax.f32 %v1494_v17, 0.0  ;;  %v1653_v55 = vld [vmem:[%s6039_s3 + $0xc0] sm:$0xff]  ;;  %v1654_v17 = vld [vmem:[%s6039_s3 + $0xc8] sm:$0xff] }
 0x2a5   :  { %1789 = vmatpush.msrb.mxu2 %v1657_v35 }
 0x2a6   :  { %v1595_v29 = vmax.f32 %v1547_v16, %v1549_v1  ;;  %v1596_v24 = vmax.f32 %v1548_v61, %v1550_v57  ;;  %v1651_v16 = vld [vmem:[%s6039_s3 + $0xb0] sm:$0xff]  ;;  %v1652_v61 = vld [vmem:[%s6039_s3 + $0xb8] sm:$0xff]  ;;  %v1151_v1 = vadd.f32 %v4912_v25, %v865_v60  ;;  %v1152_v57 = vadd.f32 %v4914_v50, %v866_v41 }
 0x2a7   :  { %v1258_v19 = vpop.f32.mrf.mxu0  ;;  %v1359_v20 = vpop.f32.mrf.mxu1  ;;  %1790 = vmatpush.msrb.mxu2 %v1655_v58  ;;  %v6128_v41 = vld [vmem:[#allocation40_spill] sm:$0xff] }
 0x2a8   :  { %v4981_v3 = vmax.f32 %v1595_v29, %v1596_v24  ;;  %v1433_v46 = vadd.f32 %v1258_v19, %v1147_v26  ;;  %v1434_v44 = vadd.f32 %v1359_v20, %v1148_v27  ;;  %v6119_v29 = vld [vmem:[#allocation4_spill] sm:$0xff]  ;;  %v6121_v20 = vld [vmem:[#allocation5_spill] sm:$0xff]  ;;  %v5058_v54 = vpop.f32.mrf.mxu3  ;;  %v1649_v26 = vld [vmem:[%s6039_s3 + $0xa0] sm:$0xff] }
 0x2a9   :  { %1791 = vmatpush.msrb.mxu2 %v1653_v55  ;;  %v6120_v24 = vld [vmem:[#allocation36_spill] sm:$0xff]  ;;  %v868_v34 = vadd.f32 %v6122_v48, %v6121_v20  ;;  %v1650_v27 = vld [vmem:[%s6039_s3 + $0xa8] sm:$0xff]  ;;  %v871_v55 = vadd.f32 %v6128_v41, %v6127_v0 }
 0x2aa   :  { %3025 = vmatmul.msk.f32.gmra.mxu0 %vm119_vm0, %v4459_v28  ;;  %3053 = vmatmul.msk.f32.gmra.mxu1 %vm119_vm0, %v4459_v28  ;;  %v1658_v28 = vld [vmem:[%s6039_s3 + $0xe8] sm:$0xff]  ;;  %v1495_v53 = vadd.f32 %v4724_v32, %v1433_v46  ;;  %v1496_v31 = vadd.f32 %v4727_v38, %v1434_v44  ;;  %v867_v19 = vadd.f32 %v6120_v24, %v6119_v29  ;;  %v5056_v9 = vpop.f32.mrf.mxu2 }
 0x2ab   :  { %1719 = vmatmul.f32.gmra.mxu2 %v4981_v3  ;;  %1766 = vmatmul.f32.gmra.mxu3 %v4981_v3  ;;  %v1154_v51 = vadd.f32 %v4963_v18, %v868_v34  ;;  %v1157_v29 = vadd.f32 %v5020_v10, %v871_v55  ;;  %v1638_v0 = vld [vmem:[%s6039_s3 + $0x48] sm:$0xff] }
 0x2ac   :  { %1836 = vmatpush.msrb.mxu3 %v1658_v28  ;;  %v1551_v42 = vmax.f32 %v1495_v53, 0.0  ;;  %v1552_v43 = vmax.f32 %v1496_v31, 0.0  ;;  %1792 = vmatpush.msrb.mxu2 %v1651_v16  ;;  %v1153_v11 = vadd.f32 %v4961_v14, %v867_v19  ;;  %v6130_v16 = vld [vmem:[#allocation41_spill] sm:$0xff] }
 0x2ae   :  { %1837 = vmatpush.msrb.mxu3 %v1656_v39  ;;  %1793 = vmatpush.msrb.mxu2 %v1649_v26 }
 0x2af   :  { %v1261_v12 = vpop.f32.mrf.mxu0  ;;  %v1362_v22 = vpop.f32.mrf.mxu1 }
 0x2b0   :  { %v1435_v5 = vadd.f32 %v1261_v12, %v1149_v49  ;;  %v1436_v21 = vadd.f32 %v1362_v22, %v1150_v47  ;;  %1838 = vmatpush.msrb.mxu3 %v1654_v17  ;;  %v5076_v53 = vpop.f32.mrf.mxu3  ;;  %v6129_v17 = vld [vmem:[#allocation9_spill] sm:$0xff] }
 0x2b2   :  { %v1497_v30 = vadd.f32 %v4724_v32, %v1435_v5  ;;  %v1498_v15 = vadd.f32 %v4727_v38, %v1436_v21  ;;  %3026 = vmatmul.msk.f32.gmra.mxu0 %vm119_vm0, %v69_v6  ;;  %3054 = vmatmul.msk.f32.gmra.mxu1 %vm119_vm0, %v69_v6  ;;  %v5074_v6 = vpop.f32.mrf.mxu2 }
 0x2b3   :  { %1839 = vmatpush.msrb.mxu3 %v1652_v61  ;;  %v872_v61 = vadd.f32 %v6130_v16, %v6129_v17  ;;  %v1635_v17 = vld [vmem:[%s6039_s3 + $0x30] sm:$0xff]  ;;  %v1636_v16 = vld [vmem:[%s6039_s3 + $0x38] sm:$0xff] }
 0x2b4   :  { %v1553_v52 = vmax.f32 %v1497_v30, 0.0  ;;  %v1554_v40 = vmax.f32 %v1498_v15, 0.0  ;;  %v6123_v15 = vld [vmem:[#allocation6_spill] sm:$0xff] }
 0x2b5   :  { %1840 = vmatpush.msrb.mxu3 %v1650_v27  ;;  %v1158_v24 = vadd.f32 %v5022_v59, %v872_v61 }
 0x2b6   :  { %v1597_v4 = vmax.f32 %v1551_v42, %v1553_v52  ;;  %v1598_v7 = vmax.f32 %v1552_v43, %v1554_v40  ;;  %v6124_v42 = vld [vmem:[#allocation38_spill] sm:$0xff]  ;;  %v6125_v52 = vld [vmem:[#allocation7_spill] sm:$0xff] }
 0x2b7   :  { %v1264_v13 = vpop.f32.mrf.mxu0  ;;  %v1365_v63 = vpop.f32.mrf.mxu1  ;;  %v869_v43 = vadd.f32 %v6124_v42, %v6123_v15  ;;  %v6126_v40 = vld [vmem:[#allocation39_spill] sm:$0xff]  ;;  %v1639_v15 = vld [vmem:[%s6039_s3 + $0x50] sm:$0xff]  ;;  %v1640_v42 = vld [vmem:[%s6039_s3 + $0x58] sm:$0xff] }
 0x2b8   :  { %v5032_v33 = vmax.f32 %v1597_v4, %v1598_v7  ;;  %v1437_v25 = vadd.f32 %v1264_v13, %v1151_v1  ;;  %v1438_v50 = vadd.f32 %v1365_v63, %v1152_v57  ;;  %v870_v4 = vadd.f32 %v6126_v40, %v6125_v52  ;;  %v1647_v13 = vld [vmem:[%s6039_s3 + $0x90] sm:$0xff]  ;;  %v1648_v63 = vld [vmem:[%s6039_s3 + $0x98] sm:$0xff]  ;;  %v5116_v34 = vpop.f32.mrf.mxu3 }
 0x2b9   :  { %1794 = vmatpush.msrb.mxu2 %v1647_v13  ;;  %1841 = vmatpush.msrb.mxu3 %v1648_v63  ;;  %v1155_v60 = vadd.f32 %v4977_v62, %v869_v43  ;;  %v1643_v62 = vld [vmem:[%s6039_s3 + $0x70] sm:$0xff] }
 0x2ba   :  { %1722 = vmatmul.f32.gmra.mxu2 %v5032_v33  ;;  %1769 = vmatmul.f32.gmra.mxu3 %v5032_v33  ;;  %v1499_v35 = vadd.f32 %v4724_v32, %v1437_v25  ;;  %v1500_v28 = vadd.f32 %v4727_v38, %v1438_v50  ;;  %v1156_v56 = vadd.f32 %v4979_v45, %v870_v4  ;;  %v1644_v45 = vld [vmem:[%s6039_s3 + $0x78] sm:$0xff]  ;;  %v5114_v48 = vpop.f32.mrf.mxu2  ;;  %v6136_v13 = vld [vmem:[#allocation44_spill] sm:$0xff] }
 0x2bb   :  { %2078 = vmatmul.f32.vlgmr.msrb.gmra.mxu0 %v4932_v36  ;;  %2125 = vmatmul.f32.vlgmr.msrb.gmra.mxu1 %v4932_v36 }
 0x2bc   :  { %v1555_v14 = vmax.f32 %v1499_v35, 0.0  ;;  %v1556_v18 = vmax.f32 %v1500_v28, 0.0  ;;  %1795 = vmatpush.msrb.mxu2 %v1645_v23  ;;  %1842 = vmatpush.msrb.mxu3 %v1646_v37  ;;  %v6137_v23 = vld [vmem:[#allocation13_spill] sm:$0xff] }
 0x2bd   :  { %v6138_v37 = vld [vmem:[#allocation45_spill] sm:$0xff] }
 0x2be   :  { %1796 = vmatpush.msrb.mxu2 %v1643_v62  ;;  %1843 = vmatpush.msrb.mxu3 %v1644_v45 }
 0x2bf   :  { %v1267_v46 = vpop.f32.mrf.mxu0  ;;  %v1368_v44 = vpop.f32.mrf.mxu1 }
 0x2c0   :  { %v1439_v58 = vadd.f32 %v1267_v46, %v1153_v11  ;;  %v1440_v39 = vadd.f32 %v1368_v44, %v1154_v51  ;;  %v1100_v40 = vpop.f32.mrf.mxu3 }
 0x2c2   :  { %v1501_v49 = vadd.f32 %v4724_v32, %v1439_v58  ;;  %v1502_v47 = vadd.f32 %v4727_v38, %v1440_v39  ;;  %v6131_v58 = vld [vmem:[#allocation10_spill] sm:$0xff]  ;;  %v999_v52 = vpop.f32.mrf.mxu2 }
 0x2c3   :  { %2081 = vmatmul.f32.gmra.mxu0 %v4981_v3  ;;  %2128 = vmatmul.f32.gmra.mxu1 %v4981_v3  ;;  %v6132_v39 = vld [vmem:[#allocation42_spill] sm:$0xff] }
 0x2c4   :  { %v1557_v12 = vmax.f32 %v1501_v49, 0.0  ;;  %v1558_v22 = vmax.f32 %v1502_v47, 0.0  ;;  %v873_v49 = vadd.f32 %v6132_v39, %v6131_v58 }
 0x2c6   :  { %v1599_v31 = vmax.f32 %v1555_v14, %v1557_v12  ;;  %v1600_v5 = vmax.f32 %v1556_v18, %v1558_v22  ;;  %v6133_v18 = vld [vmem:[#allocation11_spill] sm:$0xff] }
 0x2c7   :  { %v1270_v21 = vpop.f32.mrf.mxu0  ;;  %v1371_v30 = vpop.f32.mrf.mxu1  ;;  %v6134_v12 = vld [vmem:[#allocation43_spill] sm:$0xff] }
 0x2c8   :  { %v5082_v7 = vmax.f32 %v1599_v31, %v1600_v5  ;;  %v1441_v1 = vadd.f32 %v1270_v21, %v1155_v60  ;;  %v1442_v57 = vadd.f32 %v1371_v30, %v1156_v56  ;;  %v874_v22 = vadd.f32 %v6134_v12, %v6133_v18  ;;  %v1641_v5 = vld [vmem:[%s6039_s3 + $0x60] sm:$0xff]  ;;  %v1642_v21 = vld [vmem:[%s6039_s3 + $0x68] sm:$0xff]  ;;  %v6143_v12 = vld [vmem:[#allocation16_spill] sm:$0xff] }
 0x2c9   :  { %v1159_v30 = vadd.f32 %v5056_v9, %v873_v49  ;;  %1797 = vmatpush.msrb.mxu2 %v1641_v5  ;;  %1844 = vmatpush.msrb.mxu3 %v1642_v21  ;;  %v6135_v9 = vld [vmem:[#allocation12_spill] sm:$0xff]  ;;  %v876_v60 = vadd.f32 %v6138_v37, %v6137_v23  ;;  %v1633_v49 = vld [vmem:[%s6039_s3 + $0x20] sm:$0xff]  ;;  %v6145_v21 = vld [vmem:[#allocation17_spill] sm:$0xff] }
 0x2ca   :  { %1725 = vmatmul.f32.gmra.mxu2 %v5082_v7  ;;  %1772 = vmatmul.f32.gmra.mxu3 %v5082_v7  ;;  %v1503_v25 = vadd.f32 %v4724_v32, %v1441_v1  ;;  %v1504_v50 = vadd.f32 %v4727_v38, %v1442_v57  ;;  %v1160_v43 = vadd.f32 %v5058_v54, %v874_v22  ;;  %v1637_v54 = vld [vmem:[%s6039_s3 + $0x40] sm:$0xff]  ;;  %v6144_v22 = vld [vmem:[#allocation48_spill] sm:$0xff]  ;;  %v1630_v37 = vld [vmem:[%s6039_s3 + $0x8] sm:$0xff] }
 0x2cb   :  { %2084 = vmatmul.f32.gmra.mxu0 %v5032_v33  ;;  %2131 = vmatmul.f32.gmra.mxu1 %v5032_v33  ;;  %v875_v63 = vadd.f32 %v6136_v13, %v6135_v9  ;;  %v1162_v55 = vadd.f32 %v5076_v53, %v876_v60  ;;  %v879_v5 = vadd.f32 %v6144_v22, %v6143_v12  ;;  %v1629_v23 = vld [vmem:[%s6039_s3] sm:$0xff]  ;;  %v3113_v22 = vld [vmem:[%s6039_s3 + $0x2d0] sm:$0xff] }
 0x2cc   :  { %v1559_v59 = vmax.f32 %v1503_v25, 0.0  ;;  %v1560_v51 = vmax.f32 %v1504_v50, 0.0  ;;  %1798 = vmatpush.msrb.mxu2 %v1639_v15  ;;  %1845 = vmatpush.msrb.mxu3 %v1640_v42 }
 0x2cd   :  { %v1161_v41 = vadd.f32 %v5074_v6, %v875_v63 }
 0x2ce   :  { %1799 = vmatpush.msrb.mxu2 %v1637_v54  ;;  %1846 = vmatpush.msrb.mxu3 %v1638_v0 }
 0x2cf   :  { %v1273_v19 = vpop.f32.mrf.mxu0  ;;  %v1374_v20 = vpop.f32.mrf.mxu1 }
 0x2d0   :  { %v1443_v26 = vadd.f32 %v1273_v19, %v1157_v29  ;;  %v1444_v27 = vadd.f32 %v1374_v20, %v1158_v24  ;;  %1800 = vmatpush.msrb.mxu2 %v1635_v17  ;;  %1847 = vmatpush.msrb.mxu3 %v1636_v16  ;;  %v5170_v24 = vpop.f32.mrf.mxu2  ;;  %v5172_v19 = vpop.f32.mrf.mxu3 }
 0x2d2   :  { %v1505_v11 = vadd.f32 %v4724_v32, %v1443_v26  ;;  %v1506_v10 = vadd.f32 %v4727_v38, %v1444_v27  ;;  %1801 = vmatpush.msrb.mxu2 %v1633_v49  ;;  %v6153_v49 = vld [vmem:[#allocation21_spill] sm:$0xff] }
 0x2d3   :  { %2087 = vmatmul.f32.gmra.mxu0 %v5082_v7  ;;  %2134 = vmatmul.f32.gmra.mxu1 %v5082_v7 }
 0x2d4   :  { %v1561_v46 = vmax.f32 %v1505_v11, 0.0  ;;  %v1562_v44 = vmax.f32 %v1506_v10, 0.0 }
 0x2d6   :  { %v1601_v35 = vmax.f32 %v1559_v59, %v1561_v46  ;;  %v1602_v28 = vmax.f32 %v1560_v51, %v1562_v44  ;;  %v6139_v51 = vld [vmem:[#allocation14_spill] sm:$0xff] }
 0x2d7   :  { %v1276_v47 = vpop.f32.mrf.mxu0  ;;  %v1377_v14 = vpop.f32.mrf.mxu1  ;;  %v6140_v46 = vld [vmem:[#allocation46_spill] sm:$0xff] }
 0x2d8   :  { %v5128_v31 = vmax.f32 %v1601_v35, %v1602_v28  ;;  %v1445_v4 = vadd.f32 %v1276_v47, %v1159_v30  ;;  %v1446_v56 = vadd.f32 %v1377_v14, %v1160_v43  ;;  %v877_v44 = vadd.f32 %v6140_v46, %v6139_v51  ;;  %v6141_v35 = vld [vmem:[#allocation15_spill] sm:$0xff]  ;;  %v6146_v30 = vld [vmem:[#allocation49_spill] sm:$0xff]  ;;  %v1005_v13 = vpop.f32.mrf.mxu2  ;;  %v1106_v63 = vpop.f32.mrf.mxu3 }
 0x2d9   :  { %v6142_v28 = vld [vmem:[#allocation47_spill] sm:$0xff]  ;;  %v880_v15 = vadd.f32 %v6146_v30, %v6145_v21  ;;  %v3118_v51 = vld [vmem:[%s6039_s3 + $0x2f8] sm:$0xff] }
 0x2da   :  { %1728 = vmatmul.f32.gmra.mxu2 %v5128_v31  ;;  %1775 = vmatmul.f32.gmra.mxu3 %v5128_v31  ;;  %v1507_v61 = vadd.f32 %v4724_v32, %v1445_v4  ;;  %v1508_v62 = vadd.f32 %v4727_v38, %v1446_v56  ;;  %v878_v58 = vadd.f32 %v6142_v28, %v6141_v35  ;;  %v1634_v47 = vld [vmem:[%s6039_s3 + $0x28] sm:$0xff]  ;;  %v6151_v35 = vld [vmem:[#allocation20_spill] sm:$0xff] }
 0x2db   :  { %2090 = vmatmul.f32.gmra.mxu0 %v5128_v31  ;;  %2137 = vmatmul.f32.gmra.mxu1 %v5128_v31  ;;  %v1163_v14 = vadd.f32 %v5114_v48, %v877_v44  ;;  %v1631_v48 = vld [vmem:[%s6039_s3 + $0x10] sm:$0xff]  ;;  %v1165_v4 = vadd.f32 %v999_v52, %v879_v5  ;;  %v1166_v9 = vadd.f32 %v1100_v40, %v880_v15  ;;  %v3114_v5 = vld [vmem:[%s6039_s3 + $0x2d8] sm:$0xff] }
 0x2dc   :  { %v1563_v20 = vmax.f32 %v1507_v61, 0.0  ;;  %v1564_v25 = vmax.f32 %v1508_v62, 0.0  ;;  %1848 = vmatpush.msrb.mxu3 %v1634_v47  ;;  %v1164_v18 = vadd.f32 %v5116_v34, %v878_v58  ;;  %v1632_v34 = vld [vmem:[%s6039_s3 + $0x18] sm:$0xff]  ;;  %1802 = vmatpush.msrb.mxu2 %v1631_v48  ;;  %v6152_v28 = vld [vmem:[#allocation52_spill] sm:$0xff] }
 0x2dd   :  { %v883_v58 = vadd.f32 %v6152_v28, %v6151_v35  ;;  %v6154_v47 = vld [vmem:[#allocation53_spill] sm:$0xff] }
 0x2de   :  { %1849 = vmatpush.msrb.mxu3 %v1632_v34  ;;  %1803 = vmatpush.msrb.mxu2 %v1629_v23 }
 0x2df   :  { %v1279_v1 = vpop.f32.mrf.mxu0  ;;  %v1380_v57 = vpop.f32.mrf.mxu1  ;;  %v1169_v21 = vadd.f32 %v1005_v13, %v883_v58 }
 0x2e0   :  { %v1447_v45 = vadd.f32 %v1279_v1, %v1161_v41  ;;  %v1448_v6 = vadd.f32 %v1380_v57, %v1162_v55  ;;  %1850 = vmatpush.msrb.mxu3 %v1630_v37 }
 0x2e2   :  { %v1509_v53 = vadd.f32 %v4724_v32, %v1447_v45  ;;  %v1510_v29 = vadd.f32 %v4727_v38, %v1448_v6  ;;  %1962 = vmatpush.msra.mxu3 %v3118_v51  ;;  %v6161_v51 = vld [vmem:[#allocation25_spill] sm:$0xff] }
 0x2e4   :  { %v1565_v50 = vmax.f32 %v1509_v53, 0.0  ;;  %v1566_v26 = vmax.f32 %v1510_v29, 0.0  ;;  %v6147_v53 = vld [vmem:[#allocation18_spill] sm:$0xff] }
 0x2e5   :  { %v6148_v29 = vld [vmem:[#allocation50_spill] sm:$0xff] }
 0x2e6   :  { %v1603_v27 = vmax.f32 %v1563_v20, %v1565_v50  ;;  %v1604_v11 = vmax.f32 %v1564_v25, %v1566_v26  ;;  %v881_v20 = vadd.f32 %v6148_v29, %v6147_v53  ;;  %v6149_v25 = vld [vmem:[#allocation19_spill] sm:$0xff]  ;;  %v3109_v53 = vld [vmem:[%s6039_s3 + $0x2b0] sm:$0xff]  ;;  %v3110_v29 = vld [vmem:[%s6039_s3 + $0x2b8] sm:$0xff] }
 0x2e7   :  { %v1282_v10 = vpop.f32.mrf.mxu0  ;;  %v1383_v59 = vpop.f32.mrf.mxu1  ;;  %v6150_v50 = vld [vmem:[#allocation51_spill] sm:$0xff] }
 0x2e8   :  { %v5178_v39 = vmax.f32 %v1603_v27, %v1604_v11  ;;  %v1449_v42 = vadd.f32 %v1282_v10, %v1163_v14  ;;  %v1450_v43 = vadd.f32 %v1383_v59, %v1164_v18  ;;  %v882_v26 = vadd.f32 %v6150_v50, %v6149_v25  ;;  %v1008_v27 = vpop.f32.mrf.mxu2  ;;  %v1109_v11 = vpop.f32.mrf.mxu3  ;;  %v3117_v59 = vld [vmem:[%s6039_s3 + $0x2f0] sm:$0xff] }
 0x2e9   :  { %1915 = vmatpush.msra.mxu2 %v3117_v59  ;;  %v1167_v46 = vadd.f32 %v5170_v24, %v881_v20  ;;  %v884_v14 = vadd.f32 %v6154_v47, %v6153_v49  ;;  %v3115_v24 = vld [vmem:[%s6039_s3 + $0x2e0] sm:$0xff]  ;;  %v6159_v50 = vld [vmem:[#allocation24_spill] sm:$0xff] }
 0x2ea   :  { %1731 = vmatmul.f32.gmra.mxu2 %v5178_v39  ;;  %1778 = vmatmul.f32.gmra.mxu3 %v5178_v39  ;;  %v1511_v54 = vadd.f32 %v4724_v32, %v1449_v42  ;;  %v1512_v0 = vadd.f32 %v4727_v38, %v1450_v43  ;;  %v1168_v44 = vadd.f32 %v5172_v19, %v882_v26  ;;  %v3116_v19 = vld [vmem:[%s6039_s3 + $0x2e8] sm:$0xff]  ;;  %v6160_v26 = vld [vmem:[#allocation56_spill] sm:$0xff] }
 0x2eb   :  { %2093 = vmatmul.f32.gmra.mxu0 %v5178_v39  ;;  %2140 = vmatmul.f32.gmra.mxu1 %v5178_v39  ;;  %v1170_v30 = vadd.f32 %v1106_v63, %v884_v14  ;;  %v887_v59 = vadd.f32 %v6160_v26, %v6159_v50  ;;  %v6171_v50 = vld [vmem:[#allocation61_spill] sm:$0xff] }
 0x2ec   :  { %v1567_v17 = vmax.f32 %v1511_v54, 0.0  ;;  %v1568_v16 = vmax.f32 %v1512_v0, 0.0  ;;  %1916 = vmatpush.msra.mxu2 %v3115_v24  ;;  %1963 = vmatpush.msra.mxu3 %v3116_v19 }
 0x2ee   :  { %1917 = vmatpush.msra.mxu2 %v3113_v22  ;;  %1964 = vmatpush.msra.mxu3 %v3114_v5 }
 0x2ef   :  { %v1285_v60 = vpop.f32.mrf.mxu0  ;;  %v1386_v56 = vpop.f32.mrf.mxu1 }
 0x2f0   :  { %v1451_v52 = vadd.f32 %v1285_v60, %v1165_v4  ;;  %v1452_v40 = vadd.f32 %v1386_v56, %v1166_v9  ;;  %v1011_v9 = vpop.f32.mrf.mxu2  ;;  %v1112_v23 = vpop.f32.mrf.mxu3 }
 0x2f1   :  { %v1173_v47 = vadd.f32 %v1011_v9, %v887_v59 }
 0x2f2   :  { %v1513_v41 = vadd.f32 %v4724_v32, %v1451_v52  ;;  %v1514_v55 = vadd.f32 %v4727_v38, %v1452_v40 }
 0x2f4   :  { %v1569_v61 = vmax.f32 %v1513_v41, 0.0  ;;  %v1570_v1 = vmax.f32 %v1514_v55, 0.0  ;;  %v6155_v55 = vld [vmem:[#allocation22_spill] sm:$0xff] }
 0x2f6   :  { %v1605_v57 = vmax.f32 %v1567_v17, %v1569_v61  ;;  %v1606_v62 = vmax.f32 %v1568_v16, %v1570_v1  ;;  %v6156_v17 = vld [vmem:[#allocation54_spill] sm:$0xff]  ;;  %v6157_v61 = vld [vmem:[#allocation23_spill] sm:$0xff] }
 0x2f7   :  { %v1288_v45 = vpop.f32.mrf.mxu0  ;;  %v1389_v6 = vpop.f32.mrf.mxu1  ;;  %v885_v16 = vadd.f32 %v6156_v17, %v6155_v55  ;;  %v6158_v1 = vld [vmem:[#allocation55_spill] sm:$0xff] }
 0x2f8   :  { %v5216_v10 = vmax.f32 %v1605_v57, %v1606_v62  ;;  %v1453_v18 = vadd.f32 %v1288_v45, %v1167_v46  ;;  %v1454_v12 = vadd.f32 %v1389_v6, %v1168_v44  ;;  %v886_v57 = vadd.f32 %v6158_v1, %v6157_v61  ;;  %v3111_v45 = vld [vmem:[%s6039_s3 + $0x2c0] sm:$0xff]  ;;  %v3112_v6 = vld [vmem:[%s6039_s3 + $0x2c8] sm:$0xff]  ;;  %v6162_v46 = vld [vmem:[#allocation57_spill] sm:$0xff]  ;;  %v1014_v35 = vpop.f32.mrf.mxu2  ;;  %v1115_v28 = vpop.f32.mrf.mxu3 }
 0x2f9   :  { %1918 = vmatpush.msra.mxu2 %v3111_v45  ;;  %1965 = vmatpush.msra.mxu3 %v3112_v6  ;;  %v1171_v20 = vadd.f32 %v1008_v27, %v885_v16  ;;  %v888_v44 = vadd.f32 %v6162_v46, %v6161_v51  ;;  %v3107_v27 = vld [vmem:[%s6039_s3 + $0x2a0] sm:$0xff]  ;;  %v6166_v55 = vld [vmem:[#allocation27_spill] sm:$0xff]  ;;  %v3101_v45 = vld [vmem:[%s6039_s3 + $0x270] sm:$0xff] }
 0x2fa   :  { %1734 = vmatmul.f32.gmra.mxu2 %v5216_v10  ;;  %1781 = vmatmul.f32.gmra.mxu3 %v5216_v10  ;;  %v1515_v43 = vadd.f32 %v4724_v32, %v1453_v18  ;;  %v1516_v48 = vadd.f32 %v4727_v38, %v1454_v12  ;;  %v1172_v25 = vadd.f32 %v1109_v11, %v886_v57  ;;  %v3108_v11 = vld [vmem:[%s6039_s3 + $0x2a8] sm:$0xff]  ;;  %v3102_v6 = vld [vmem:[%s6039_s3 + $0x278] sm:$0xff]  ;;  %v3099_v51 = vld [vmem:[%s6039_s3 + $0x260] sm:$0xff] }
 0x2fb   :  { %2096 = vmatmul.f32.gmra.mxu0 %v5216_v10  ;;  %2143 = vmatmul.f32.gmra.mxu1 %v5216_v10  ;;  %v1174_v14 = vadd.f32 %v1112_v23, %v888_v44  ;;  %v6167_v17 = vld [vmem:[#allocation59_spill] sm:$0xff] }
 0x2fc   :  { %v1571_v56 = vmax.f32 %v1515_v43, 0.0  ;;  %v1572_v54 = vmax.f32 %v1516_v48, 0.0  ;;  %1919 = vmatpush.msra.mxu2 %v3109_v53  ;;  %1966 = vmatpush.msra.mxu3 %v3110_v29  ;;  %v890_v16 = vadd.f32 %v6167_v17, %v6166_v55  ;;  %v6168_v53 = vld [vmem:[#allocation28_spill] sm:$0xff]  ;;  %v3100_v46 = vld [vmem:[%s6039_s3 + $0x268] sm:$0xff] }
 0x2fd   :  { %v6169_v29 = vld [vmem:[#allocation60_spill] sm:$0xff] }
 0x2fe   :  { %1920 = vmatpush.msra.mxu2 %v3107_v27  ;;  %1967 = vmatpush.msra.mxu3 %v3108_v11  ;;  %v1176_v57 = vadd.f32 %v1115_v28, %v890_v16  ;;  %v6176_v55 = vld [vmem:[#allocation32_spill] sm:$0xff] }
 0x2ff   :  { %v1291_v15 = vpop.f32.mrf.mxu0  ;;  %v1392_v42 = vpop.f32.mrf.mxu1  ;;  %v6177_v17 = vld [vmem:[#allocation64_spill] sm:$0xff] }
 0x300   :  { %v1455_v34 = vadd.f32 %v1291_v15, %v1169_v21  ;;  %v1456_v4 = vadd.f32 %v1392_v42, %v1170_v30  ;;  %v6163_v15 = vld [vmem:[#allocation66_spill] sm:$0xff]  ;;  %v1118_v9 = vpop.f32.mrf.mxu3  ;;  %v895_v16 = vadd.f32 %v6177_v17, %v6176_v55  ;;  %v3169_v55 = vld [vmem:[%s6039_s3 + $0x490] sm:$0xff]  ;;  %v3170_v17 = vld [vmem:[%s6039_s3 + $0x498] sm:$0xff] }
 0x302   :  { %v1517_v37 = vadd.f32 %v4724_v32, %v1455_v34  ;;  %v1518_v60 = vadd.f32 %v4727_v38, %v1456_v4  ;;  %v1017_v4 = vpop.f32.mrf.mxu2 }
 0x304   :  { %v1573_v13 = vmax.f32 %v1517_v37, 0.0  ;;  %v1574_v63 = vmax.f32 %v1518_v60, 0.0  ;;  %v3105_v60 = vld [vmem:[%s6039_s3 + $0x290] sm:$0xff] }
 0x305   :  { %1921 = vmatpush.msra.mxu2 %v3105_v60  ;;  %v6175_v60 = vld [vmem:[#allocation63_spill] sm:$0xff] }
 0x306   :  { %v1607_v0 = vmax.f32 %v1571_v56, %v1573_v13  ;;  %v1608_v52 = vmax.f32 %v1572_v54, %v1574_v63  ;;  %v3106_v56 = vld [vmem:[%s6039_s3 + $0x298] sm:$0xff]  ;;  %v3103_v54 = vld [vmem:[%s6039_s3 + $0x280] sm:$0xff] }
 0x307   :  { %v1294_v40 = vpop.f32.mrf.mxu0  ;;  %v1395_v41 = vpop.f32.mrf.mxu1  ;;  %1968 = vmatpush.msra.mxu3 %v3106_v56  ;;  %1922 = vmatpush.msra.mxu2 %v3103_v54 }
 0x308   :  { %v5254_v62 = vmax.f32 %v1607_v0, %v1608_v52  ;;  %v1457_v58 = vadd.f32 %v1294_v40, %v1171_v20  ;;  %v1458_v49 = vadd.f32 %v1395_v41, %v1172_v25  ;;  %v3104_v0 = vld [vmem:[%s6039_s3 + $0x288] sm:$0xff]  ;;  %v6164_v52 = vld [vmem:[#allocation26_spill] sm:$0xff]  ;;  %v891_v20 = vadd.f32 %v6169_v29, %v6168_v53  ;;  %v6170_v25 = vld [vmem:[#allocation29_spill] sm:$0xff] }
 0x309   :  { %v6165_v40 = vld [vmem:[#allocation58_spill] sm:$0xff]  ;;  %1969 = vmatpush.msra.mxu3 %v3104_v0  ;;  %v892_v26 = vadd.f32 %v6171_v50, %v6170_v25  ;;  %1923 = vmatpush.msra.mxu2 %v3101_v45  ;;  %v3093_v29 = vld [vmem:[%s6039_s3 + $0x230] sm:$0xff] }
 0x30a   :  { %1737 = vmatmul.f32.gmra.mxu2 %v5254_v62  ;;  %1784 = vmatmul.f32.gmra.mxu3 %v5254_v62  ;;  %v1519_v24 = vadd.f32 %v4724_v32, %v1457_v58  ;;  %v1520_v19 = vadd.f32 %v4727_v38, %v1458_v49  ;;  %v889_v41 = vadd.f32 %v6165_v40, %v6164_v52 }
 0x30b   :  { %2099 = vmatmul.f32.gmra.mxu0 %v5254_v62  ;;  %2146 = vmatmul.f32.gmra.mxu1 %v5254_v62  ;;  %v1177_v44 = vadd.f32 %v1017_v4, %v891_v20  ;;  %v6172_v4 = vld [vmem:[#allocation30_spill] sm:$0xff]  ;;  %v3094_v20 = vld [vmem:[%s6039_s3 + $0x238] sm:$0xff] }
 0x30c   :  { %v1575_v42 = vmax.f32 %v1519_v24, 0.0  ;;  %v1576_v43 = vmax.f32 %v1520_v19, 0.0  ;;  %v1175_v1 = vadd.f32 %v1014_v35, %v889_v41  ;;  %1970 = vmatpush.msra.mxu3 %v3102_v6  ;;  %v1178_v35 = vadd.f32 %v1118_v9, %v892_v26  ;;  %1924 = vmatpush.msra.mxu2 %v3099_v51  ;;  %v3097_v19 = vld [vmem:[%s6039_s3 + $0x250] sm:$0xff]  ;;  %v6173_v9 = vld [vmem:[#allocation62_spill] sm:$0xff] }
 0x30e   :  { %1971 = vmatpush.msra.mxu3 %v3100_v46  ;;  %1925 = vmatpush.msra.mxu2 %v3097_v19  ;;  %v3087_v19 = vld [vmem:[%s6039_s3 + $0x200] sm:$0xff] }
 0x30f   :  { %v1297_v18 = vpop.f32.mrf.mxu0  ;;  %v1398_v12 = vpop.f32.mrf.mxu1 }
 0x310   :  { %v1459_v22 = vadd.f32 %v1297_v18, %v1173_v47  ;;  %v1460_v5 = vadd.f32 %v1398_v12, %v1174_v14  ;;  %v1020_v14 = vpop.f32.mrf.mxu2  ;;  %v1121_v18 = vpop.f32.mrf.mxu3 }
 0x312   :  { %v1521_v21 = vadd.f32 %v4724_v32, %v1459_v22  ;;  %v1522_v30 = vadd.f32 %v4727_v38, %v1460_v5  ;;  %1804 = vmatmul.f32.vlgmr.msrb.gmra.mxu2 %v6163_v15  ;;  %1851 = vmatmul.f32.vlgmr.msrb.gmra.mxu3 %v6163_v15  ;;  %v3098_v22 = vld [vmem:[%s6039_s3 + $0x258] sm:$0xff] }
 0x313   :  { %1972 = vmatpush.msra.mxu3 %v3098_v22  ;;  %v3088_v22 = vld [vmem:[%s6039_s3 + $0x208] sm:$0xff] }
 0x314   :  { %v1577_v48 = vmax.f32 %v1521_v21, 0.0  ;;  %v1578_v34 = vmax.f32 %v1522_v30, 0.0 }
 0x316   :  { %v1609_v23 = vmax.f32 %v1575_v42, %v1577_v48  ;;  %v1610_v37 = vmax.f32 %v1576_v43, %v1578_v34 }
 0x317   :  { %v1300_v13 = vpop.f32.mrf.mxu0  ;;  %v1401_v63 = vpop.f32.mrf.mxu1 }
 0x318   :  { %v5304_v61 = vmax.f32 %v1609_v23, %v1610_v37  ;;  %v1461_v59 = vadd.f32 %v1300_v13, %v1175_v1  ;;  %v893_v23 = vadd.f32 %v6173_v9, %v6172_v4  ;;  %v6174_v37 = vld [vmem:[#allocation31_spill] sm:$0xff]  ;;  %v3095_v13 = vld [vmem:[%s6039_s3 + $0x240] sm:$0xff]  ;;  %v1023_v40 = vpop.f32.mrf.mxu2  ;;  %v1124_v41 = vpop.f32.mrf.mxu3  ;;  %v6178_v1 = vld [vmem:[#allocation33_spill] sm:$0xff] }
 0x319   :  { %v894_v56 = vadd.f32 %v6175_v60, %v6174_v37  ;;  %1926 = vmatpush.msra.mxu2 %v3095_v13  ;;  %v1181_v25 = vadd.f32 %v1023_v40, %v895_v16  ;;  %v3176_v37 = vld [vmem:[%s6039_s3 + $0x4c8] sm:$0xff]  ;;  %v3173_v60 = vld [vmem:[%s6039_s3 + $0x4b0] sm:$0xff]  ;;  %v3167_v16 = vld [vmem:[%s6039_s3 + $0x480] sm:$0xff] }
 0x31a   :  { %1807 = vmatmul.f32.gmra.mxu2 %v4776_v8  ;;  %1854 = vmatmul.f32.gmra.mxu3 %v4776_v8  ;;  %v1462_v8 = vadd.f32 %v1401_v63, %v1176_v57  ;;  %v1523_v49 = vadd.f32 %v4724_v32, %v1461_v59  ;;  %v3096_v63 = vld [vmem:[%s6039_s3 + $0x248] sm:$0xff]  ;;  %v1179_v0 = vadd.f32 %v1020_v14, %v893_v23  ;;  %v6179_v57 = vld [vmem:[#allocation65_spill] sm:$0xff]  ;;  %v3175_v23 = vld [vmem:[%s6039_s3 + $0x4c0] sm:$0xff] }
 0x31b   :  { %2102 = vmatmul.f32.gmra.mxu0 %v5304_v61  ;;  %2149 = vmatmul.f32.gmra.mxu1 %v5304_v61  ;;  %v1180_v52 = vadd.f32 %v1121_v18, %v894_v56  ;;  %v896_v45 = vadd.f32 %v6179_v57, %v6178_v1  ;;  %v3089_v18 = vld [vmem:[%s6039_s3 + $0x210] sm:$0xff]  ;;  %v3174_v56 = vld [vmem:[%s6039_s3 + $0x4b8] sm:$0xff]  ;;  %v3168_v1 = vld [vmem:[%s6039_s3 + $0x488] sm:$0xff] }
 0x31c   :  { %v1524_v27 = vadd.f32 %v4727_v38, %v1462_v8  ;;  %v1579_v5 = vmax.f32 %v1523_v49, 0.0  ;;  %1973 = vmatpush.msra.mxu3 %v3096_v63  ;;  %1927 = vmatpush.msra.mxu2 %v3093_v29  ;;  %v3092_v49 = vld [vmem:[%s6039_s3 + $0x228] sm:$0xff] }
 0x31d   :  { %v1182_v50 = vadd.f32 %v1124_v41, %v896_v45 }
 0x31e   :  { %v1580_v21 = vmax.f32 %v1524_v27, 0.0  ;;  %1974 = vmatpush.msra.mxu3 %v3094_v20  ;;  %v3163_v20 = vld [vmem:[%s6039_s3 + $0x460] sm:$0xff] }
 0x31f   :  { %v1303_v28 = vpop.f32.mrf.mxu0  ;;  %v1404_v58 = vpop.f32.mrf.mxu1 }
 0x320   :  { %v1463_v11 = vadd.f32 %v1303_v28, %v1177_v44  ;;  %v1464_v47 = vadd.f32 %v1404_v58, %v1178_v35  ;;  %v3091_v58 = vld [vmem:[%s6039_s3 + $0x220] sm:$0xff]  ;;  %1975 = vmatpush.msra.mxu3 %v3092_v49  ;;  %v3156_v49 = vld [vmem:[%s6039_s3 + $0x428] sm:$0xff] }
 0x321   :  { %1928 = vmatpush.msra.mxu2 %v3091_v58  ;;  %v3155_v58 = vld [vmem:[%s6039_s3 + $0x420] sm:$0xff] }
 0x322   :  { %v1525_v12 = vadd.f32 %v4724_v32, %v1463_v11  ;;  %v1526_v24 = vadd.f32 %v4727_v38, %v1464_v47  ;;  %1810 = vmatmul.f32.gmra.mxu2 %v4852_v2  ;;  %1857 = vmatmul.f32.gmra.mxu3 %v4852_v2 }
 0x323   :  { %1929 = vmatpush.msra.mxu2 %v3089_v18  ;;  %v3151_v18 = vld [vmem:[%s6039_s3 + $0x400] sm:$0xff] }
 0x324   :  { %v1581_v30 = vmax.f32 %v1525_v12, 0.0  ;;  %v1582_v15 = vmax.f32 %v1526_v24, 0.0  ;;  %v3090_v12 = vld [vmem:[%s6039_s3 + $0x218] sm:$0xff] }
 0x325   :  { %1976 = vmatpush.msra.mxu3 %v3090_v12  ;;  %1930 = vmatpush.msra.mxu2 %v3087_v19  ;;  %v3152_v12 = vld [vmem:[%s6039_s3 + $0x408] sm:$0xff] }
 0x326   :  { %v1611_v42 = vmax.f32 %v1579_v5, %v1581_v30  ;;  %v1612_v43 = vmax.f32 %v1580_v21, %v1582_v15  ;;  %v3181_v5 = vld [vmem:[%s6039_s3 + $0x4f0] sm:$0xff]  ;;  %v3182_v21 = vld [vmem:[%s6039_s3 + $0x4f8] sm:$0xff]  ;;  %v5400_v30 = vpop.f32.mrf.mxu2  ;;  %v5402_v15 = vpop.f32.mrf.mxu3 }
 0x327   :  { %v1306_v48 = vpop.f32.mrf.mxu0  ;;  %v1407_v34 = vpop.f32.mrf.mxu1  ;;  %1977 = vmatpush.msra.mxu3 %v3088_v22  ;;  %2209 = vmatpush.msrb.mxu2 %v3181_v5 }
 0x328   :  { %v5342_v54 = vmax.f32 %v1611_v42, %v1612_v43  ;;  %v1465_v6 = vadd.f32 %v1306_v48, %v1179_v0  ;;  %v1466_v53 = vadd.f32 %v1407_v34, %v1180_v52  ;;  %v3179_v42 = vld [vmem:[%s6039_s3 + $0x4e0] sm:$0xff]  ;;  %v3180_v43 = vld [vmem:[%s6039_s3 + $0x4e8] sm:$0xff]  ;;  %v3177_v48 = vld [vmem:[%s6039_s3 + $0x4d0] sm:$0xff] }
 0x329   :  { %2256 = vmatpush.msrb.mxu3 %v3182_v21  ;;  %2210 = vmatpush.msrb.mxu2 %v3179_v42  ;;  %v3178_v34 = vld [vmem:[%s6039_s3 + $0x4d8] sm:$0xff]  ;;  %v3171_v0 = vld [vmem:[%s6039_s3 + $0x4a0] sm:$0xff]  ;;  %v3172_v52 = vld [vmem:[%s6039_s3 + $0x4a8] sm:$0xff] }
 0x32a   :  { %1813 = vmatmul.f32.gmra.mxu2 %v4932_v36  ;;  %1860 = vmatmul.f32.gmra.mxu3 %v4932_v36  ;;  %v1527_v8 = vadd.f32 %v4724_v32, %v1465_v6  ;;  %v1528_v51 = vadd.f32 %v4727_v38, %v1466_v53  ;;  %v3166_v6 = vld [vmem:[%s6039_s3 + $0x478] sm:$0xff] }
 0x32b   :  { %2105 = vmatmul.f32.gmra.mxu0 %v5342_v54  ;;  %2152 = vmatmul.f32.gmra.mxu1 %v5342_v54 }
 0x32c   :  { %v1583_v27 = vmax.f32 %v1527_v8, 0.0  ;;  %v1584_v11 = vmax.f32 %v1528_v51, 0.0  ;;  %2257 = vmatpush.msrb.mxu3 %v3180_v43  ;;  %2211 = vmatpush.msrb.mxu2 %v3177_v48  ;;  %v3159_v8 = vld [vmem:[%s6039_s3 + $0x440] sm:$0xff]  ;;  %v3160_v51 = vld [vmem:[%s6039_s3 + $0x448] sm:$0xff] }
 0x32e   :  { %2258 = vmatpush.msrb.mxu3 %v3178_v34  ;;  %v5418_v4 = vpop.f32.mrf.mxu2  ;;  %v5420_v9 = vpop.f32.mrf.mxu3  ;;  %2212 = vmatpush.msrb.mxu2 %v3175_v23 }
 0x32f   :  { %v1309_v26 = vpop.f32.mrf.mxu0  ;;  %v1410_v59 = vpop.f32.mrf.mxu1 }
 0x330   :  { %v1467_v46 = vadd.f32 %v1309_v26, %v1181_v25  ;;  %v1468_v44 = vadd.f32 %v1410_v59, %v1182_v50  ;;  %2259 = vmatpush.msrb.mxu3 %v3176_v37  ;;  %2213 = vmatpush.msrb.mxu2 %v3173_v60  ;;  %v3161_v25 = vld [vmem:[%s6039_s3 + $0x450] sm:$0xff]  ;;  %v3162_v50 = vld [vmem:[%s6039_s3 + $0x458] sm:$0xff] }
 0x332   :  { %v1529_v35 = vadd.f32 %v4724_v32, %v1467_v46  ;;  %v1530_v28 = vadd.f32 %v4727_v38, %v1468_v44  ;;  %1816 = vmatmul.f32.gmra.mxu2 %v4981_v3  ;;  %1863 = vmatmul.f32.gmra.mxu3 %v4981_v3 }
 0x333   :  { %2260 = vmatpush.msrb.mxu3 %v3174_v56  ;;  %2214 = vmatpush.msrb.mxu2 %v3171_v0 }
 0x334   :  { %v1585_v47 = vmax.f32 %v1529_v35, 0.0  ;;  %v1586_v32 = vmax.f32 %v1530_v28, 0.0  ;;  %v3157_v35 = vld [vmem:[%s6039_s3 + $0x430] sm:$0xff]  ;;  %v3158_v28 = vld [vmem:[%s6039_s3 + $0x438] sm:$0xff] }
 0x335   :  { %2261 = vmatpush.msrb.mxu3 %v3172_v52  ;;  %2215 = vmatpush.msrb.mxu2 %v3169_v55 }
 0x336   :  { %v1613_v14 = vmax.f32 %v1583_v27, %v1585_v47  ;;  %v1614_v38 = vmax.f32 %v1584_v11, %v1586_v32  ;;  %v5436_v13 = vpop.f32.mrf.mxu2  ;;  %v5438_v63 = vpop.f32.mrf.mxu3  ;;  %v3153_v47 = vld [vmem:[%s6039_s3 + $0x410] sm:$0xff]  ;;  %v3154_v32 = vld [vmem:[%s6039_s3 + $0x418] sm:$0xff] }
 0x337   :  { %2262 = vmatpush.msrb.mxu3 %v3170_v17  ;;  %2216 = vmatpush.msrb.mxu2 %v3167_v16 }
 0x338   :  { %v5382_v24 = vmax.f32 %v1613_v14, %v1614_v38 }
 0x339   :  { %2263 = vmatpush.msrb.mxu3 %v3168_v1 }
 0x33a   :  { %1819 = vmatmul.f32.gmra.mxu2 %v5032_v33  ;;  %1866 = vmatmul.f32.gmra.mxu3 %v5032_v33 }
 0x33b   :  { %2264 = vmatpush.msrb.mxu3 %v3166_v6 }
 0x33e   :  { %v5448_v40 = vpop.f32.mrf.mxu2  ;;  %v5450_v41 = vpop.f32.mrf.mxu3 }
 0x342   :  { %1822 = vmatmul.f32.gmra.mxu2 %v5082_v7  ;;  %1869 = vmatmul.f32.gmra.mxu3 %v5082_v7 }
 0x346   :  { %v5466_v57 = vpop.f32.mrf.mxu2  ;;  %v5468_v45 = vpop.f32.mrf.mxu3 }
 0x34a   :  { %1825 = vmatmul.f32.gmra.mxu2 %v5128_v31  ;;  %1872 = vmatmul.f32.gmra.mxu3 %v5128_v31 }
 0x34e   :  { %v5478_v53 = vpop.f32.mrf.mxu2  ;;  %v5480_v29 = vpop.f32.mrf.mxu3 }
 0x352   :  { %1828 = vmatmul.f32.gmra.mxu2 %v5178_v39  ;;  %1875 = vmatmul.f32.gmra.mxu3 %v5178_v39 }
 0x35a   :  { %1831 = vmatmul.f32.gmra.mxu2 %v5216_v10  ;;  %1878 = vmatmul.f32.gmra.mxu3 %v5216_v10 }
 0x35d   :  { %v5496_v26 = vpop.f32.mrf.mxu2  ;;  %v5498_v59 = vpop.f32.mrf.mxu3 }
 0x362   :  { %1931 = vmatmul.f32.vlgmr.msra.gmra.mxu2 %v4852_v2  ;;  %1978 = vmatmul.f32.vlgmr.msra.gmra.mxu3 %v4852_v2  ;;  %v3165_v2 = vld [vmem:[%s6039_s3 + $0x470] sm:$0xff] }
 0x363   :  { %2217 = vmatpush.msrb.mxu2 %v3165_v2 }
 0x365   :  { %2218 = vmatpush.msrb.mxu2 %v3163_v20 }
 0x367   :  { %2219 = vmatpush.msrb.mxu2 %v3161_v25 }
 0x369   :  { %2220 = vmatpush.msrb.mxu2 %v3159_v8 }
 0x36a   :  { %1934 = vmatmul.f32.gmra.mxu2 %v4932_v36  ;;  %1981 = vmatmul.f32.gmra.mxu3 %v4932_v36  ;;  %v3164_v36 = vld [vmem:[%s6039_s3 + $0x468] sm:$0xff] }
 0x36b   :  { %2265 = vmatpush.msrb.mxu3 %v3164_v36  ;;  %2221 = vmatpush.msrb.mxu2 %v3157_v35 }
 0x36d   :  { %2266 = vmatpush.msrb.mxu3 %v3162_v50  ;;  %v5508_v46 = vpop.f32.mrf.mxu2  ;;  %v5510_v44 = vpop.f32.mrf.mxu3  ;;  %2222 = vmatpush.msrb.mxu2 %v3155_v58 }
 0x36f   :  { %2267 = vmatpush.msrb.mxu3 %v3160_v51  ;;  %2223 = vmatpush.msrb.mxu2 %v3153_v47 }
 0x371   :  { %2268 = vmatpush.msrb.mxu3 %v3158_v28  ;;  %2224 = vmatpush.msrb.mxu2 %v3151_v18 }
 0x372   :  { %1937 = vmatmul.f32.gmra.mxu2 %v4981_v3  ;;  %1984 = vmatmul.f32.gmra.mxu3 %v4981_v3 }
 0x373   :  { %2269 = vmatpush.msrb.mxu3 %v3156_v49 }
 0x375   :  { %2270 = vmatpush.msrb.mxu3 %v3154_v32 }
 0x377   :  { %2271 = vmatpush.msrb.mxu3 %v3152_v12 }
 0x37a   :  { %1940 = vmatmul.f32.gmra.mxu2 %v5032_v33  ;;  %1987 = vmatmul.f32.gmra.mxu3 %v5032_v33 }
 0x37d   :  { %v5526_v27 = vpop.f32.mrf.mxu2  ;;  %v5528_v11 = vpop.f32.mrf.mxu3 }
 0x382   :  { %1943 = vmatmul.f32.gmra.mxu2 %v5082_v7  ;;  %1990 = vmatmul.f32.gmra.mxu3 %v5082_v7 }
 0x38a   :  { %1946 = vmatmul.f32.gmra.mxu2 %v5128_v31  ;;  %1993 = vmatmul.f32.gmra.mxu3 %v5128_v31 }
 0x38d   :  { %v5538_v14 = vpop.f32.mrf.mxu2  ;;  %v5540_v38 = vpop.f32.mrf.mxu3 }
 0x392   :  { %1949 = vmatmul.f32.gmra.mxu2 %v5178_v39  ;;  %1996 = vmatmul.f32.gmra.mxu3 %v5178_v39 }
 0x395   :  { %v1805_v19 = vpop.f32.mrf.mxu2  ;;  %v1852_v22 = vpop.f32.mrf.mxu3 }
 0x39a   :  { %1952 = vmatmul.f32.gmra.mxu2 %v5216_v10  ;;  %1999 = vmatmul.f32.gmra.mxu3 %v5216_v10 }
 0x39d   :  { %v1808_v5 = vpop.f32.mrf.mxu2  ;;  %v1855_v21 = vpop.f32.mrf.mxu3 }
 0x39e   :  { %v1856_v36 = vadd.f32 %v1855_v21, %v5420_v9 }
 0x3a2   :  { %1955 = vmatmul.f32.gmra.mxu2 %v5254_v62  ;;  %2002 = vmatmul.f32.gmra.mxu3 %v5254_v62 }
 0x3a5   :  { %v1811_v42 = vpop.f32.mrf.mxu2  ;;  %v1858_v43 = vpop.f32.mrf.mxu3 }
 0x3a6   :  { %v1859_v8 = vadd.f32 %v1858_v43, %v5438_v63  ;;  %v3214_v43 = vld [vmem:[%s6041_s5 + $0x178] sm:$0xff] }
 0x3a7   :  { %2474 = vmatpush.msra.mxu2 %v3214_v43  ;;  %v2384_v43 = vld [vmem:[%s6041_s5] sm:$0xff] }
 0x3aa   :  { %1958 = vmatmul.f32.gmra.mxu2 %v5304_v61  ;;  %2005 = vmatmul.f32.gmra.mxu3 %v5304_v61 }
 0x3ad   :  { %v1814_v48 = vpop.f32.mrf.mxu2  ;;  %v1861_v34 = vpop.f32.mrf.mxu3 }
 0x3ae   :  { %v1815_v9 = vadd.f32 %v1814_v48, %v5448_v40  ;;  %v1862_v28 = vadd.f32 %v1861_v34, %v5450_v41  ;;  %v2398_v40 = vld [vmem:[%s6041_s5 + $0x70] sm:$0xff]  ;;  %v3230_v48 = vld [vmem:[%s6041_s5 + $0x1f8] sm:$0xff] }
 0x3af   :  { %v2395_v34 = vld [vmem:[%s6041_s5 + $0x58] sm:$0xff]  ;;  %2512 = vmatpush.msra.mxu3 %v3230_v48  ;;  %v2126_v48 = vpop.f32.mrf.mxu1 }
 0x3b2   :  { %2225 = vmatmul.f32.vlgmr.msrb.gmra.mxu2 %v4981_v3  ;;  %2272 = vmatmul.f32.vlgmr.msrb.gmra.mxu3 %v4981_v3 }
 0x3b5   :  { %v1817_v23 = vpop.f32.mrf.mxu2  ;;  %v1864_v37 = vpop.f32.mrf.mxu3 }
 0x3b6   :  { %v1818_v63 = vadd.f32 %v1817_v23, %v5466_v57  ;;  %v1865_v47 = vadd.f32 %v1864_v37, %v5468_v45  ;;  %v3213_v23 = vld [vmem:[%s6041_s5 + $0x170] sm:$0xff] }
 0x3b7   :  { %v2394_v37 = vld [vmem:[%s6041_s5 + $0x50] sm:$0xff]  ;;  %2475 = vmatpush.msra.mxu2 %v3213_v23 }
 0x3b8   :  { %v3225_v23 = vld [vmem:[%s6041_s5 + $0x1d0] sm:$0xff] }
 0x3ba   :  { %2228 = vmatmul.f32.gmra.mxu2 %v5032_v33  ;;  %2275 = vmatmul.f32.gmra.mxu3 %v5032_v33 }
 0x3bd   :  { %v1820_v60 = vpop.f32.mrf.mxu2  ;;  %v1867_v56 = vpop.f32.mrf.mxu3 }
 0x3be   :  { %v1821_v41 = vadd.f32 %v1820_v60, %v5478_v53  ;;  %v1868_v57 = vadd.f32 %v1867_v56, %v5480_v29  ;;  %v2396_v53 = vld [vmem:[%s6041_s5 + $0x60] sm:$0xff]  ;;  %v3198_v29 = vld [vmem:[%s6041_s5 + $0xf8] sm:$0xff] }
 0x3bf   :  { %2417 = vmatpush.msra.mxu0 %v3198_v29  ;;  %v2079_v29 = vpop.f32.mrf.mxu0 }
 0x3c2   :  { %2231 = vmatmul.f32.gmra.mxu2 %v5082_v7  ;;  %2278 = vmatmul.f32.gmra.mxu3 %v5082_v7 }
 0x3c5   :  { %v5562_v0 = vpop.f32.mrf.mxu2  ;;  %v5564_v52 = vpop.f32.mrf.mxu3 }
 0x3ca   :  { %2234 = vmatmul.f32.gmra.mxu2 %v5128_v31  ;;  %2281 = vmatmul.f32.gmra.mxu3 %v5128_v31  ;;  %v1806_v31 = vadd.f32 %v1805_v19, %v5400_v30 }
 0x3cd   :  { %v5568_v3 = vpop.f32.mrf.mxu2  ;;  %v5570_v55 = vpop.f32.mrf.mxu3 }
 0x3d2   :  { %2237 = vmatmul.f32.gmra.mxu2 %v5178_v39  ;;  %2284 = vmatmul.f32.gmra.mxu3 %v5178_v39  ;;  %v1853_v39 = vadd.f32 %v1852_v22, %v5402_v15  ;;  %v1812_v15 = vadd.f32 %v1811_v42, %v5436_v13 }
 0x3d5   :  { %v5574_v33 = vpop.f32.mrf.mxu2  ;;  %v5576_v17 = vpop.f32.mrf.mxu3 }
 0x3da   :  { %2240 = vmatmul.f32.gmra.mxu2 %v5216_v10  ;;  %2287 = vmatmul.f32.gmra.mxu3 %v5216_v10  ;;  %v1809_v10 = vadd.f32 %v1808_v5, %v5418_v4  ;;  %v2397_v5 = vld [vmem:[%s6041_s5 + $0x68] sm:$0xff] }
 0x3dd   :  { %v5580_v7 = vpop.f32.mrf.mxu2  ;;  %v5582_v16 = vpop.f32.mrf.mxu3 }
 0x3e2   :  { %2243 = vmatmul.f32.gmra.mxu2 %v5254_v62  ;;  %2290 = vmatmul.f32.gmra.mxu3 %v5254_v62 }
 0x3e5   :  { %v1932_v1 = vpop.f32.mrf.mxu2  ;;  %v1979_v2 = vpop.f32.mrf.mxu3 }
 0x3e6   :  { %v5588_v6 = vadd.f32 %v1932_v1, %v1806_v31  ;;  %v5590_v20 = vadd.f32 %v1979_v2, %v1853_v39  ;;  %v2393_v31 = vld [vmem:[%s6041_s5 + $0x48] sm:$0xff]  ;;  %v2392_v39 = vld [vmem:[%s6041_s5 + $0x40] sm:$0xff]  ;;  %v2391_v1 = vld [vmem:[%s6041_s5 + $0x38] sm:$0xff] }
 0x3e7   :  { %v3197_v2 = vld [vmem:[%s6041_s5 + $0xf0] sm:$0xff] }
 0x3e8   :  { %2418 = vmatpush.msra.mxu0 %v3197_v2 }
 0x3ea   :  { %2246 = vmatmul.f32.gmra.mxu2 %v5304_v61  ;;  %2293 = vmatmul.f32.gmra.mxu3 %v5304_v61 }
 0x3ed   :  { %v1935_v25 = vpop.f32.mrf.mxu2  ;;  %v1982_v62 = vpop.f32.mrf.mxu3 }
 0x3ee   :  { %v5596_v50 = vadd.f32 %v1935_v25, %v1809_v10  ;;  %v5598_v30 = vadd.f32 %v1982_v62, %v1856_v36  ;;  %v3229_v10 = vld [vmem:[%s6041_s5 + $0x1f0] sm:$0xff]  ;;  %v3212_v36 = vld [vmem:[%s6041_s5 + $0x168] sm:$0xff] }
 0x3ef   :  { %2513 = vmatpush.msra.mxu3 %v3229_v10  ;;  %v3196_v25 = vld [vmem:[%s6041_s5 + $0xe8] sm:$0xff]  ;;  %2476 = vmatpush.msra.mxu2 %v3212_v36 }
 0x3f0   :  { %v3228_v62 = vld [vmem:[%s6041_s5 + $0x1e8] sm:$0xff]  ;;  %2419 = vmatpush.msra.mxu0 %v3196_v25 }
 0x3f1   :  { %2514 = vmatpush.msra.mxu3 %v3228_v62  ;;  %v3188_v36 = vld [vmem:[%s6041_s5 + $0xa8] sm:$0xff] }
 0x3f2   :  { %2249 = vmatmul.f32.gmra.mxu2 %v5342_v54  ;;  %2296 = vmatmul.f32.gmra.mxu3 %v5342_v54 }
 0x3f5   :  { %v1938_v51 = vpop.f32.mrf.mxu2  ;;  %v1985_v61 = vpop.f32.mrf.mxu3 }
 0x3f6   :  { %v5604_v35 = vadd.f32 %v1938_v51, %v1812_v15  ;;  %v5606_v4 = vadd.f32 %v1985_v61, %v1859_v8  ;;  %v2390_v15 = vld [vmem:[%s6041_s5 + $0x30] sm:$0xff]  ;;  %v1874_v8 = vadd.f32 %v5570_v55, %v5510_v44  ;;  %v2388_v44 = vld [vmem:[%s6041_s5 + $0x20] sm:$0xff]  ;;  %v3194_v55 = vld [vmem:[%s6041_s5 + $0xd8] sm:$0xff] }
 0x3fa   :  { %2252 = vmatmul.f32.gmra.mxu2 %v5382_v24  ;;  %2299 = vmatmul.f32.gmra.mxu3 %v5382_v24  ;;  %v2399_v24 = vld [vmem:[%s6041_s5 + $0x78] sm:$0xff] }
 0x3fb   :  { %2437 = vmatpush.msra.mxu1 %v2399_v24 }
 0x3fd   :  { %v1941_v58 = vpop.f32.mrf.mxu2  ;;  %v1988_v54 = vpop.f32.mrf.mxu3  ;;  %2438 = vmatpush.msra.mxu1 %v2398_v40 }
 0x3fe   :  { %v5612_v49 = vadd.f32 %v1941_v58, %v1815_v9  ;;  %v5614_v13 = vadd.f32 %v1988_v54, %v1862_v28  ;;  %v2389_v9 = vld [vmem:[%s6041_s5 + $0x28] sm:$0xff]  ;;  %v3195_v58 = vld [vmem:[%s6041_s5 + $0xe0] sm:$0xff]  ;;  %v2387_v54 = vld [vmem:[%s6041_s5 + $0x18] sm:$0xff] }
 0x3ff   :  { %2439 = vmatpush.msra.mxu1 %v2397_v5  ;;  %2420 = vmatpush.msra.mxu0 %v3195_v58  ;;  %v3191_v5 = vld [vmem:[%s6041_s5 + $0xc0] sm:$0xff]  ;;  %v3224_v58 = vld [vmem:[%s6041_s5 + $0x1c8] sm:$0xff] }
 0x401   :  { %2440 = vmatpush.msra.mxu1 %v2396_v53  ;;  %2421 = vmatpush.msra.mxu0 %v3194_v55  ;;  %v3190_v53 = vld [vmem:[%s6041_s5 + $0xb8] sm:$0xff]  ;;  %v3223_v55 = vld [vmem:[%s6041_s5 + $0x1c0] sm:$0xff] }
 0x403   :  { %2441 = vmatpush.msra.mxu1 %v2395_v34  ;;  %v3209_v34 = vld [vmem:[%s6041_s5 + $0x150] sm:$0xff] }
 0x405   :  { %v1944_v32 = vpop.f32.mrf.mxu2  ;;  %v1991_v18 = vpop.f32.mrf.mxu3  ;;  %2442 = vmatpush.msra.mxu1 %v2394_v37  ;;  %v3189_v37 = vld [vmem:[%s6041_s5 + $0xb0] sm:$0xff] }
 0x406   :  { %v5618_v12 = vadd.f32 %v1944_v32, %v1818_v63  ;;  %v5620_v19 = vadd.f32 %v1991_v18, %v1865_v47  ;;  %v3193_v63 = vld [vmem:[%s6041_s5 + $0xd0] sm:$0xff]  ;;  %v1830_v32 = vadd.f32 %v5574_v33, %v5526_v27  ;;  %v1877_v18 = vadd.f32 %v5576_v17, %v5528_v11  ;;  %v3211_v27 = vld [vmem:[%s6041_s5 + $0x160] sm:$0xff]  ;;  %v3210_v33 = vld [vmem:[%s6041_s5 + $0x158] sm:$0xff] }
 0x407   :  { %2443 = vmatpush.msra.mxu1 %v2393_v31  ;;  %v2386_v47 = vld [vmem:[%s6041_s5 + $0x10] sm:$0xff]  ;;  %2422 = vmatpush.msra.mxu0 %v3193_v63  ;;  %v3227_v11 = vld [vmem:[%s6041_s5 + $0x1e0] sm:$0xff]  ;;  %v3226_v17 = vld [vmem:[%s6041_s5 + $0x1d8] sm:$0xff] }
 0x408   :  { %2477 = vmatpush.msra.mxu2 %v3211_v27  ;;  %2515 = vmatpush.msra.mxu3 %v3227_v11  ;;  %v3208_v31 = vld [vmem:[%s6041_s5 + $0x148] sm:$0xff]  ;;  %v3183_v63 = vld [vmem:[%s6041_s5 + $0x80] sm:$0xff]  ;;  %v3222_v27 = vld [vmem:[%s6041_s5 + $0x1b8] sm:$0xff] }
 0x409   :  { %2444 = vmatpush.msra.mxu1 %v2392_v39  ;;  %v1833_v39 = vadd.f32 %v5580_v7, %v5538_v14  ;;  %v3187_v14 = vld [vmem:[%s6041_s5 + $0xa0] sm:$0xff]  ;;  %v3185_v7 = vld [vmem:[%s6041_s5 + $0x90] sm:$0xff] }
 0x40a   :  { %2478 = vmatpush.msra.mxu2 %v3210_v33  ;;  %2516 = vmatpush.msra.mxu3 %v3226_v17 }
 0x40b   :  { %2445 = vmatpush.msra.mxu1 %v2391_v1  ;;  %v1880_v1 = vadd.f32 %v5582_v16, %v5540_v38  ;;  %v3186_v38 = vld [vmem:[%s6041_s5 + $0x98] sm:$0xff]  ;;  %v2082_v16 = vpop.f32.mrf.mxu0 }
 0x40c   :  { %2479 = vmatpush.msra.mxu2 %v3209_v34  ;;  %2517 = vmatpush.msra.mxu3 %v3225_v23 }
 0x40d   :  { %v1947_v45 = vpop.f32.mrf.mxu2  ;;  %v1994_v22 = vpop.f32.mrf.mxu3  ;;  %2446 = vmatpush.msra.mxu1 %v2390_v15 }
 0x40e   :  { %v5633_v21 = vadd.f32 %v1947_v45, %v1821_v41  ;;  %v5635_v42 = vadd.f32 %v1994_v22, %v1868_v57  ;;  %v3192_v41 = vld [vmem:[%s6041_s5 + $0xc8] sm:$0xff]  ;;  %2480 = vmatpush.msra.mxu2 %v3208_v31  ;;  %v2129_v15 = vpop.f32.mrf.mxu1  ;;  %2518 = vmatpush.msra.mxu3 %v3224_v58  ;;  %v3202_v31 = vld [vmem:[%s6041_s5 + $0x118] sm:$0xff]  ;;  %v3199_v58 = vld [vmem:[%s6041_s5 + $0x100] sm:$0xff] }
 0x40f   :  { %2447 = vmatpush.msra.mxu1 %v2389_v9  ;;  %v2385_v57 = vld [vmem:[%s6041_s5 + $0x8] sm:$0xff]  ;;  %2423 = vmatpush.msra.mxu0 %v3192_v41  ;;  %v2159_v11 = vadd.f32 %v2129_v15, %v5598_v30 }
 0x410   :  { %v3184_v9 = vld [vmem:[%s6041_s5 + $0x88] sm:$0xff]  ;;  %2519 = vmatpush.msra.mxu3 %v3223_v55 }
 0x411   :  { %2448 = vmatpush.msra.mxu1 %v2388_v44  ;;  %2424 = vmatpush.msra.mxu0 %v3191_v5  ;;  %v3207_v44 = vld [vmem:[%s6041_s5 + $0x140] sm:$0xff]  ;;  %v3204_v5 = vld [vmem:[%s6041_s5 + $0x128] sm:$0xff] }
 0x412   :  { %2481 = vmatpush.msra.mxu2 %v3207_v44  ;;  %2520 = vmatpush.msra.mxu3 %v3222_v27  ;;  %v3200_v15 = vld [vmem:[%s6041_s5 + $0x108] sm:$0xff] }
 0x413   :  { %2449 = vmatpush.msra.mxu1 %v2387_v54  ;;  %2425 = vmatpush.msra.mxu0 %v3190_v53  ;;  %v2323_v54 = vld [vmem:[%s6042_s4] sm:$0x3]  ;;  %v2085_v34 = vpop.f32.mrf.mxu0 }
 0x414   :  { %v2160_v44 = vadd.f32 %v2085_v34, %v5604_v35  ;;  %v3245_v35 = vld [vmem:[%s6041_s5 + $0x270] sm:$0xff] }
 0x415   :  { %v5658_v60 = vpop.f32.mrf.mxu2  ;;  %v5660_v56 = vpop.f32.mrf.mxu3  ;;  %2450 = vmatpush.msra.mxu1 %v2386_v47  ;;  %2426 = vmatpush.msra.mxu0 %v3189_v37  ;;  %v2156_v47 = vadd.f32 %v2079_v29, %v5588_v6  ;;  %v3205_v6 = vld [vmem:[%s6041_s5 + $0x130] sm:$0xff] }
 0x416   :  { %v2132_v23 = vpop.f32.mrf.mxu1 }
 0x417   :  { %2451 = vmatpush.msra.mxu1 %v2385_v57  ;;  %2427 = vmatpush.msra.mxu0 %v3188_v36  ;;  %v5808_v57 = vperm.slane %v2323_v54, 1  ;;  %v3201_v36 = vld [vmem:[%s6041_s5 + $0x110] sm:$0xff]  ;;  %v2161_v55 = vadd.f32 %v2132_v23, %v5606_v4  ;;  %v3218_v4 = vld [vmem:[%s6041_s5 + $0x198] sm:$0xff] }
 0x419   :  { %2452 = vmatpush.msra.mxu1 %v2384_v43  ;;  %2428 = vmatpush.msra.mxu0 %v3187_v14 }
 0x41b   :  { %2429 = vmatpush.msra.mxu0 %v3186_v38 }
 0x41d   :  { %v5691_v51 = vpop.f32.mrf.mxu2  ;;  %v2000_v61 = vpop.f32.mrf.mxu3  ;;  %2430 = vmatpush.msra.mxu0 %v3185_v7 }
 0x41e   :  { %v5696_v28 = vadd.f32 %v2000_v61, %v1874_v8 }
 0x41f   :  { %2431 = vmatpush.msra.mxu0 %v3184_v9  ;;  %v3220_v9 = vld [vmem:[%s6041_s5 + $0x1a8] sm:$0xff] }
 0x421   :  { %2432 = vmatpush.msra.mxu0 %v3183_v63  ;;  %v2135_v63 = vpop.f32.mrf.mxu1 }
 0x422   :  { %v2163_v27 = vadd.f32 %v2135_v63, %v5614_v13 }
 0x425   :  { %v1956_v24 = vpop.f32.mrf.mxu2  ;;  %v2003_v40 = vpop.f32.mrf.mxu3 }
 0x426   :  { %v5726_v45 = vadd.f32 %v1956_v24, %v1830_v32  ;;  %v5728_v22 = vadd.f32 %v2003_v40, %v1877_v18  ;;  %v2157_v32 = vadd.f32 %v2126_v48, %v5590_v20  ;;  %v3206_v18 = vld [vmem:[%s6041_s5 + $0x138] sm:$0xff]  ;;  %v5806_v40 = vperm.slane %v2323_v54, 0  ;;  %v2088_v54 = vpop.f32.mrf.mxu0 }
 0x427   :  { %2482 = vmatpush.msra.mxu2 %v3206_v18  ;;  %v2158_v20 = vadd.f32 %v2082_v16, %v5596_v50  ;;  %v3203_v50 = vld [vmem:[%s6041_s5 + $0x120] sm:$0xff] }
 0x429   :  { %2483 = vmatpush.msra.mxu2 %v3205_v6 }
 0x42b   :  { %2484 = vmatpush.msra.mxu2 %v3204_v5 }
 0x42d   :  { %v1959_v2 = vpop.f32.mrf.mxu2  ;;  %v2006_v10 = vpop.f32.mrf.mxu3  ;;  %2485 = vmatpush.msra.mxu2 %v3203_v50 }
 0x42e   :  { %v5770_v25 = vadd.f32 %v1959_v2, %v1833_v39  ;;  %v5772_v62 = vadd.f32 %v2006_v10, %v1880_v1 }
 0x42f   :  { %2486 = vmatpush.msra.mxu2 %v3202_v31  ;;  %v3217_v31 = vld [vmem:[%s6041_s5 + $0x190] sm:$0xff] }
 0x431   :  { %2487 = vmatpush.msra.mxu2 %v3201_v36 }
 0x433   :  { %2488 = vmatpush.msra.mxu2 %v3200_v15  ;;  %v3239_v15 = vld [vmem:[%s6041_s5 + $0x240] sm:$0xff] }
 0x435   :  { %v2226_v8 = vpop.f32.mrf.mxu2  ;;  %v2273_v61 = vpop.f32.mrf.mxu3  ;;  %2489 = vmatpush.msra.mxu2 %v3199_v58 }
 0x436   :  { %v2303_v24 = vadd.f32 %v2226_v8, %v2156_v47  ;;  %v2304_v41 = vadd.f32 %v2273_v61, %v2157_v32  ;;  %v3221_v61 = vld [vmem:[%s6041_s5 + $0x1b0] sm:$0xff]  ;;  %v3246_v47 = vld [vmem:[%s6041_s5 + $0x278] sm:$0xff] }
 0x437   :  { %2521 = vmatpush.msra.mxu3 %v3221_v61  ;;  %2550 = vmatpush.msrb.mxu0 %v3246_v47 }
 0x438   :  { %v2329_v43 = vadd.f32 %v5806_v40, %v2303_v24  ;;  %v2330_v53 = vadd.f32 %v5808_v57, %v2304_v41  ;;  %v3219_v24 = vld [vmem:[%s6041_s5 + $0x1a0] sm:$0xff]  ;;  %v2162_v41 = vadd.f32 %v2088_v54, %v5612_v49 }
 0x439   :  { %2522 = vmatpush.msra.mxu3 %v3220_v9  ;;  %2551 = vmatpush.msrb.mxu0 %v3245_v35  ;;  %v3243_v49 = vld [vmem:[%s6041_s5 + $0x260] sm:$0xff]  ;;  %v3238_v9 = vld [vmem:[%s6041_s5 + $0x238] sm:$0xff] }
 0x43a   :  { %v2349_v39 = vmax.f32 %v2329_v43, 0.0  ;;  %v2350_v1 = vmax.f32 %v2330_v53, 0.0 }
 0x43b   :  { %2523 = vmatpush.msra.mxu3 %v3219_v24 }
 0x43d   :  { %v2229_v33 = vpop.f32.mrf.mxu2  ;;  %v2276_v17 = vpop.f32.mrf.mxu3  ;;  %2524 = vmatpush.msra.mxu3 %v3218_v4 }
 0x43e   :  { %v2305_v29 = vadd.f32 %v2229_v33, %v2158_v20  ;;  %v2306_v48 = vadd.f32 %v2276_v17, %v2159_v11  ;;  %v3244_v11 = vld [vmem:[%s6041_s5 + $0x268] sm:$0xff] }
 0x43f   :  { %2552 = vmatpush.msrb.mxu0 %v3244_v11  ;;  %2525 = vmatpush.msra.mxu3 %v3217_v31  ;;  %v3234_v11 = vld [vmem:[%s6041_s5 + $0x218] sm:$0xff] }
 0x440   :  { %v2331_v30 = vadd.f32 %v5806_v40, %v2305_v29  ;;  %v2332_v37 = vadd.f32 %v5808_v57, %v2306_v48  ;;  %v3242_v29 = vld [vmem:[%s6041_s5 + $0x258] sm:$0xff] }
 0x441   :  { %2553 = vmatpush.msrb.mxu0 %v3243_v49 }
 0x442   :  { %v2351_v2 = vmax.f32 %v2331_v30, 0.0  ;;  %v2352_v10 = vmax.f32 %v2332_v37, 0.0  ;;  %v2091_v30 = vpop.f32.mrf.mxu0  ;;  %v2138_v37 = vpop.f32.mrf.mxu1 }
 0x443   :  { %2554 = vmatpush.msrb.mxu0 %v3242_v29  ;;  %v2165_v61 = vadd.f32 %v2138_v37, %v5620_v19 }
 0x444   :  { %v2369_v14 = vmax.f32 %v2349_v39, %v2351_v2  ;;  %v2370_v38 = vmax.f32 %v2350_v1, %v2352_v10  ;;  %v3241_v39 = vld [vmem:[%s6041_s5 + $0x250] sm:$0xff] }
 0x445   :  { %v2232_v7 = vpop.f32.mrf.mxu2  ;;  %v2279_v16 = vpop.f32.mrf.mxu3  ;;  %2555 = vmatpush.msrb.mxu0 %v3241_v39 }
 0x446   :  { %v2379_v8 = vmax.f32 %v2369_v14, %v2370_v38  ;;  %v2307_v32 = vadd.f32 %v2232_v7, %v2160_v44  ;;  %v2308_v18 = vadd.f32 %v2279_v16, %v2161_v55  ;;  %v3216_v14 = vld [vmem:[%s6041_s5 + $0x188] sm:$0xff]  ;;  %v3215_v16 = vld [vmem:[%s6041_s5 + $0x180] sm:$0xff]  ;;  %v3237_v55 = vld [vmem:[%s6041_s5 + $0x230] sm:$0xff] }
 0x447   :  { %v3240_v38 = vld [vmem:[%s6041_s5 + $0x248] sm:$0xff]  ;;  %2526 = vmatpush.msra.mxu3 %v3216_v14 }
 0x448   :  { %2453 = vmatmul.f32.vlgmr.msra.gmra.mxu1 %v2379_v8  ;;  %v2333_v33 = vadd.f32 %v5806_v40, %v2307_v32  ;;  %v2334_v17 = vadd.f32 %v5808_v57, %v2308_v18  ;;  %2556 = vmatpush.msrb.mxu0 %v3240_v38  ;;  %v2164_v8 = vadd.f32 %v2091_v30, %v5618_v12  ;;  %v3236_v18 = vld [vmem:[%s6041_s5 + $0x228] sm:$0xff]  ;;  %v3231_v30 = vld [vmem:[%s6041_s5 + $0x200] sm:$0xff] }
 0x449   :  { %2527 = vmatpush.msra.mxu3 %v3215_v16 }
 0x44a   :  { %v2353_v48 = vmax.f32 %v2333_v33, 0.0  ;;  %v2354_v34 = vmax.f32 %v2334_v17, 0.0  ;;  %2557 = vmatpush.msrb.mxu0 %v3239_v15  ;;  %v2094_v54 = vpop.f32.mrf.mxu0  ;;  %v2141_v63 = vpop.f32.mrf.mxu1 }
 0x44b   :  { %v2166_v12 = vadd.f32 %v2094_v54, %v5633_v21  ;;  %v2167_v19 = vadd.f32 %v2141_v63, %v5635_v42  ;;  %v3235_v21 = vld [vmem:[%s6041_s5 + $0x220] sm:$0xff] }
 0x44c   :  { %2558 = vmatpush.msrb.mxu0 %v3238_v9 }
 0x44d   :  { %v2235_v6 = vpop.f32.mrf.mxu2  ;;  %v2282_v20 = vpop.f32.mrf.mxu3 }
 0x44e   :  { %v2309_v5 = vadd.f32 %v2235_v6, %v2162_v41  ;;  %v2310_v43 = vadd.f32 %v2282_v20, %v2163_v27  ;;  %2559 = vmatpush.msrb.mxu0 %v3237_v55  ;;  %v1824_v6 = vadd.f32 %v5562_v0, %v5496_v26  ;;  %v1871_v20 = vadd.f32 %v5564_v52, %v5498_v59 }
 0x450   :  { %v2335_v13 = vadd.f32 %v5806_v40, %v2309_v5  ;;  %v2336_v53 = vadd.f32 %v5808_v57, %v2310_v43  ;;  %2560 = vmatpush.msrb.mxu0 %v3236_v18  ;;  %v2021_v26 = vadd.f32 %v5658_v60, %v1824_v6  ;;  %v2022_v59 = vadd.f32 %v5660_v56, %v1871_v20 }
 0x452   :  { %v2355_v23 = vmax.f32 %v2335_v13, 0.0  ;;  %v2356_v50 = vmax.f32 %v2336_v53, 0.0  ;;  %2561 = vmatpush.msrb.mxu0 %v3235_v21  ;;  %v2097_v49 = vpop.f32.mrf.mxu0  ;;  %v2144_v13 = vpop.f32.mrf.mxu1  ;;  %v3233_v53 = vld [vmem:[%s6041_s5 + $0x210] sm:$0xff] }
 0x453   :  { %v2168_v56 = vadd.f32 %v2097_v49, %v2021_v26  ;;  %v2169_v37 = vadd.f32 %v2144_v13, %v2022_v59  ;;  %v2587_v59 = vld [vmem:[%s6045_s7 + $0x50] sm:$0xff] }
 0x454   :  { %v2371_v1 = vmax.f32 %v2353_v48, %v2355_v23  ;;  %v2372_v2 = vmax.f32 %v2354_v34, %v2356_v50  ;;  %2562 = vmatpush.msrb.mxu0 %v3234_v11  ;;  %v3232_v34 = vld [vmem:[%s6041_s5 + $0x208] sm:$0xff]  ;;  %v1827_v23 = vadd.f32 %v5568_v3, %v5508_v46 }
 0x455   :  { %v2238_v10 = vpop.f32.mrf.mxu2  ;;  %v2285_v36 = vpop.f32.mrf.mxu3 }
 0x456   :  { %v2380_v7 = vmax.f32 %v2371_v1, %v2372_v2  ;;  %v2311_v58 = vadd.f32 %v2238_v10, %v2164_v8  ;;  %v2312_v44 = vadd.f32 %v2285_v36, %v2165_v61  ;;  %2563 = vmatpush.msrb.mxu0 %v3233_v53  ;;  %v2023_v60 = vadd.f32 %v5691_v51, %v1827_v23  ;;  %v2581_v23 = vld [vmem:[%s6045_s7 + $0x20] sm:$0xff] }
 0x458   :  { %2433 = vmatmul.f32.vlgmr.msra.gmra.mxu0 %v2380_v7  ;;  %v2337_v24 = vadd.f32 %v5806_v40, %v2311_v58  ;;  %v2338_v35 = vadd.f32 %v5808_v57, %v2312_v44 }
 0x459   :  { %2564 = vmatpush.msrb.mxu0 %v3232_v34  ;;  %v2582_v34 = vld [vmem:[%s6045_s7 + $0x28] sm:$0xff] }
 0x45a   :  { %v2357_v33 = vmax.f32 %v2337_v24, 0.0  ;;  %v2358_v17 = vmax.f32 %v2338_v35, 0.0  ;;  %v2100_v1 = vpop.f32.mrf.mxu0  ;;  %v2147_v2 = vpop.f32.mrf.mxu1 }
 0x45b   :  { %2565 = vmatpush.msrb.mxu0 %v3231_v30  ;;  %v2170_v10 = vadd.f32 %v2100_v1, %v2023_v60  ;;  %v2171_v36 = vadd.f32 %v2147_v2, %v5696_v28  ;;  %v2579_v30 = vld [vmem:[%s6045_s7 + $0x10] sm:$0xff]  ;;  %v2578_v60 = vld [vmem:[%s6045_s7 + $0x8] sm:$0xff]  ;;  %v2628_v1 = vld [vmem:[%s6046_s9 + $0x38] sm:$0xff] }
 0x45c   :  { %v2627_v2 = vld [vmem:[%s6046_s9 + $0x30] sm:$0xff] }
 0x45d   :  { %v2241_v47 = vpop.f32.mrf.mxu2  ;;  %v2288_v32 = vpop.f32.mrf.mxu3 }
 0x45e   :  { %v2313_v4 = vadd.f32 %v2241_v47, %v2166_v12  ;;  %v2314_v41 = vadd.f32 %v2288_v32, %v2167_v19 }
 0x460   :  { %v2339_v42 = vadd.f32 %v5806_v40, %v2313_v4  ;;  %v2340_v27 = vadd.f32 %v5808_v57, %v2314_v41 }
 0x462   :  { %v2359_v5 = vmax.f32 %v2339_v42, 0.0  ;;  %v2360_v43 = vmax.f32 %v2340_v27, 0.0  ;;  %v2103_v44 = vpop.f32.mrf.mxu0  ;;  %v2150_v55 = vpop.f32.mrf.mxu1 }
 0x463   :  { %v2172_v63 = vadd.f32 %v2103_v44, %v5726_v45  ;;  %v2173_v12 = vadd.f32 %v2150_v55, %v5728_v22  ;;  %v2623_v55 = vld [vmem:[%s6046_s9 + $0x10] sm:$0xff] }
 0x464   :  { %v2373_v0 = vmax.f32 %v2357_v33, %v2359_v5  ;;  %v2374_v52 = vmax.f32 %v2358_v17, %v2360_v43 }
 0x465   :  { %v2244_v29 = vpop.f32.mrf.mxu2  ;;  %v2291_v48 = vpop.f32.mrf.mxu3 }
 0x466   :  { %v2381_v50 = vmax.f32 %v2373_v0, %v2374_v52  ;;  %v2315_v31 = vadd.f32 %v2244_v29, %v2168_v56  ;;  %v2316_v39 = vadd.f32 %v2291_v48, %v2169_v37  ;;  %v2586_v0 = vld [vmem:[%s6045_s7 + $0x48] sm:$0xff]  ;;  %v2585_v52 = vld [vmem:[%s6045_s7 + $0x40] sm:$0xff]  ;;  %v2584_v29 = vld [vmem:[%s6045_s7 + $0x38] sm:$0xff] }
 0x467   :  { %v2583_v48 = vld [vmem:[%s6045_s7 + $0x30] sm:$0xff]  ;;  %v2577_v56 = vld [vmem:[%s6045_s7] sm:$0xff] }
 0x468   :  { %2490 = vmatmul.f32.vlgmr.msra.gmra.mxu2 %v2381_v50  ;;  %v2341_v14 = vadd.f32 %v5806_v40, %v2315_v31  ;;  %v2342_v38 = vadd.f32 %v5808_v57, %v2316_v39  ;;  %v2580_v50 = vld [vmem:[%s6045_s7 + $0x18] sm:$0xff]  ;;  %v2631_v37 = vld [vmem:[%s6046_s9 + $0x50] sm:$0xf]  ;;  %v2630_v31 = vld [vmem:[%s6046_s9 + $0x48] sm:$0xff] }
 0x469   :  { %3248 = vmatpush.msk.msrb.mxu2 %vm2640_vm1, %v2631_v37  ;;  %v2629_v39 = vld [vmem:[%s6046_s9 + $0x40] sm:$0xff] }
 0x46a   :  { %v2361_v8 = vmax.f32 %v2341_v14, 0.0  ;;  %v2362_v61 = vmax.f32 %v2342_v38, 0.0  ;;  %v2106_v41 = vpop.f32.mrf.mxu0  ;;  %v2153_v21 = vpop.f32.mrf.mxu1 }
 0x46b   :  { %v2174_v42 = vadd.f32 %v2106_v41, %v5770_v25  ;;  %v2175_v27 = vadd.f32 %v2153_v21, %v5772_v62  ;;  %v2591_v25 = vld [vmem:[%s6045_s7 + $0x70] sm:$0xff]  ;;  %v2590_v62 = vld [vmem:[%s6045_s7 + $0x68] sm:$0xff]  ;;  %2650 = vmatpush.msrb.mxu2 %v2630_v31 }
 0x46c   :  { %2601 = vmatpush.msrb.mxu1 %v2591_v25 }
 0x46d   :  { %v2247_v46 = vpop.f32.mrf.mxu2  ;;  %v2294_v3 = vpop.f32.mrf.mxu3  ;;  %2651 = vmatpush.msrb.mxu2 %v2629_v39 }
 0x46e   :  { %v2317_v7 = vadd.f32 %v2247_v46, %v2170_v10  ;;  %v2318_v16 = vadd.f32 %v2294_v3, %v2171_v36  ;;  %2602 = vmatpush.msrb.mxu1 %v2590_v62  ;;  %v2626_v10 = vld [vmem:[%s6046_s9 + $0x28] sm:$0xff]  ;;  %v2625_v36 = vld [vmem:[%s6046_s9 + $0x20] sm:$0xff]  ;;  %v2624_v46 = vld [vmem:[%s6046_s9 + $0x18] sm:$0xff] }
 0x46f   :  { %2652 = vmatpush.msrb.mxu2 %v2628_v1 }
 0x470   :  { %v2343_v51 = vadd.f32 %v5806_v40, %v2317_v7  ;;  %v2344_v15 = vadd.f32 %v5808_v57, %v2318_v16 }
 0x471   :  { %2653 = vmatpush.msrb.mxu2 %v2627_v2 }
 0x472   :  { %v2363_v9 = vmax.f32 %v2343_v51, 0.0  ;;  %v2364_v58 = vmax.f32 %v2344_v15, 0.0 }
 0x473   :  { %2654 = vmatpush.msrb.mxu2 %v2626_v10 }
 0x474   :  { %v2375_v54 = vmax.f32 %v2361_v8, %v2363_v9  ;;  %v2376_v28 = vmax.f32 %v2362_v61, %v2364_v58  ;;  %v3250_v8 = vld [vmem:[%s6043_s6] ss:$0 sm:$0xff] }
 0x475   :  { %v2250_v19 = vpop.f32.mrf.mxu2  ;;  %v2297_v47 = vpop.f32.mrf.mxu3  ;;  %2655 = vmatpush.msrb.mxu2 %v2625_v36 }
 0x476   :  { %v2382_v32 = vmax.f32 %v2375_v54, %v2376_v28  ;;  %v2319_v18 = vadd.f32 %v2250_v19, %v2172_v63  ;;  %v2320_v24 = vadd.f32 %v2297_v47, %v2173_v12  ;;  %v2622_v54 = vld [vmem:[%s6046_s9 + $0x8] sm:$0xff]  ;;  %v2621_v28 = vld [vmem:[%s6046_s9] sm:$0xff] }
 0x477   :  { %2656 = vmatpush.msrb.mxu2 %v2624_v46  ;;  %v3251_v63 = vld [vmem:[%s6044_s8] ss:$0 sm:$0xff] }
 0x478   :  { %v2345_v35 = vadd.f32 %v5806_v40, %v2319_v18  ;;  %v2346_v4 = vadd.f32 %v5808_v57, %v2320_v24  ;;  %2528 = vmatmul.f32.vlgmr.msra.gmra.mxu3 %v2382_v32  ;;  %v3252_v32 = vld [vmem:[%s6047_s10] ss:$0 sm:$0xff] }
 0x479   :  { %2657 = vmatpush.msrb.mxu2 %v2623_v55 }
 0x47a   :  { %v2365_v17 = vmax.f32 %v2345_v35, 0.0  ;;  %v2366_v5 = vmax.f32 %v2346_v4, 0.0 }
 0x47b   :  { %2658 = vmatpush.msrb.mxu2 %v2622_v54 }
 0x47d   :  { %v2253_v6 = vpop.f32.mrf.mxu2  ;;  %v2300_v45 = vpop.f32.mrf.mxu3  ;;  %2659 = vmatpush.msrb.mxu2 %v2621_v28 }
 0x47e   :  { %v2321_v20 = vadd.f32 %v2253_v6, %v2174_v42  ;;  %v2322_v22 = vadd.f32 %v2300_v45, %v2175_v27 }
 0x480   :  { %v2347_v11 = vadd.f32 %v5806_v40, %v2321_v20  ;;  %v2348_v33 = vadd.f32 %v5808_v57, %v2322_v22  ;;  %v2589_v40 = vld [vmem:[%s6045_s7 + $0x60] sm:$0xff]  ;;  %v2588_v57 = vld [vmem:[%s6045_s7 + $0x58] sm:$0xff] }
 0x481   :  { %2603 = vmatpush.msrb.mxu1 %v2589_v40 }
 0x482   :  { %v2367_v43 = vmax.f32 %v2347_v11, 0.0  ;;  %v2368_v49 = vmax.f32 %v2348_v33, 0.0 }
 0x483   :  { %2604 = vmatpush.msrb.mxu1 %v2588_v57 }
 0x484   :  { %v2377_v13 = vmax.f32 %v2365_v17, %v2367_v43  ;;  %v2378_v53 = vmax.f32 %v2366_v5, %v2368_v49 }
 0x485   :  { %2605 = vmatpush.msrb.mxu1 %v2587_v59 }
 0x486   :  { %v2383_v26 = vmax.f32 %v2377_v13, %v2378_v53 }
 0x487   :  { %2606 = vmatpush.msrb.mxu1 %v2586_v0 }
 0x488   :  { %2566 = vmatmul.f32.vlgmr.msrb.gmra.mxu0 %v2383_v26 }
 0x489   :  { %2607 = vmatpush.msrb.mxu1 %v2585_v52 }
 0x48b   :  { %2608 = vmatpush.msrb.mxu1 %v2584_v29 }
 0x48d   :  { %2609 = vmatpush.msrb.mxu1 %v2583_v48 }
 0x48f   :  { %2610 = vmatpush.msrb.mxu1 %v2582_v34 }
 0x491   :  { %2611 = vmatpush.msrb.mxu1 %v2581_v23 }
 0x493   :  { %2612 = vmatpush.msrb.mxu1 %v2580_v50 }
 0x495   :  { %2613 = vmatpush.msrb.mxu1 %v2579_v30 }
 0x497   :  { %2614 = vmatpush.msrb.mxu1 %v2578_v60 }
 0x499   :  { %2615 = vmatpush.msrb.mxu1 %v2577_v56 }
 0x4c5   :  { %v2454_v14 = vpop.f32.mrf.mxu1 }
 0x4d5   :  { %v2434_v3 = vpop.f32.mrf.mxu0 }
 0x4d6   :  { %v2455_v7 = vadd.f32 %v2454_v14, %v2434_v3 }
 0x4eb   :  { %v2491_v38 = vpop.f32.mrf.mxu2 }
 0x4ec   :  { %v2494_v51 = vadd.f32 %v2491_v38, %v2455_v7 }
 0x4fb   :  { %v2529_v16 = vpop.f32.mrf.mxu3 }
 0x4fc   :  { %v2532_v15 = vadd.f32 %v2529_v16, %v2494_v51 }
 0x505   :  { %v2567_v61 = vpop.f32.mrf.mxu0 }
 0x506   :  { %v2570_v9 = vadd.f32 %v2567_v61, %v2532_v15 }
 0x508   :  { %v2575_v58 = vadd.f32 %v3250_v8, %v2570_v9 }
 0x50a   :  { %v2576_v44 = vmax.f32 %v2575_v58, 0.0 }
 0x50c   :  { %3247 = vmatmul.msk.f32.vlgmr.msrb.gmra.mxu1 %vm2596_vm2, %v2576_v44 }
 0x589   :  { %v2617_v12 = vpop.f32.mrf.mxu1 }
 0x58a   :  { %v2618_v19 = vadd.f32 %v3251_v63, %v2617_v12 }
 0x58c   :  { %v2620_v47 = vmax.f32 %v2618_v19, 0.0 }
 0x58e   :  { %3249 = vmatmul.msk.f32.vlgmr.msrb.gmra.mxu2 %vm2636_vm3, %v2620_v47 }
 0x611   :  { %v2661_v18 = vpop.f32.mrf.mxu2 }
 0x612   :  { %v2662_v24 = vadd.f32 %v3252_v32, %v2661_v18 }
 0x614   :  { %2664 = vmax.xlane.f32.xlu0 %v2662_v24 }
 0x687   :  { %v2665_v35 = vpop.xlane.xlu0 %2664 }
 0x688   :  { %v2666_v4 = vsub.f32 %v2662_v24, %v2665_v35 }
 0x68a   :  { %v2667_v41 = vmul.f32 1.442695, %v2666_v4 }
 0x68c   :  { %3253 = vpow2.f32 %v2667_v41 }
 0x692   :  { %v3254_v21 = vpop.eup %3253 }
 0x693   :  { %2669 = vadd.xlane.f32.xlu0 %v3254_v21 }
 0x706   :  { %v2670_v42 = vpop.xlane.xlu0 %2669 }
 0x707   :  { %3255 = vlog2.f32 %v2670_v42 }
 0x70d   :  { %v3256_v27 = vpop.eup %3255 }
 0x70e   :  { %v2672_v6 = vmul.f32 0.6931472, %v3256_v27 }
 0x710   :  { %v2673_v45 = vsub.f32 %v2666_v4, %v2672_v6 }
 0x712   :  { %2674 = vst [vmem:[%s6048_s11] sm:$0xff] %v2673_v45 }

</bundles_post_ra>
